<compile_context>
chip_gen: v6e
topology: v6e:2x2x1
jax: 0.10.0
libtpu: 0.0.40
codegen_flags: <defaults>
</compile_context>

<pallas_src>
import jax
import jax.numpy as jnp
from jax.experimental import pallas as pl
from jax.experimental.pallas import tpu as pltpu

C_SE = 68      # conv2d127 in-channels  (x394 channels)
C_MID = 1632   # conv2d127 out-channels / conv2d128 in-channels (x391 channels)
C_OUT = 272    # conv2d128 out-channels
H = W = 7
HW = H * W
EPS = 1e-5


def _fused_kernel(x_se_ref, w1_ref, b1_ref, x_ref, w2_ref, gamma_ref, beta_ref, o_ref):
    # --- SE branch: [1,68] @ [68,1632] -> [1,1632] f32, + bias, sigmoid (EUP).
    x_se = x_se_ref[...].astype(jnp.float32)
    w1 = w1_ref[...].astype(jnp.float32)
    logits = jnp.dot(x_se, w1, preferred_element_type=jnp.float32)
    s = jax.nn.sigmoid(logits + b1_ref[...])                       # [1, C_MID] f32

    # --- Channel-wise gating of the (HW, C_MID) slab; gate broadcasts along
    # the 49 sublanes for free.
    scaled = x_ref[...].astype(jnp.float32) * s                    # [HW, C_MID] f32

    # --- Projection 1x1 conv: [49,1632] @ [1632,272] -> [49,272] f32 (MXU).
    w2 = w2_ref[...].astype(jnp.float32)
    y = jnp.dot(scaled, w2, preferred_element_type=jnp.float32)

    # --- BatchNorm2d (training-mode batch stats over N*H*W, biased variance),
    # single pass: var = E[y^2] - mean^2.
    inv_n = jnp.float32(1.0 / HW)
    mean = jnp.sum(y, axis=0, keepdims=True) * inv_n               # [1, C_OUT]
    var = jnp.sum(y * y, axis=0, keepdims=True) * inv_n - mean * mean
    inv = jax.lax.rsqrt(var + EPS)
    o_ref[...] = (y - mean) * (gamma_ref[...] * inv) + beta_ref[...]


def prepare_params(w1, b1, w2, gamma, beta):
    """One-time parameter prep (outside the per-call hot path)."""
    w1_t = jnp.asarray(w1.reshape(C_MID, C_SE).T, dtype=jnp.bfloat16)    # [68, 1632]
    b1_row = jnp.asarray(b1.reshape(1, C_MID), dtype=jnp.float32)        # [1, 1632]
    w2_t = jnp.asarray(w2.reshape(C_OUT, C_MID).T, dtype=jnp.bfloat16)   # [1632, 272]
    gamma_row = jnp.asarray(gamma.reshape(1, C_OUT), dtype=jnp.float32)  # [1, 272]
    beta_row = jnp.asarray(beta.reshape(1, C_OUT), dtype=jnp.float32)    # [1, 272]
    return w1_t, b1_row, w2_t, gamma_row, beta_row


def m_forward(x394, x391, w1_t, b1_row, w2_t, gamma_row, beta_row):
    """x394: [1, 68, 1, 1], x391: [1, 1632, 7, 7] -> [1, 272, 7, 7] (f32)."""
    x_se = x394.reshape(1, C_SE).astype(jnp.bfloat16)                     # [1, 68]
    # Present the main activation as a lane-dense (HW, C_MID) bf16 slab.
    x_main = jnp.transpose(x391.reshape(C_MID, HW)).astype(jnp.bfloat16)  # [49, 1632]

    vmem = pl.BlockSpec(memory_space=pltpu.MemorySpace.VMEM)
    bytes_accessed = (
        x_se.size * 2 + w1_t.size * 2 + b1_row.size * 4
        + x_main.size * 2 + w2_t.size * 2
        + gamma_row.size * 4 + beta_row.size * 4
        + HW * C_OUT * 4
    )
    y_t = pl.pallas_call(
        _fused_kernel,
        out_shape=jax.ShapeDtypeStruct((HW, C_OUT), jnp.float32),
        in_specs=[vmem] * 7,
        out_specs=vmem,
        cost_estimate=pl.CostEstimate(
            flops=2 * HW * C_MID * C_OUT + 2 * C_SE * C_MID + 6 * HW * C_OUT,
            transcendentals=C_MID,
            bytes_accessed=bytes_accessed,
        ),
    )(x_se, w1_t, b1_row, x_main, w2_t, gamma_row, beta_row)
    return jnp.transpose(y_t).reshape(1, C_OUT, H, W)


def _reference(x394, x391, w1, b1, w2, gamma, beta):
    """Pure-JAX f32 reference mirroring the PyTorch forward."""
    s = jax.nn.sigmoid(w1.reshape(C_MID, C_SE) @ x394.reshape(C_SE) + b1)
    scaled = s[None, :, None, None] * x391
    y = jnp.einsum("oc,nchw->nohw", w2.reshape(C_OUT, C_MID), scaled)
    mean = jnp.mean(y, axis=(0, 2, 3), keepdims=True)
    var = jnp.mean((y - mean) ** 2, axis=(0, 2, 3), keepdims=True)
    yhat = (y - mean) / jnp.sqrt(var + EPS)
    return gamma[None, :, None, None] * yhat + beta[None, :, None, None]


if __name__ == "__main__":
    key = jax.random.PRNGKey(0)
    k1, k2, k3, k4, k5, k6, k7 = jax.random.split(key, 7)

    # Inputs (shapes taken directly from the PyTorch module).
    x391 = jax.random.normal(k1, (1, C_MID, H, W), jnp.float32)
    x394 = jax.random.normal(k2, (1, C_SE, 1, 1), jnp.float32)

    # Deterministic synthetic parameters (shapes match the module __init__).
    w1 = 0.05 * jax.random.normal(k3, (C_MID, C_SE, 1, 1), jnp.float32)   # conv2d127.weight
    b1 = 0.05 * jax.random.normal(k4, (C_MID,), jnp.float32)              # conv2d127.bias
    w2 = 0.02 * jax.random.normal(k5, (C_OUT, C_MID, 1, 1), jnp.float32)  # conv2d128.weight
    gamma = 1.0 + 0.1 * jax.random.normal(k6, (C_OUT,), jnp.float32)      # batchnorm2d76.weight
    beta = 0.1 * jax.random.normal(k7, (C_OUT,), jnp.float32)             # batchnorm2d76.bias

    params = prepare_params(w1, b1, w2, gamma, beta)
    fwd = jax.jit(m_forward)
    out = jax.block_until_ready(fwd(x394, x391, *params))
    ref = _reference(x394, x391, w1, b1, w2, gamma, beta)

    assert out.shape == (1, C_OUT, H, W), out.shape
    err = float(jnp.max(jnp.abs(out - ref)))
    # bf16-rounded matmul inputs (f32 accumulation) over K=1632 vs. an f32
    # reference: expected worst-case drift ~1e-2 on the unit-scale BN output.
    assert jnp.allclose(out, ref, atol=5e-2, rtol=5e-2), err
    print("KERNEL_OK")
</pallas_src>

<mosaic_0001>
module attributes {stable_mosaic.version = 11 : i64} {
  func.func @_fused_kernel(%arg0: memref<1x68xbf16, #tpu.memory_space<vmem>>, %arg1: memref<68x1632xbf16, #tpu.memory_space<vmem>>, %arg2: memref<1x1632xf32, #tpu.memory_space<vmem>>, %arg3: memref<49x1632xbf16, #tpu.memory_space<vmem>>, %arg4: memref<1632x272xbf16, #tpu.memory_space<vmem>>, %arg5: memref<1x272xf32, #tpu.memory_space<vmem>>, %arg6: memref<1x272xf32, #tpu.memory_space<vmem>>, %arg7: memref<49x272xf32, #tpu.memory_space<vmem>>) attributes {dimension_semantics = [], scalar_prefetch = 0 : i64, scratch_operands = 0 : i64, tpu.core_type = #tpu.core_type<tc>} {
    %c0 = arith.constant 0 : index
    %c0_0 = arith.constant 0 : index
    %0 = vector.load %arg0[%c0, %c0_0] : memref<1x68xbf16, #tpu.memory_space<vmem>>, vector<1x68xbf16>
    %1 = arith.extf %0 : vector<1x68xbf16> to vector<1x68xf32>
    %c0_1 = arith.constant 0 : index
    %c0_2 = arith.constant 0 : index
    %2 = vector.load %arg1[%c0_1, %c0_2] : memref<68x1632xbf16, #tpu.memory_space<vmem>>, vector<68x1632xbf16>
    %3 = arith.extf %2 : vector<68x1632xbf16> to vector<68x1632xf32>
    %cst = arith.constant dense<0.000000e+00> : vector<1x1632xf32>
    %4 = tpu.matmul %1, %3, %cst {dimension_numbers = #tpu.dot_dimension_numbers<[1], [0], [0], [1], [0, 0, 1, 1], [], []>} : vector<1x68xf32>, vector<68x1632xf32>, vector<1x1632xf32> -> vector<1x1632xf32>
    %c0_3 = arith.constant 0 : index
    %c0_4 = arith.constant 0 : index
    %5 = vector.load %arg2[%c0_3, %c0_4] : memref<1x1632xf32, #tpu.memory_space<vmem>>, vector<1x1632xf32>
    %6 = arith.addf %4, %5 : vector<1x1632xf32>
    %7 = arith.negf %6 : vector<1x1632xf32>
    %8 = math.exp %7 : vector<1x1632xf32>
    %cst_5 = arith.constant 1.000000e+00 : f32
    %9 = vector.broadcast %cst_5 : f32 to vector<1x1632xf32>
    %10 = arith.addf %9, %8 : vector<1x1632xf32>
    %11 = arith.divf %9, %10 : vector<1x1632xf32>
    %c0_6 = arith.constant 0 : index
    %c0_7 = arith.constant 0 : index
    %12 = vector.load %arg3[%c0_6, %c0_7] : memref<49x1632xbf16, #tpu.memory_space<vmem>>, vector<49x1632xbf16>
    %13 = arith.extf %12 : vector<49x1632xbf16> to vector<49x1632xf32>
    %14 = vector.broadcast %11 : vector<1x1632xf32> to vector<49x1632xf32>
    %15 = arith.mulf %13, %14 : vector<49x1632xf32>
    %c0_8 = arith.constant 0 : index
    %c0_9 = arith.constant 0 : index
    %16 = vector.load %arg4[%c0_8, %c0_9] : memref<1632x272xbf16, #tpu.memory_space<vmem>>, vector<1632x272xbf16>
    %17 = arith.extf %16 : vector<1632x272xbf16> to vector<1632x272xf32>
    %cst_10 = arith.constant dense<0.000000e+00> : vector<49x272xf32>
    %18 = tpu.matmul %15, %17, %cst_10 {dimension_numbers = #tpu.dot_dimension_numbers<[1], [0], [0], [1], [0, 0, 1, 1], [], []>} : vector<49x1632xf32>, vector<1632x272xf32>, vector<49x272xf32> -> vector<49x272xf32>
    %cst_11 = arith.constant dense<0.000000e+00> : vector<272xf32>
    %19 = vector.multi_reduction <add>, %18, %cst_11 [0] : vector<49x272xf32> to vector<272xf32>
    %20 = vector.shape_cast %19 : vector<272xf32> to vector<1x272xf32>
    %cst_12 = arith.constant 0.0204081628 : f32
    %21 = vector.broadcast %cst_12 : f32 to vector<1x272xf32>
    %22 = arith.mulf %20, %21 : vector<1x272xf32>
    %23 = arith.mulf %18, %18 : vector<49x272xf32>
    %cst_13 = arith.constant dense<0.000000e+00> : vector<272xf32>
    %24 = vector.multi_reduction <add>, %23, %cst_13 [0] : vector<49x272xf32> to vector<272xf32>
    %25 = vector.shape_cast %24 : vector<272xf32> to vector<1x272xf32>
    %cst_14 = arith.constant 0.0204081628 : f32
    %26 = vector.broadcast %cst_14 : f32 to vector<1x272xf32>
    %27 = arith.mulf %25, %26 : vector<1x272xf32>
    %28 = arith.mulf %22, %22 : vector<1x272xf32>
    %29 = arith.subf %27, %28 : vector<1x272xf32>
    %cst_15 = arith.constant 9.99999974E-6 : f32
    %30 = vector.broadcast %cst_15 : f32 to vector<1x272xf32>
    %31 = arith.addf %29, %30 : vector<1x272xf32>
    %32 = math.rsqrt %31 : vector<1x272xf32>
    %33 = vector.broadcast %22 : vector<1x272xf32> to vector<49x272xf32>
    %34 = arith.subf %18, %33 : vector<49x272xf32>
    %c0_16 = arith.constant 0 : index
    %c0_17 = arith.constant 0 : index
    %35 = vector.load %arg5[%c0_16, %c0_17] : memref<1x272xf32, #tpu.memory_space<vmem>>, vector<1x272xf32>
    %36 = arith.mulf %35, %32 : vector<1x272xf32>
    %37 = vector.broadcast %36 : vector<1x272xf32> to vector<49x272xf32>
    %38 = arith.mulf %34, %37 : vector<49x272xf32>
    %c0_18 = arith.constant 0 : index
    %c0_19 = arith.constant 0 : index
    %39 = vector.load %arg6[%c0_18, %c0_19] : memref<1x272xf32, #tpu.memory_space<vmem>>, vector<1x272xf32>
    %40 = vector.broadcast %39 : vector<1x272xf32> to vector<49x272xf32>
    %41 = arith.addf %38, %40 : vector<49x272xf32>
    %c0_20 = arith.constant 0 : index
    %c0_21 = arith.constant 0 : index
    %42 = vector.load %arg7[%c0_20, %c0_21] : memref<49x272xf32, #tpu.memory_space<vmem>>, vector<49x272xf32>
    tpu.vector_store %arg7[%c0_20, %c0_21], %41 {strides = array<i32>} : memref<49x272xf32, #tpu.memory_space<vmem>>, vector<49x272xf32>,
    return
  }
}

</mosaic_0001>

<bundles_post_ra>
// kernel: m_forward.1
= control target key start
LH: loop header
LB: loop body
LE: loop exit
PB: predicated region body
PF: predicated region fallthrough
CT: control target
= control target key end

     0   :  { %vm281_vm0 = vcmask 1043456   ;;  %v7155_v3 = vmov 0.0   ;;  %vm277_vm1 = vcmask 556032   ;;  %vm4497_vm2 = vmmov 0   ;;  %s7147_s1 = inlined_call_operand.vmem [shape: bf16[68,1632], index: 1, kind: input, shape index: {}]   ;;  %s7148_s0 = inlined_call_operand.vmem [shape: bf16[1,68], index: 0, kind: input, shape index: {}]   ;;  %s7149_s4 = inlined_call_operand.vmem [shape: bf16[1632,272], index: 4, kind: input, shape index: {}]   ;;  %s7150_s2 = inlined_call_operand.vmem [shape: f32[1,1632], index: 2, kind: input, shape index: {}]   ;;  %s7151_s3 = inlined_call_operand.vmem [shape: bf16[49,1632], index: 3, kind: input, shape index: {}]   ;;  %s7152_s5 = inlined_call_operand.vmem [shape: f32[1,272], index: 5, kind: input, shape index: {}]   ;;  %s7153_s6 = inlined_call_operand.vmem [shape: f32[1,272], index: 6, kind: input, shape index: {}]   ;;  %s7154_s7 = inlined_call_operand.vmem [shape: f32[49,272], index: 7, kind: output, shape index: {}]  }
   0x1   :  { %v84_v0 = vld [vmem:[%s7147_s1 + $0x1a0] sm:$0x33]  ;;  %v85_v1 = vld [vmem:[%s7147_s1 + $0x1a8] sm:$0x33]  ;;  %385 = vmatprep.mubr.f32.mxu0 %v7155_v3  ;;  %456 = vmatprep.mubr.f32.mxu1 %v7155_v3  ;;  %v78_v8 = vld [vmem:[%s7147_s1 + $0x174] sm:$0xff]  ;;  %vm2198_vm3 = vcmask 785408  }
   0x2   :  { %v77_v2 = vld [vmem:[%s7147_s1 + $0x16c] sm:$0xff]  ;;  %v195_v4 = vunpack.c.l.bf16 %v84_v0  ;;  %v196_v5 = vunpack.c.h.bf16 %v84_v0  ;;  %v197_v6 = vunpack.c.l.bf16 %v85_v1  ;;  %v198_v7 = vunpack.c.h.bf16 %v85_v1  ;;  %v70_v9 = vld [vmem:[%s7147_s1 + $0x138] sm:$0xff]  ;;  %v71_v10 = vld [vmem:[%s7147_s1 + $0x140] sm:$0xff] }
   0x3   :  { %v183_v11 = vunpack.c.h.bf16 %v77_v2  ;;  %v185_v12 = vunpack.c.h.bf16 %v78_v8  ;;  %v182_v13 = vunpack.c.l.bf16 %v77_v2  ;;  %v184_v14 = vunpack.c.l.bf16 %v78_v8  ;;  %v63_v15 = vld [vmem:[%s7147_s1 + $0x104] sm:$0xff]  ;;  %v64_v16 = vld [vmem:[%s7147_s1 + $0x10c] sm:$0xff]  ;;  %v57_v22 = vld [vmem:[%s7147_s1 + $0xd8] sm:$0xff] }
   0x4   :  { %3951 = vmatprep.subr.msk.mxu0 %vm281_vm0, %v196_v5  ;;  %3954 = vmatprep.subr.msk.mxu1 %vm281_vm0, %v198_v7  ;;  %v170_v17 = vunpack.c.h.bf16 %v70_v9  ;;  %v172_v18 = vunpack.c.h.bf16 %v71_v10  ;;  %v169_v19 = vunpack.c.l.bf16 %v70_v9  ;;  %v171_v20 = vunpack.c.l.bf16 %v71_v10  ;;  %v56_v21 = vld [vmem:[%s7147_s1 + $0xd0] sm:$0xff]  ;;  %v49_v27 = vld [vmem:[%s7147_s1 + $0x9c] sm:$0xff]  ;;  %v50_v28 = vld [vmem:[%s7147_s1 + $0xa4] sm:$0xff] }
   0x5   :  { %3952 = vmatpush1.msk.msra.mxu0 %vm281_vm0, %v195_v4  ;;  %3955 = vmatpush1.msk.msra.mxu1 %vm281_vm0, %v197_v6  ;;  %v157_v23 = vunpack.c.h.bf16 %v63_v15  ;;  %v159_v24 = vunpack.c.h.bf16 %v64_v16  ;;  %v156_v25 = vunpack.c.l.bf16 %v63_v15  ;;  %v158_v26 = vunpack.c.l.bf16 %v64_v16  ;;  %v42_v33 = vld [vmem:[%s7147_s1 + $0x68] sm:$0xff]  ;;  %v43_v34 = vld [vmem:[%s7147_s1 + $0x70] sm:$0xff]  ;;  %v36_v40 = vld [vmem:[%s7147_s1 + $0x3c] sm:$0xff] }
   0x6   :  { %337 = vmatprep.subr.mxu0 %v183_v11  ;;  %408 = vmatprep.subr.mxu1 %v185_v12  ;;  %v144_v29 = vunpack.c.h.bf16 %v56_v21  ;;  %v146_v30 = vunpack.c.h.bf16 %v57_v22  ;;  %v143_v31 = vunpack.c.l.bf16 %v56_v21  ;;  %v145_v32 = vunpack.c.l.bf16 %v57_v22  ;;  %v35_v39 = vld [vmem:[%s7147_s1 + $0x34] sm:$0xff]  ;;  %v28_v45 = vld [vmem:[%s7147_s1] sm:$0xff]  ;;  %v29_v46 = vld [vmem:[%s7147_s1 + $0x8] sm:$0xff] }
   0x7   :  { %338 = vmatpush1.msra.mxu0 %v182_v13  ;;  %409 = vmatpush1.msra.mxu1 %v184_v14  ;;  %v131_v35 = vunpack.c.h.bf16 %v49_v27  ;;  %v133_v36 = vunpack.c.h.bf16 %v50_v28  ;;  %v130_v37 = vunpack.c.l.bf16 %v49_v27  ;;  %v132_v38 = vunpack.c.l.bf16 %v50_v28  ;;  %v26_v51 = vld [vmem:[%s7148_s0] sm:$0x1]  ;;  %v86_v54 = vld [vmem:[%s7147_s1 + $0x1b0] sm:$0x33]  ;;  %v87_v55 = vld [vmem:[%s7147_s1 + $0x1b8] sm:$0x33] }
   0x8   :  { %339 = vmatprep.subr.mxu0 %v170_v17  ;;  %410 = vmatprep.subr.mxu1 %v172_v18  ;;  %v118_v41 = vunpack.c.h.bf16 %v42_v33  ;;  %v120_v42 = vunpack.c.h.bf16 %v43_v34  ;;  %v117_v43 = vunpack.c.l.bf16 %v42_v33  ;;  %v119_v44 = vunpack.c.l.bf16 %v43_v34  ;;  %v79_v59 = vld [vmem:[%s7147_s1 + $0x17c] sm:$0xff]  ;;  %v80_v60 = vld [vmem:[%s7147_s1 + $0x184] sm:$0xff]  ;;  %v73_v2 = vld [vmem:[%s7147_s1 + $0x150] sm:$0xff] }
   0x9   :  { %340 = vmatpush1.msra.mxu0 %v169_v19  ;;  %411 = vmatpush1.msra.mxu1 %v171_v20  ;;  %v105_v47 = vunpack.c.h.bf16 %v35_v39  ;;  %v107_v48 = vunpack.c.h.bf16 %v36_v40  ;;  %v104_v49 = vunpack.c.l.bf16 %v35_v39  ;;  %v106_v50 = vunpack.c.l.bf16 %v36_v40  ;;  %v72_v1 = vld [vmem:[%s7147_s1 + $0x148] sm:$0xff]  ;;  %v65_v8 = vld [vmem:[%s7147_s1 + $0x114] sm:$0xff]  ;;  %v66_v9 = vld [vmem:[%s7147_s1 + $0x11c] sm:$0xff] }
   0xa   :  { %341 = vmatprep.subr.mxu0 %v157_v23  ;;  %412 = vmatprep.subr.mxu1 %v159_v24  ;;  %v92_v52 = vunpack.c.h.bf16 %v28_v45  ;;  %v94_v53 = vunpack.c.h.bf16 %v29_v46  ;;  %v91_v56 = vunpack.c.l.bf16 %v28_v45  ;;  %v93_v57 = vunpack.c.l.bf16 %v29_v46  ;;  %v58_v14 = vld [vmem:[%s7147_s1 + $0xe0] sm:$0xff]  ;;  %v59_v15 = vld [vmem:[%s7147_s1 + $0xe8] sm:$0xff]  ;;  %v52_v21 = vld [vmem:[%s7147_s1 + $0xb4] sm:$0xff] }
   0xb   :  { %342 = vmatpush1.msra.mxu0 %v156_v25  ;;  %413 = vmatpush1.msra.mxu1 %v158_v26  ;;  %v4608_v58 = vunpack.c.l.bf16 %v26_v51  ;;  %v200_v61 = vunpack.c.h.bf16 %v86_v54  ;;  %v202_v62 = vunpack.c.h.bf16 %v87_v55  ;;  %v199_v63 = vunpack.c.l.bf16 %v86_v54  ;;  %v51_v20 = vld [vmem:[%s7147_s1 + $0xac] sm:$0xff]  ;;  %v44_v26 = vld [vmem:[%s7147_s1 + $0x78] sm:$0xff]  ;;  %v45_v27 = vld [vmem:[%s7147_s1 + $0x80] sm:$0xff] }
   0xc   :  { %343 = vmatprep.subr.mxu0 %v144_v29  ;;  %414 = vmatprep.subr.mxu1 %v146_v30  ;;  %v201_v0 = vunpack.c.l.bf16 %v87_v55  ;;  %v187_v4 = vunpack.c.h.bf16 %v79_v59  ;;  %v189_v5 = vunpack.c.h.bf16 %v80_v60  ;;  %v186_v6 = vunpack.c.l.bf16 %v79_v59  ;;  %v38_v33 = vld [vmem:[%s7147_s1 + $0x4c] sm:$0xff]  ;;  %v88_v45 = vld [vmem:[%s7147_s1 + $0x1c0] sm:$0x33]  ;;  %v82_v54 = vld [vmem:[%s7147_s1 + $0x194] sm:$0xff] }
   0xd   :  { %344 = vmatpush1.msra.mxu0 %v143_v31  ;;  %415 = vmatpush1.msra.mxu1 %v145_v32  ;;  %v188_v7 = vunpack.c.l.bf16 %v80_v60  ;;  %v174_v10 = vunpack.c.h.bf16 %v72_v1  ;;  %v176_v11 = vunpack.c.h.bf16 %v73_v2  ;;  %v173_v12 = vunpack.c.l.bf16 %v72_v1  ;;  %v37_v32 = vld [vmem:[%s7147_s1 + $0x44] sm:$0xff] }
   0xe   :  { %345 = vmatprep.subr.mxu0 %v131_v35  ;;  %416 = vmatprep.subr.mxu1 %v133_v36  ;;  %v175_v13 = vunpack.c.l.bf16 %v73_v2  ;;  %v161_v16 = vunpack.c.h.bf16 %v65_v8  ;;  %v163_v17 = vunpack.c.h.bf16 %v66_v9  ;;  %v160_v18 = vunpack.c.l.bf16 %v65_v8  ;;  %v67_v60 = vld [vmem:[%s7147_s1 + $0x124] sm:$0xff]  ;;  %v60_v2 = vld [vmem:[%s7147_s1 + $0xf0] sm:$0xff] }
   0xf   :  { %346 = vmatpush1.msra.mxu0 %v130_v37  ;;  %417 = vmatpush1.msra.mxu1 %v132_v38  ;;  %v162_v19 = vunpack.c.l.bf16 %v66_v9  ;;  %v148_v22 = vunpack.c.h.bf16 %v58_v14  ;;  %v150_v23 = vunpack.c.h.bf16 %v59_v15  ;;  %v147_v24 = vunpack.c.l.bf16 %v58_v14  ;;  %v30_v38 = vld [vmem:[%s7147_s1 + $0x10] sm:$0xff]  ;;  %v53_v9 = vld [vmem:[%s7147_s1 + $0xbc] sm:$0xff] }
  0x10   :  { %347 = vmatprep.subr.mxu0 %v118_v41  ;;  %418 = vmatprep.subr.mxu1 %v120_v42  ;;  %v149_v25 = vunpack.c.l.bf16 %v59_v15  ;;  %v135_v28 = vunpack.c.h.bf16 %v51_v20  ;;  %v137_v29 = vunpack.c.h.bf16 %v52_v21  ;;  %v134_v30 = vunpack.c.l.bf16 %v51_v20  ;;  %v31_v41 = vld [vmem:[%s7147_s1 + $0x18] sm:$0xff]  ;;  %v46_v15 = vld [vmem:[%s7147_s1 + $0x88] sm:$0xff] }
  0x11   :  { %348 = vmatpush1.msra.mxu0 %v117_v43  ;;  %419 = vmatpush1.msra.mxu1 %v119_v44  ;;  %v136_v31 = vunpack.c.l.bf16 %v52_v21  ;;  %v122_v34 = vunpack.c.h.bf16 %v44_v26  ;;  %v124_v35 = vunpack.c.h.bf16 %v45_v27  ;;  %v121_v36 = vunpack.c.l.bf16 %v44_v26  ;;  %v39_v21 = vld [vmem:[%s7147_s1 + $0x54] sm:$0xff] }
  0x12   :  { %349 = vmatprep.subr.mxu0 %v105_v47  ;;  %420 = vmatprep.subr.mxu1 %v107_v48  ;;  %v123_v37 = vunpack.c.l.bf16 %v45_v27  ;;  %v109_v39 = vunpack.c.h.bf16 %v37_v32  ;;  %v111_v40 = vunpack.c.h.bf16 %v38_v33  ;;  %v108_v42 = vunpack.c.l.bf16 %v37_v32  ;;  %v32_v27 = vld [vmem:[%s7147_s1 + $0x20] sm:$0xff] }
  0x13   :  { %350 = vmatpush1.msra.mxu0 %v104_v49  ;;  %421 = vmatpush1.msra.mxu1 %v106_v50  ;;  %v110_v43 = vunpack.c.l.bf16 %v38_v33  ;;  %v96_v44 = vunpack.c.h.bf16 %v30_v38  ;;  %v95_v46 = vunpack.c.l.bf16 %v30_v38  ;;  %v98_v47 = vunpack.c.h.bf16 %v31_v41  ;;  %v81_v49 = vld [vmem:[%s7147_s1 + $0x18c] sm:$0xff] }
  0x14   :  { %351 = vmatprep.subr.mxu0 %v92_v52  ;;  %422 = vmatprep.subr.mxu1 %v94_v53  ;;  %v97_v48 = vunpack.c.l.bf16 %v31_v41  ;;  %v89_v50 = vld [vmem:[%s7147_s1 + $0x1c8] sm:$0x33]  ;;  %v204_v51 = vunpack.c.h.bf16 %v88_v45  ;;  %v203_v52 = vunpack.c.l.bf16 %v88_v45  ;;  %v74_v53 = vld [vmem:[%s7147_s1 + $0x158] sm:$0xff]  ;;  %v191_v55 = vunpack.c.h.bf16 %v81_v49  ;;  %v90_v38 = vld [vmem:[%s7147_s1 + $0x1d0] sm:$0x3] }
  0x15   :  { %352 = vmatpush1.msra.mxu0 %v91_v56  ;;  %423 = vmatpush1.msra.mxu1 %v93_v57  ;;  %v206_v56 = vunpack.c.h.bf16 %v89_v50  ;;  %v190_v57 = vunpack.c.l.bf16 %v81_v49  ;;  %v205_v59 = vunpack.c.l.bf16 %v89_v50  ;;  %v192_v1 = vunpack.c.l.bf16 %v82_v54  ;;  %v83_v41 = vld [vmem:[%s7147_s1 + $0x168] ss:$52 sps:$4 sm:$0xff]  }
  0x16   :  { %3953 = vmatmul.mubr.msk.f32.vlgmr.msra.gmra.mxu0 %vm277_vm1, %v4608_v58  ;;  %3956 = vmatmul.mubr.msk.f32.vlgmr.msra.gmra.mxu1 %vm277_vm1, %v4608_v58  ;;  %v100_v33 = vunpack.c.h.bf16 %v32_v27  ;;  %v194_v45 = vunpack.c.h.bf16 %v83_v41  ;;  %v1204_v49 = vld [vmem:[%s7149_s4 + $0x9c] sm:$0xff]  ;;  %v181_v50 = vunpack.c.l.bf16 %v83_v41  ;;  %v1184_v41 = vld [vmem:[%s7149_s4 + $0x24] sm:$0xff]  ;;  %vm3674_vm4 = vcmask 1040384  }
  0x17   :  { %3957 = vmatprep.subr.msk.mxu0 %vm281_vm0, %v200_v61  ;;  %3960 = vmatprep.subr.msk.mxu1 %vm281_vm0, %v202_v62  ;;  %v75_v61 = vld [vmem:[%s7147_s1 + $0x160] sm:$0xff]  ;;  %v178_v62 = vunpack.c.h.bf16 %v74_v53  ;;  %vm3696_vm5 = vcmask 130048   ;;  %vm3708_vm6 = vcmask 122880  }
  0x18   :  { %3958 = vmatpush1.msk.msra.mxu0 %vm281_vm0, %v199_v63  ;;  %3961 = vmatpush1.msk.msra.mxu1 %vm281_vm0, %v201_v0  ;;  %v193_v63 = vunpack.c.h.bf16 %v82_v54  ;;  %v177_v0 = vunpack.c.l.bf16 %v74_v53  ;;  %v179_v8 = vunpack.c.l.bf16 %v75_v61  ;;  %v1202_v53 = vld [vmem:[%s7149_s4 + $0x90] sm:$0xff] }
  0x19   :  { %479 = vmatprep.subr.mxu0 %v187_v4  ;;  %550 = vmatprep.subr.mxu1 %v189_v5  ;;  %v68_v4 = vld [vmem:[%s7147_s1 + $0x12c] sm:$0xff]  ;;  %v165_v5 = vunpack.c.h.bf16 %v67_v60 }
  0x1a   :  { %480 = vmatpush1.msra.mxu0 %v186_v6  ;;  %551 = vmatpush1.msra.mxu1 %v188_v7  ;;  %v180_v6 = vunpack.c.h.bf16 %v75_v61  ;;  %v164_v7 = vunpack.c.l.bf16 %v67_v60  ;;  %v166_v14 = vunpack.c.l.bf16 %v68_v4  ;;  %v1623_v61 = vunpack.c.h.bf16 %v1202_v53 }
  0x1b   :  { %481 = vmatprep.subr.mxu0 %v174_v10  ;;  %552 = vmatprep.subr.mxu1 %v176_v11  ;;  %v61_v10 = vld [vmem:[%s7147_s1 + $0xf8] sm:$0xff]  ;;  %v152_v11 = vunpack.c.h.bf16 %v60_v2 }
  0x1c   :  { %482 = vmatpush1.msra.mxu0 %v173_v12  ;;  %553 = vmatpush1.msra.mxu1 %v175_v13  ;;  %v167_v12 = vunpack.c.h.bf16 %v68_v4  ;;  %v151_v13 = vunpack.c.l.bf16 %v60_v2  ;;  %v153_v20 = vunpack.c.l.bf16 %v61_v10  ;;  %v41_v2 = vld [vmem:[%s7147_s1 + $0x30] ss:$52 sps:$4 sm:$0xff]  }
  0x1d   :  { %483 = vmatprep.subr.mxu0 %v161_v16  ;;  %554 = vmatprep.subr.mxu1 %v163_v17  ;;  %v54_v16 = vld [vmem:[%s7147_s1 + $0xc4] sm:$0xff]  ;;  %v139_v17 = vunpack.c.h.bf16 %v53_v9 }
  0x1e   :  { %484 = vmatpush1.msra.mxu0 %v160_v18  ;;  %555 = vmatpush1.msra.mxu1 %v162_v19  ;;  %v154_v18 = vunpack.c.h.bf16 %v61_v10  ;;  %v138_v19 = vunpack.c.l.bf16 %v53_v9  ;;  %v140_v26 = vunpack.c.l.bf16 %v54_v16  ;;  %v1194_v9 = vld [vmem:[%s7149_s4 + $0x60] sm:$0xff]  ;;  %v116_v10 = vunpack.c.h.bf16 %v41_v2 }
  0x1f   :  { %485 = vmatprep.subr.mxu0 %v148_v22  ;;  %556 = vmatprep.subr.mxu1 %v150_v23  ;;  %v47_v22 = vld [vmem:[%s7147_s1 + $0x90] sm:$0xff]  ;;  %v126_v23 = vunpack.c.h.bf16 %v46_v15 }
  0x20   :  { %486 = vmatpush1.msra.mxu0 %v147_v24  ;;  %557 = vmatpush1.msra.mxu1 %v149_v25  ;;  %v141_v24 = vunpack.c.h.bf16 %v54_v16  ;;  %v125_v25 = vunpack.c.l.bf16 %v46_v15  ;;  %v127_v32 = vunpack.c.l.bf16 %v47_v22  ;;  %v1270_v15 = vld [vmem:[%s7149_s4 + $0x228] sm:$0xff]  ;;  %v1611_v16 = vunpack.c.h.bf16 %v1194_v9 }
  0x21   :  { %487 = vmatprep.subr.mxu0 %v135_v28  ;;  %558 = vmatprep.subr.mxu1 %v137_v29  ;;  %v40_v28 = vld [vmem:[%s7147_s1 + $0x5c] sm:$0xff]  ;;  %v113_v29 = vunpack.c.h.bf16 %v39_v21 }
  0x22   :  { %488 = vmatpush1.msra.mxu0 %v134_v30  ;;  %559 = vmatpush1.msra.mxu1 %v136_v31  ;;  %v128_v30 = vunpack.c.h.bf16 %v47_v22  ;;  %v112_v31 = vunpack.c.l.bf16 %v39_v21  ;;  %v1610_v21 = vunpack.c.l.bf16 %v1194_v9  ;;  %v1190_v22 = vld [vmem:[%s7149_s4 + $0x48] sm:$0xff] }
  0x23   :  { %489 = vmatprep.subr.mxu0 %v122_v34  ;;  %560 = vmatprep.subr.mxu1 %v124_v35  ;;  %v115_v34 = vunpack.c.h.bf16 %v40_v28  ;;  %v33_v35 = vld [vmem:[%s7147_s1 + $0x28] sm:$0xff] }
  0x24   :  { %490 = vmatpush1.msra.mxu0 %v121_v36  ;;  %561 = vmatpush1.msra.mxu1 %v123_v37  ;;  %v99_v36 = vunpack.c.l.bf16 %v32_v27  ;;  %v114_v37 = vunpack.c.l.bf16 %v40_v28  ;;  %v1188_v28 = vld [vmem:[%s7149_s4 + $0x3c] sm:$0xff] }
  0x25   :  { %491 = vmatprep.subr.mxu0 %v109_v39  ;;  %562 = vmatprep.subr.mxu1 %v111_v40  ;;  %v102_v39 = vunpack.c.h.bf16 %v33_v35  ;;  %v101_v40 = vunpack.c.l.bf16 %v33_v35 }
  0x26   :  { %492 = vmatpush1.msra.mxu0 %v108_v42  ;;  %563 = vmatpush1.msra.mxu1 %v110_v43  ;;  %v1208_v42 = vld [vmem:[%s7149_s4 + $0xb4] sm:$0xff]  ;;  %v207_v43 = vunpack.c.l.bf16 %v90_v38  ;;  %v1601_v38 = vunpack.c.l.bf16 %v1188_v28 }
  0x27   :  { %493 = vmatprep.subr.mxu0 %v96_v44  ;;  %527 = vmatprep.mubr.f32.mxu0 %v7155_v3  ;;  %v1206_v44 = vld [vmem:[%s7149_s4 + $0xa8] sm:$0xff] }
  0x28   :  { %494 = vmatpush1.msra.mxu0 %v95_v46  ;;  %564 = vmatprep.subr.mxu1 %v98_v47  ;;  %v1632_v46 = vunpack.c.h.bf16 %v1208_v42  ;;  %v69_v47 = vld [vmem:[%s7147_s1 + $0x100] ss:$52 sps:$4 sm:$0xff]  }
  0x29   :  { %3959 = vmatmul.mubr.msk.f32.vlgmr.msra.gmra.mxu0 %vm277_vm1, %v4608_v58  ;;  %565 = vmatpush1.msra.mxu1 %v97_v48  ;;  %v1631_v48 = vunpack.c.l.bf16 %v1208_v42  ;;  %v168_v54 = vunpack.c.h.bf16 %v69_v47  ;;  %v155_v60 = vunpack.c.l.bf16 %v69_v47 }
  0x2a   :  { %598 = vmatprep.mubr.f32.mxu1 %v7155_v3  ;;  %3963 = vmatprep.subr.msk.mxu0 %vm281_vm0, %v204_v51  ;;  %v1629_v51 = vunpack.c.h.bf16 %v1206_v44 }
  0x2b   :  { %3962 = vmatmul.mubr.msk.f32.vlgmr.msra.gmra.mxu1 %vm277_vm1, %v4608_v58  ;;  %3964 = vmatpush1.msk.msra.mxu0 %vm281_vm0, %v203_v52  ;;  %v1628_v52 = vunpack.c.l.bf16 %v1206_v44 }
  0x2c   :  { %621 = vmatprep.subr.mxu0 %v191_v55  ;;  %3966 = vmatprep.subr.msk.mxu1 %vm281_vm0, %v206_v56  ;;  %v1626_v55 = vunpack.c.h.bf16 %v1204_v49  ;;  %v55_v56 = vld [vmem:[%s7147_s1 + $0x98] ss:$52 sps:$4 sm:$0xff]  }
  0x2d   :  { %622 = vmatpush1.msra.mxu0 %v190_v57  ;;  %3967 = vmatpush1.msk.msra.mxu1 %vm281_vm0, %v205_v59  ;;  %v1625_v57 = vunpack.c.l.bf16 %v1204_v49  ;;  %v1200_v59 = vld [vmem:[%s7149_s4 + $0x84] sm:$0xff]  ;;  %v1595_v49 = vunpack.c.l.bf16 %v1184_v41 }
  0x2e   :  { %623 = vmatprep.subr.mxu0 %v178_v62  ;;  %692 = vmatprep.subr.mxu1 %v193_v63  ;;  %v1622_v62 = vunpack.c.l.bf16 %v1202_v53  ;;  %v1198_v63 = vld [vmem:[%s7149_s4 + $0x78] sm:$0xff]  ;;  %v1619_v4 = vunpack.c.l.bf16 %v1200_v59 }
  0x2f   :  { %624 = vmatpush1.msra.mxu0 %v177_v0  ;;  %693 = vmatpush1.msra.mxu1 %v192_v1  ;;  %v142_v0 = vunpack.c.h.bf16 %v55_v56  ;;  %v1620_v1 = vunpack.c.h.bf16 %v1200_v59 }
  0x30   :  { %625 = vmatprep.subr.mxu0 %v165_v5  ;;  %694 = vmatprep.subr.mxu1 %v180_v6  ;;  %v1196_v5 = vld [vmem:[%s7149_s4 + $0x6c] sm:$0xff]  ;;  %v129_v6 = vunpack.c.l.bf16 %v55_v56 }
  0x31   :  { %626 = vmatpush1.msra.mxu0 %v164_v7  ;;  %695 = vmatpush1.msra.mxu1 %v179_v8  ;;  %v1617_v7 = vunpack.c.h.bf16 %v1198_v63  ;;  %v1616_v8 = vunpack.c.l.bf16 %v1198_v63  ;;  %v1180_v56 = vld [vmem:[%s7149_s4 + $0xc] sm:$0xff]  ;;  %v1178_v63 = vld [vmem:[%s7149_s4] sm:$0xff] }
  0x32   :  { %627 = vmatprep.subr.mxu0 %v152_v11  ;;  %696 = vmatprep.subr.mxu1 %v167_v12  ;;  %v1272_v11 = vld [vmem:[%s7149_s4 + $0x234] sm:$0xff]  ;;  %v1614_v12 = vunpack.c.h.bf16 %v1196_v5  ;;  %v1590_v59 = vunpack.c.h.bf16 %v1180_v56 }
  0x33   :  { %628 = vmatpush1.msra.mxu0 %v151_v13  ;;  %697 = vmatpush1.msra.mxu1 %v166_v14  ;;  %v1613_v13 = vunpack.c.l.bf16 %v1196_v5  ;;  %v103_v14 = vunpack.c.l.bf16 %v41_v2  ;;  %v1586_v5 = vunpack.c.l.bf16 %v1178_v63 }
  0x34   :  { %629 = vmatprep.subr.mxu0 %v139_v17  ;;  %698 = vmatprep.subr.mxu1 %v154_v18  ;;  %v1192_v17 = vld [vmem:[%s7149_s4 + $0x54] sm:$0xff]  ;;  %v1728_v18 = vunpack.c.h.bf16 %v1272_v11 }
  0x35   :  { %630 = vmatpush1.msra.mxu0 %v138_v19  ;;  %699 = vmatpush1.msra.mxu1 %v153_v20  ;;  %v1727_v19 = vunpack.c.l.bf16 %v1272_v11  ;;  %v1268_v20 = vld [vmem:[%s7149_s4 + $0x21c] sm:$0xff]  ;;  %v1607_v27 = vunpack.c.l.bf16 %v1192_v17 }
  0x36   :  { %631 = vmatprep.subr.mxu0 %v126_v23  ;;  %700 = vmatprep.subr.mxu1 %v141_v24  ;;  %v1725_v23 = vunpack.c.h.bf16 %v1270_v15  ;;  %v1608_v24 = vunpack.c.h.bf16 %v1192_v17 }
  0x37   :  { %632 = vmatpush1.msra.mxu0 %v125_v25  ;;  %701 = vmatpush1.msra.mxu1 %v140_v26  ;;  %v1724_v25 = vunpack.c.l.bf16 %v1270_v15  ;;  %v1266_v26 = vld [vmem:[%s7149_s4 + $0x210] sm:$0xff] }
  0x38   :  { %633 = vmatprep.subr.mxu0 %v113_v29  ;;  %702 = vmatprep.subr.mxu1 %v128_v30  ;;  %v1722_v29 = vunpack.c.h.bf16 %v1268_v20  ;;  %v1605_v30 = vunpack.c.h.bf16 %v1190_v22  ;;  %v1719_v35 = vunpack.c.h.bf16 %v1266_v26 }
  0x39   :  { %634 = vmatpush1.msra.mxu0 %v112_v31  ;;  %703 = vmatpush1.msra.mxu1 %v127_v32  ;;  %v1721_v31 = vunpack.c.l.bf16 %v1268_v20  ;;  %v1264_v32 = vld [vmem:[%s7149_s4 + $0x204] sm:$0xff] }
  0x3a   :  { %635 = vmatprep.subr.mxu0 %v100_v33  ;;  %704 = vmatprep.subr.mxu1 %v115_v34  ;;  %v1604_v33 = vunpack.c.l.bf16 %v1190_v22  ;;  %v1186_v34 = vld [vmem:[%s7149_s4 + $0x30] sm:$0xff]  ;;  %v1715_v42 = vunpack.c.l.bf16 %v1264_v32  ;;  %v1246_v22 = vld [vmem:[%s7149_s4 + $0x198] sm:$0xff] }
  0x3b   :  { %636 = vmatpush1.msra.mxu0 %v99_v36  ;;  %669 = vmatprep.mubr.f32.mxu0 %v7155_v3  ;;  %v1602_v36 = vunpack.c.h.bf16 %v1188_v28  ;;  %v1598_v44 = vunpack.c.l.bf16 %v1186_v34  ;;  %v1244_v28 = vld [vmem:[%s7149_s4 + $0x18c] sm:$0xff] }
  0x3c   :  { %705 = vmatpush1.msra.mxu1 %v114_v37  ;;  %3965 = vmatmul.mubr.msk.f32.vlgmr.msra.gmra.mxu0 %vm277_vm1, %v4608_v58  ;;  %v1262_v37 = vld [vmem:[%s7149_s4 + $0x1f8] sm:$0xff] }
  0x3d   :  { %706 = vmatprep.subr.mxu1 %v102_v39  ;;  %740 = vmatprep.mubr.f32.mxu1 %v7155_v3  ;;  %v1716_v39 = vunpack.c.h.bf16 %v1264_v32  ;;  %v1712_v47 = vunpack.c.l.bf16 %v1262_v37 }
  0x3e   :  { %707 = vmatpush1.msra.mxu1 %v101_v40  ;;  %4345 = vmatprep.subr.mxu0 %v7155_v3  ;;  %v1599_v40 = vunpack.c.h.bf16 %v1186_v34  ;;  %v1242_v34 = vld [vmem:[%s7149_s4 + $0x180] sm:$0xff] }
  0x3f   :  { %3968 = vmatmul.mubr.msk.f32.vlgmr.msra.gmra.mxu1 %vm277_vm1, %v4608_v58  ;;  %4346 = vmatpush3.msk.msra.mxu0 %vm281_vm0, %v207_v43  ;;  %v1260_v43 = vld [vmem:[%s7149_s4 + $0x1ec] sm:$0xff] }
  0x40   :  { %4347 = vmatprep.subr.mxu0 %v7155_v3  ;;  %4363 = vmatprep.mubr.msk.f32.mxu0 %vm4497_vm2, %v7155_v3  ;;  %v1709_v53 = vunpack.c.l.bf16 %v1260_v43 }
  0x41   :  { %4348 = vmatpush3.msra.mxu0 %v194_v45  ;;  %2220 = vmatprep.subr.mxu1 %v1632_v46  ;;  %v1713_v45 = vunpack.c.h.bf16 %v1262_v37  ;;  %v1596_v46 = vunpack.c.h.bf16 %v1184_v41  ;;  %v1228_v41 = vld [vmem:[%s7149_s4 + $0x12c] sm:$0xff] }
  0x42   :  { %4349 = vmatprep.subr.mxu0 %v7155_v3  ;;  %2221 = vmatpush1.msra.mxu1 %v1631_v48  ;;  %v1258_v48 = vld [vmem:[%s7149_s4 + $0x1e0] sm:$0xff] }
  0x43   :  { %4350 = vmatpush3.msra.mxu0 %v181_v50  ;;  %2222 = vmatprep.subr.mxu1 %v1629_v51  ;;  %v1182_v50 = vld [vmem:[%s7149_s4 + $0x18] sm:$0xff]  ;;  %v1710_v51 = vunpack.c.h.bf16 %v1260_v43  ;;  %v1662_v43 = vunpack.c.h.bf16 %v1228_v41 }
  0x44   :  { %4351 = vmatprep.subr.mxu0 %v7155_v3  ;;  %2223 = vmatpush1.msra.mxu1 %v1628_v52  ;;  %v1593_v52 = vunpack.c.h.bf16 %v1182_v50 }
  0x45   :  { %4352 = vmatpush3.msra.mxu0 %v168_v54  ;;  %2224 = vmatprep.subr.mxu1 %v1626_v55  ;;  %v1256_v54 = vld [vmem:[%s7149_s4 + $0x1d4] sm:$0xff]  ;;  %v1592_v55 = vunpack.c.l.bf16 %v1182_v50 }
  0x46   :  { %4353 = vmatprep.subr.mxu0 %v7155_v3  ;;  %2225 = vmatpush1.msra.mxu1 %v1625_v57  ;;  %v1707_v57 = vunpack.c.h.bf16 %v1258_v48  ;;  %v1703_v2 = vunpack.c.l.bf16 %v1256_v54 }
  0x47   :  { %4354 = vmatpush3.msra.mxu0 %v155_v60  ;;  %2226 = vmatprep.subr.mxu1 %v1623_v61  ;;  %v1706_v60 = vunpack.c.l.bf16 %v1258_v48  ;;  %v1254_v61 = vld [vmem:[%s7149_s4 + $0x1c8] sm:$0xff] }
  0x48   :  { %4355 = vmatprep.subr.mxu0 %v7155_v3  ;;  %2227 = vmatpush1.msra.mxu1 %v1622_v62  ;;  %v1589_v62 = vunpack.c.l.bf16 %v1180_v56  ;;  %v1700_v9 = vunpack.c.l.bf16 %v1254_v61 }
  0x49   :  { %4356 = vmatpush3.msra.mxu0 %v142_v0  ;;  %2228 = vmatprep.subr.mxu1 %v1620_v1  ;;  %v1704_v0 = vunpack.c.h.bf16 %v1256_v54  ;;  %v1587_v1 = vunpack.c.h.bf16 %v1178_v63 }
  0x4a   :  { %4357 = vmatprep.subr.mxu0 %v7155_v3  ;;  %2229 = vmatpush1.msra.mxu1 %v1619_v4  ;;  %v1252_v4 = vld [vmem:[%s7149_s4 + $0x1bc] sm:$0xff] }
  0x4b   :  { %4358 = vmatpush3.msra.mxu0 %v129_v6  ;;  %2230 = vmatprep.subr.mxu1 %v1617_v7  ;;  %v1240_v6 = vld [vmem:[%s7149_s4 + $0x174] sm:$0xff]  ;;  %v1701_v7 = vunpack.c.h.bf16 %v1254_v61  ;;  %v1697_v15 = vunpack.c.l.bf16 %v1252_v4 }
  0x4c   :  { %4359 = vmatprep.subr.mxu0 %v7155_v3  ;;  %2231 = vmatpush1.msra.mxu1 %v1616_v8  ;;  %v1680_v8 = vunpack.c.h.bf16 %v1240_v6  ;;  %v1679_v11 = vunpack.c.l.bf16 %v1240_v6 }
  0x4d   :  { %4360 = vmatpush3.msra.mxu0 %v116_v10  ;;  %2232 = vmatprep.subr.mxu1 %v1614_v12  ;;  %v1250_v10 = vld [vmem:[%s7149_s4 + $0x1b0] sm:$0xff]  ;;  %v1238_v12 = vld [vmem:[%s7149_s4 + $0x168] sm:$0xff] }
  0x4e   :  { %4361 = vmatprep.subr.mxu0 %v7155_v3  ;;  %2233 = vmatpush1.msra.mxu1 %v1613_v13  ;;  %v1698_v13 = vunpack.c.h.bf16 %v1252_v4  ;;  %v1676_v17 = vunpack.c.l.bf16 %v1238_v12 }
  0x4f   :  { %4362 = vmatpush3.msra.mxu0 %v103_v14  ;;  %2234 = vmatprep.subr.mxu1 %v1611_v16  ;;  %v1677_v14 = vunpack.c.h.bf16 %v1238_v12  ;;  %v1248_v16 = vld [vmem:[%s7149_s4 + $0x1a4] sm:$0xff] }
  0x50   :  { %4364 = vmatmul.mubr.msk.f32.vlgmr.msra.gmra.mxu0 %vm277_vm1, %v4608_v58  ;;  %2327 = vmatprep.subr.mxu0 %v1728_v18  ;;  %v1718_v58 = vunpack.c.l.bf16 %v1266_v26  ;;  %v1236_v18 = vld [vmem:[%s7149_s4 + $0x15c] sm:$0xff] }
  0x51   :  { %2328 = vmatpush1.msra.mxu0 %v1727_v19  ;;  %2235 = vmatpush1.msra.mxu1 %v1610_v21  ;;  %v1695_v19 = vunpack.c.h.bf16 %v1250_v10  ;;  %v1674_v20 = vunpack.c.h.bf16 %v1236_v18  ;;  %v1694_v21 = vunpack.c.l.bf16 %v1250_v10 }
  0x52   :  { %2329 = vmatprep.subr.mxu0 %v1725_v23  ;;  %2236 = vmatprep.subr.mxu1 %v1608_v24  ;;  %v1673_v23 = vunpack.c.l.bf16 %v1236_v18  ;;  %v1234_v24 = vld [vmem:[%s7149_s4 + $0x150] sm:$0xff] }
  0x53   :  { %2330 = vmatpush1.msra.mxu0 %v1724_v25  ;;  %2237 = vmatpush1.msra.mxu1 %v1607_v27  ;;  %v1692_v25 = vunpack.c.h.bf16 %v1248_v16  ;;  %v1671_v26 = vunpack.c.h.bf16 %v1234_v24  ;;  %v1691_v27 = vunpack.c.l.bf16 %v1248_v16 }
  0x54   :  { %2331 = vmatprep.subr.mxu0 %v1722_v29  ;;  %2238 = vmatprep.subr.mxu1 %v1605_v30  ;;  %v1670_v29 = vunpack.c.l.bf16 %v1234_v24  ;;  %v1232_v30 = vld [vmem:[%s7149_s4 + $0x144] sm:$0xff] }
  0x55   :  { %2332 = vmatpush1.msra.mxu0 %v1721_v31  ;;  %2239 = vmatpush1.msra.mxu1 %v1604_v33  ;;  %v1689_v31 = vunpack.c.h.bf16 %v1246_v22  ;;  %v1668_v32 = vunpack.c.h.bf16 %v1232_v30  ;;  %v1688_v33 = vunpack.c.l.bf16 %v1246_v22 }
  0x56   :  { %2333 = vmatprep.subr.mxu0 %v1719_v35  ;;  %2240 = vmatprep.subr.mxu1 %v1602_v36  ;;  %v1667_v35 = vunpack.c.l.bf16 %v1232_v30  ;;  %v1230_v36 = vld [vmem:[%s7149_s4 + $0x138] sm:$0xff] }
  0x57   :  { %2334 = vmatpush1.msra.mxu0 %v1718_v58  ;;  %2241 = vmatpush1.msra.mxu1 %v1601_v38  ;;  %v1686_v58 = vunpack.c.h.bf16 %v1244_v28  ;;  %v1665_v37 = vunpack.c.h.bf16 %v1230_v36  ;;  %v1685_v38 = vunpack.c.l.bf16 %v1244_v28 }
  0x58   :  { %2335 = vmatprep.subr.mxu0 %v1716_v39  ;;  %2242 = vmatprep.subr.mxu1 %v1599_v40  ;;  %v1304_v39 = vld [vmem:[%s7149_s4 + $0x2f4] sm:$0xff]  ;;  %v1664_v40 = vunpack.c.l.bf16 %v1230_v36 }
  0x59   :  { %2336 = vmatpush1.msra.mxu0 %v1715_v42  ;;  %2243 = vmatpush1.msra.mxu1 %v1598_v44  ;;  %v1683_v42 = vunpack.c.h.bf16 %v1242_v34  ;;  %v1682_v44 = vunpack.c.l.bf16 %v1242_v34  ;;  %v1776_v48 = vunpack.c.h.bf16 %v1304_v39  ;;  %v1775_v50 = vunpack.c.l.bf16 %v1304_v39 }
  0x5a   :  { %2337 = vmatprep.subr.mxu0 %v1713_v45  ;;  %2244 = vmatprep.subr.mxu1 %v1596_v46  ;;  %v1302_v45 = vld [vmem:[%s7149_s4 + $0x2e8] sm:$0xff]  ;;  %v1661_v46 = vunpack.c.l.bf16 %v1228_v41 }
  0x5b   :  { %2338 = vmatpush1.msra.mxu0 %v1712_v47  ;;  %2245 = vmatpush1.msra.mxu1 %v1595_v49  ;;  %v1226_v47 = vld [vmem:[%s7149_s4 + $0x120] sm:$0xff]  ;;  %v1773_v54 = vunpack.c.h.bf16 %v1302_v45  ;;  %v1772_v56 = vunpack.c.l.bf16 %v1302_v45 }
  0x5c   :  { %2339 = vmatprep.subr.mxu0 %v1710_v51  ;;  %2246 = vmatprep.subr.mxu1 %v1593_v52  ;;  %v1659_v49 = vunpack.c.h.bf16 %v1226_v47  ;;  %v1300_v51 = vld [vmem:[%s7149_s4 + $0x2dc] sm:$0xff]  ;;  %v1658_v52 = vunpack.c.l.bf16 %v1226_v47  ;;  %v1280_v45 = vld [vmem:[%s7149_s4 + $0x264] sm:$0xff] }
  0x5d   :  { %2340 = vmatpush1.msra.mxu0 %v1709_v53  ;;  %2247 = vmatpush1.msra.mxu1 %v1592_v55  ;;  %v1224_v53 = vld [vmem:[%s7149_s4 + $0x114] sm:$0xff]  ;;  %v1770_v61 = vunpack.c.h.bf16 %v1300_v51  ;;  %v1769_v63 = vunpack.c.l.bf16 %v1300_v51  ;;  %v1276_v51 = vld [vmem:[%s7149_s4 + $0x24c] sm:$0xff] }
  0x5e   :  { %2341 = vmatprep.subr.mxu0 %v1707_v57  ;;  %2248 = vmatprep.subr.mxu1 %v1590_v59  ;;  %v1656_v55 = vunpack.c.h.bf16 %v1224_v53  ;;  %v1298_v57 = vld [vmem:[%s7149_s4 + $0x2d0] sm:$0xff]  ;;  %v1655_v59 = vunpack.c.l.bf16 %v1224_v53 }
  0x5f   :  { %2342 = vmatpush1.msra.mxu0 %v1706_v60  ;;  %2249 = vmatpush1.msra.mxu1 %v1589_v62  ;;  %v1222_v60 = vld [vmem:[%s7149_s4 + $0x108] sm:$0xff]  ;;  %v1767_v4 = vunpack.c.h.bf16 %v1298_v57  ;;  %v1766_v6 = vunpack.c.l.bf16 %v1298_v57  ;;  %v4966_v57 = vld [vmem:[%s7149_s4 + $0x534] sm:$0xff] }
  0x60   :  { %2343 = vmatprep.subr.mxu0 %v1704_v0  ;;  %2250 = vmatprep.subr.mxu1 %v1587_v1  ;;  %v1653_v62 = vunpack.c.h.bf16 %v1222_v60  ;;  %v1296_v0 = vld [vmem:[%s7149_s4 + $0x2c4] sm:$0xff]  ;;  %v1652_v1 = vunpack.c.l.bf16 %v1222_v60 }
  0x61   :  { %2344 = vmatpush1.msra.mxu0 %v1703_v2  ;;  %2251 = vmatpush1.msra.mxu1 %v1586_v5  ;;  %v1220_v2 = vld [vmem:[%s7149_s4 + $0xfc] sm:$0xff]  ;;  %v1764_v10 = vunpack.c.h.bf16 %v1296_v0  ;;  %v1763_v12 = vunpack.c.l.bf16 %v1296_v0 }
  0x62   :  { %2345 = vmatprep.subr.mxu0 %v1701_v7  ;;  %2252 = vmatprep.subr.mxu1 %v1680_v8  ;;  %v1650_v5 = vunpack.c.h.bf16 %v1220_v2  ;;  %v1294_v7 = vld [vmem:[%s7149_s4 + $0x2b8] sm:$0xff]  ;;  %v1649_v8 = vunpack.c.l.bf16 %v1220_v2  ;;  %v4980_v2 = vld [vmem:[%s7150_s2] sm:$0xff] }
  0x63   :  { %2346 = vmatpush1.msra.mxu0 %v1700_v9  ;;  %2253 = vmatpush2.msra.mxu1 %v1679_v11  ;;  %v1218_v9 = vld [vmem:[%s7149_s4 + $0xf0] sm:$0xff]  ;;  %v1761_v16 = vunpack.c.h.bf16 %v1294_v7  ;;  %v1760_v18 = vunpack.c.l.bf16 %v1294_v7 }
  0x64   :  { %2347 = vmatprep.subr.mxu0 %v1698_v13  ;;  %2254 = vmatprep.subr.mxu1 %v1677_v14  ;;  %v1647_v11 = vunpack.c.h.bf16 %v1218_v9  ;;  %v1292_v13 = vld [vmem:[%s7149_s4 + $0x2ac] sm:$0xff]  ;;  %v1646_v14 = vunpack.c.l.bf16 %v1218_v9 }
  0x65   :  { %2348 = vmatpush1.msra.mxu0 %v1697_v15  ;;  %2255 = vmatpush2.msra.mxu1 %v1676_v17  ;;  %v1216_v15 = vld [vmem:[%s7149_s4 + $0xe4] sm:$0xff]  ;;  %v1758_v22 = vunpack.c.h.bf16 %v1292_v13  ;;  %v1757_v24 = vunpack.c.l.bf16 %v1292_v13 }
  0x66   :  { %2349 = vmatprep.subr.mxu0 %v1695_v19  ;;  %2256 = vmatprep.subr.mxu1 %v1674_v20  ;;  %v1644_v17 = vunpack.c.h.bf16 %v1216_v15  ;;  %v1290_v19 = vld [vmem:[%s7149_s4 + $0x2a0] sm:$0xff]  ;;  %v1643_v20 = vunpack.c.l.bf16 %v1216_v15 }
  0x67   :  { %2350 = vmatpush1.msra.mxu0 %v1694_v21  ;;  %2257 = vmatpush2.msra.mxu1 %v1673_v23  ;;  %v1214_v21 = vld [vmem:[%s7149_s4 + $0xd8] sm:$0xff]  ;;  %v1755_v28 = vunpack.c.h.bf16 %v1290_v19  ;;  %v1754_v30 = vunpack.c.l.bf16 %v1290_v19 }
  0x68   :  { %2351 = vmatprep.subr.mxu0 %v1692_v25  ;;  %2258 = vmatprep.subr.mxu1 %v1671_v26  ;;  %v1641_v23 = vunpack.c.h.bf16 %v1214_v21  ;;  %v1288_v25 = vld [vmem:[%s7149_s4 + $0x294] sm:$0xff]  ;;  %v1640_v26 = vunpack.c.l.bf16 %v1214_v21 }
  0x69   :  { %2352 = vmatpush1.msra.mxu0 %v1691_v27  ;;  %2259 = vmatpush2.msra.mxu1 %v1670_v29  ;;  %v1212_v27 = vld [vmem:[%s7149_s4 + $0xcc] sm:$0xff]  ;;  %v1752_v34 = vunpack.c.h.bf16 %v1288_v25  ;;  %v1751_v36 = vunpack.c.l.bf16 %v1288_v25 }
  0x6a   :  { %2353 = vmatprep.subr.mxu0 %v1689_v31  ;;  %2260 = vmatprep.subr.mxu1 %v1668_v32  ;;  %v1638_v29 = vunpack.c.h.bf16 %v1212_v27  ;;  %v1286_v31 = vld [vmem:[%s7149_s4 + $0x288] sm:$0xff]  ;;  %v1637_v32 = vunpack.c.l.bf16 %v1212_v27 }
  0x6b   :  { %2354 = vmatpush1.msra.mxu0 %v1688_v33  ;;  %2261 = vmatpush2.msra.mxu1 %v1667_v35  ;;  %v1210_v33 = vld [vmem:[%s7149_s4 + $0xc0] sm:$0xff]  ;;  %v1749_v39 = vunpack.c.h.bf16 %v1286_v31  ;;  %v1748_v41 = vunpack.c.l.bf16 %v1286_v31 }
  0x6c   :  { %2355 = vmatprep.subr.mxu0 %v1686_v58  ;;  %2262 = vmatprep.subr.mxu1 %v1665_v37  ;;  %v1635_v35 = vunpack.c.h.bf16 %v1210_v33  ;;  %v1284_v58 = vld [vmem:[%s7149_s4 + $0x27c] sm:$0xff]  ;;  %v1634_v37 = vunpack.c.l.bf16 %v1210_v33 }
  0x6d   :  { %2356 = vmatpush1.msra.mxu0 %v1685_v38  ;;  %2263 = vmatpush2.msra.mxu1 %v1664_v40  ;;  %v4945_v38 = vld [vmem:[%s7149_s4 + $0x3b4] sm:$0xff]  ;;  %v895_v31 = vld [vmem:[%s7151_s3] sm:$0xff] }
  0x6e   :  { %2357 = vmatprep.subr.mxu0 %v1683_v42  ;;  %2264 = vmatprep.subr.mxu1 %v1662_v43  ;;  %v1824_v40 = vunpack.c.h.bf16 %v4945_v38  ;;  %v1282_v42 = vld [vmem:[%s7149_s4 + $0x270] sm:$0xff]  ;;  %v1746_v43 = vunpack.c.h.bf16 %v1284_v58 }
  0x6f   :  { %2358 = vmatpush1.msra.mxu0 %v1682_v44  ;;  %2265 = vmatpush2.msra.mxu1 %v1661_v46  ;;  %v1745_v44 = vunpack.c.l.bf16 %v1284_v58  ;;  %v1743_v46 = vunpack.c.h.bf16 %v1282_v42  ;;  %v1742_v47 = vunpack.c.l.bf16 %v1282_v42 }
  0x70   :  { %2359 = vmatprep.subr.mxu0 %v1776_v48  ;;  %2266 = vmatprep.subr.mxu1 %v1659_v49  ;;  %v1278_v48 = vld [vmem:[%s7149_s4 + $0x258] sm:$0xff]  ;;  %v1740_v49 = vunpack.c.h.bf16 %v1280_v45 }
  0x71   :  { %2360 = vmatpush2.msra.mxu0 %v1775_v50  ;;  %2267 = vmatpush2.msra.mxu1 %v1658_v52  ;;  %v1739_v50 = vunpack.c.l.bf16 %v1280_v45  ;;  %v1737_v52 = vunpack.c.h.bf16 %v1278_v48  ;;  %v1736_v53 = vunpack.c.l.bf16 %v1278_v48  ;;  %v1398_v48 = vld [vmem:[%s7149_s4 + $0x528] sm:$0xff] }
  0x72   :  { %2361 = vmatprep.subr.mxu0 %v1773_v54  ;;  %2268 = vmatprep.subr.mxu1 %v1656_v55  ;;  %v1274_v54 = vld [vmem:[%s7149_s4 + $0x240] sm:$0xff]  ;;  %v1734_v55 = vunpack.c.h.bf16 %v1276_v51 }
  0x73   :  { %2362 = vmatpush2.msra.mxu0 %v1772_v56  ;;  %2269 = vmatpush2.msra.mxu1 %v1655_v59  ;;  %v1733_v56 = vunpack.c.l.bf16 %v1276_v51  ;;  %v1731_v59 = vunpack.c.h.bf16 %v1274_v54  ;;  %v1730_v60 = vunpack.c.l.bf16 %v1274_v54  ;;  %v1919_v54 = vunpack.c.l.bf16 %v4966_v57 }
  0x74   :  { %2363 = vmatprep.subr.mxu0 %v1770_v61  ;;  %2270 = vmatprep.subr.mxu1 %v1653_v62  ;;  %v1920_v61 = vunpack.c.h.bf16 %v4966_v57  ;;  %v212_v62 = vlaneseq }
  0x75   :  { %2364 = vmatpush2.msra.mxu0 %v1769_v63  ;;  %2271 = vmatpush2.msra.mxu1 %v1652_v1 }
  0x76   :  { %2365 = vmatprep.subr.mxu0 %v1767_v4  ;;  %2272 = vmatprep.subr.mxu1 %v1650_v5  ;;  %v4969_v63 = vshrl.u32 %v212_v62, 7 }
  0x77   :  { %2366 = vmatpush2.msra.mxu0 %v1766_v6  ;;  %2273 = vmatpush2.msra.mxu1 %v1649_v8 }
  0x78   :  { %2367 = vmatprep.subr.mxu0 %v1764_v10  ;;  %2274 = vmatprep.subr.mxu1 %v1647_v11  ;;  %7234 = vst [vmem:[#allocation2_spill] sm:$0xff] %v4969_v63  ;;  %v4972_v0 = vsub.s32 0, %v4969_v63  ;;  %v4975_v1 = vsub.s32 2, %v4969_v63  ;;  %v4983_v4 = vsub.s32 1, %v4969_v63  ;;  %v7158_v5 = vsub.s32 3, %v4969_v63 }
  0x79   :  { %2368 = vmatpush2.msra.mxu0 %v1763_v12  ;;  %2275 = vmatpush2.msra.mxu1 %v1646_v14 }
  0x7a   :  { %2369 = vmatprep.subr.mxu0 %v1761_v16  ;;  %2276 = vmatprep.subr.mxu1 %v1644_v17  ;;  %7235 = vst [vmem:[#allocation3_spill] sm:$0xff] %v4972_v0  ;;  %7236 = vst [vmem:[#allocation4_spill] sm:$0xff] %v4975_v1  ;;  %v215_v6 = vrot.slane %v4980_v2, %v4972_v0  ;;  %v223_v7 = vrot.slane %v4980_v2, %v4975_v1 }
  0x7b   :  { %2370 = vmatpush2.msra.mxu0 %v1760_v18  ;;  %2277 = vmatpush2.msra.mxu1 %v1643_v20  ;;  %7237 = vst [vmem:[#allocation5_spill] sm:$0xff] %v4983_v4  ;;  %v219_v8 = vrot.slane %v4980_v2, %v4983_v4  ;;  %v227_v9 = vrot.slane %v4980_v2, %v7158_v5 }
  0x7c   :  { %2371 = vmatprep.subr.mxu0 %v1758_v22  ;;  %2278 = vmatprep.subr.mxu1 %v1641_v23 }
  0x7d   :  { %2372 = vmatpush2.msra.mxu0 %v1757_v24  ;;  %2279 = vmatpush2.msra.mxu1 %v1640_v26 }
  0x7e   :  { %2373 = vmatprep.subr.mxu0 %v1755_v28  ;;  %2280 = vmatprep.subr.mxu1 %v1638_v29 }
  0x7f   :  { %2374 = vmatpush2.msra.mxu0 %v1754_v30  ;;  %2281 = vmatpush2.msra.mxu1 %v1637_v32  ;;  %v896_v30 = vld [vmem:[%s7151_s3 + $0x8] sm:$0xff] }
  0x80   :  { %2375 = vmatprep.subr.mxu0 %v1752_v34  ;;  %2282 = vmatprep.subr.mxu1 %v1635_v35  ;;  %v945_v34 = vunpack.c.h.bf16 %v895_v31  ;;  %v946_v35 = vunpack.c.l.bf16 %v896_v30 }
  0x81   :  { %2376 = vmatpush2.msra.mxu0 %v1751_v36  ;;  %2283 = vmatpush2.msra.mxu1 %v1634_v37 }
  0x82   :  { %2377 = vmatprep.subr.mxu0 %v1749_v39  ;;  %2434 = vmatprep.subr.mxu1 %v1824_v40  ;;  %v944_v39 = vunpack.c.l.bf16 %v895_v31  ;;  %v947_v40 = vunpack.c.h.bf16 %v896_v30 }
  0x83   :  { %2378 = vmatpush2.msra.mxu0 %v1748_v41  ;;  %v903_v41 = vld [vmem:[%s7151_s3 + $0x3c] sm:$0xff] }
  0x84   :  { %2379 = vmatprep.subr.mxu0 %v1746_v43 }
  0x85   :  { %2380 = vmatpush2.msra.mxu0 %v1745_v44  ;;  %v902_v44 = vld [vmem:[%s7151_s3 + $0x34] sm:$0xff] }
  0x86   :  { %2381 = vmatprep.subr.mxu0 %v1743_v46  ;;  %v958_v46 = vunpack.c.h.bf16 %v902_v44 }
  0x87   :  { %2382 = vmatpush2.msra.mxu0 %v1742_v47  ;;  %v1334_v47 = vld [vmem:[%s7149_s4 + $0x3a8] sm:$0xff] }
  0x88   :  { %2383 = vmatprep.subr.mxu0 %v1740_v49  ;;  %v1820_v62 = vunpack.c.l.bf16 %v1334_v47 }
  0x89   :  { %2384 = vmatpush2.msra.mxu0 %v1739_v50  ;;  %v1823_v50 = vunpack.c.l.bf16 %v4945_v38  ;;  %v1917_v38 = vunpack.c.h.bf16 %v1398_v48 }
  0x8a   :  { %2385 = vmatprep.subr.mxu0 %v1737_v52  ;;  %v960_v52 = vunpack.c.h.bf16 %v903_v41 }
  0x8b   :  { %2386 = vmatpush2.msra.mxu0 %v1736_v53 }
  0x8c   :  { %2387 = vmatprep.subr.mxu0 %v1734_v55 }
  0x8d   :  { %2388 = vmatpush2.msra.mxu0 %v1733_v56  ;;  %v1332_v56 = vld [vmem:[%s7149_s4 + $0x39c] sm:$0xff] }
  0x8e   :  { %2389 = vmatprep.subr.mxu0 %v1731_v59  ;;  %v1821_v59 = vunpack.c.h.bf16 %v1334_v47 }
  0x8f   :  { %2390 = vmatpush2.msra.mxu0 %v1730_v60  ;;  %v1396_v60 = vld [vmem:[%s7149_s4 + $0x51c] sm:$0xff] }
  0x90   :  { %2541 = vmatprep.subr.mxu0 %v1920_v61  ;;  %v959_v61 = vunpack.c.l.bf16 %v903_v41 }
  0xd6   :  { %v387_v10 = vpop.f32.mrf.mxu0  ;;  %v458_v11 = vpop.f32.mrf.mxu1 }
  0xd7   :  { %v388_v12 = vadd.f32 %v387_v10, %v215_v6  ;;  %v459_v13 = vadd.f32 %v458_v11, %v223_v7  ;;  %v1916_v6 = vunpack.c.l.bf16 %v1398_v48  ;;  %v957_v7 = vunpack.c.l.bf16 %v902_v44  ;;  %v909_v11 = vld [vmem:[%s7151_s3 + $0x68] sm:$0xff] }
  0xd8   :  { %v389_v14 = vpop.f32.mrf.mxu0  ;;  %v460_v15 = vpop.f32.mrf.mxu1  ;;  %v1818_v10 = vunpack.c.h.bf16 %v1332_v56  ;;  %v970_v31 = vunpack.c.l.bf16 %v909_v11 }
  0xd9   :  { %v3971_v16 = vmul.f32 -1.442695, %v388_v12  ;;  %v3973_v17 = vmul.f32 -1.442695, %v459_v13  ;;  %v390_v18 = vadd.f32 %v389_v14, %v219_v8  ;;  %v461_v19 = vadd.f32 %v460_v15, %v227_v9  ;;  %v910_v8 = vld [vmem:[%s7151_s3 + $0x70] sm:$0xff] }
  0xda   :  { %v1914_v12 = vunpack.c.h.bf16 %v1396_v60  ;;  %v971_v13 = vunpack.c.h.bf16 %v909_v11  ;;  %v1330_v14 = vld [vmem:[%s7149_s4 + $0x390] sm:$0xff] }
  0xdb   :  { %4438 = vpow2.f32 %v3971_v16  ;;  %v3972_v20 = vmul.f32 -1.442695, %v390_v18  ;;  %v3974_v21 = vmul.f32 -1.442695, %v461_v19  ;;  %v1394_v15 = vld [vmem:[%s7149_s4 + $0x510] sm:$0xff]  ;;  %v1817_v16 = vunpack.c.l.bf16 %v1332_v56 }
  0xdc   :  { %4440 = vpow2.f32 %v3973_v17  ;;  %v973_v18 = vunpack.c.h.bf16 %v910_v8  ;;  %v1913_v19 = vunpack.c.l.bf16 %v1396_v60  ;;  %v1910_v30 = vunpack.c.l.bf16 %v1394_v15  ;;  %v923_v11 = vld [vmem:[%s7151_s3 + $0xd0] sm:$0xff] }
  0xdd   :  { %4442 = vpow2.f32 %v3972_v20 }
  0xde   :  { %4444 = vpow2.f32 %v3974_v21  ;;  %v1328_v21 = vld [vmem:[%s7149_s4 + $0x384] sm:$0xff] }
  0xe8   :  { %v4439_v22 = vpop.eup %4438 }
  0xe9   :  { %v4441_v23 = vpop.eup %4440  ;;  %v856_v24 = vadd.f32 1.0, %v4439_v22  ;;  %v5080_v22 = vld [vmem:[%s7151_s3 + $0xa4] sm:$0xff] }
  0xea   :  { %v4443_v25 = vpop.eup %4442  ;;  %v858_v26 = vadd.f32 1.0, %v4441_v23  ;;  %v5082_v23 = vpop.f32.mrf.mxu0 }
  0xeb   :  { %v4445_v27 = vpop.eup %4444  ;;  %4446 = vrcp.f32 %v856_v24  ;;  %v857_v28 = vadd.f32 1.0, %v4443_v25  ;;  %v1815_v24 = vunpack.c.h.bf16 %v1330_v14  ;;  %v1911_v25 = vunpack.c.h.bf16 %v1394_v15  ;;  %v1386_v15 = vld [vmem:[%s7149_s4 + $0x4e0] sm:$0xff] }
  0xec   :  { %4448 = vrcp.f32 %v858_v26  ;;  %v859_v29 = vadd.f32 1.0, %v4445_v27  ;;  %v1392_v26 = vld [vmem:[%s7149_s4 + $0x504] sm:$0xff]  ;;  %v972_v27 = vunpack.c.l.bf16 %v910_v8  ;;  %v5104_v41 = vpop.f32.mrf.mxu0 }
  0xed   :  { %4450 = vrcp.f32 %v857_v28  ;;  %v1907_v47 = vunpack.c.l.bf16 %v1392_v26 }
  0xee   :  { %4452 = vrcp.f32 %v859_v29  ;;  %v1814_v29 = vunpack.c.l.bf16 %v1330_v14  ;;  %v1322_v14 = vld [vmem:[%s7149_s4 + $0x360] sm:$0xff] }
  0xf8   :  { %v4447_v32 = vpop.eup %4446 }
  0xf9   :  { %v4449_v33 = vpop.eup %4448  ;;  %v5002_v58 = vrot.slane %v4447_v32, %v4972_v0 }
  0xfa   :  { %v4451_v36 = vpop.eup %4450  ;;  %v5005_v37 = vrot.slane %v4449_v33, %v4972_v0  ;;  %v1812_v33 = vunpack.c.h.bf16 %v1328_v21 }
  0xfb   :  { %v4453_v42 = vpop.eup %4452  ;;  %v5011_v43 = vrot.slane %v4451_v36, %v4972_v0  ;;  %v5037_v55 = vmul.f32 %v5002_v58, %v944_v39  ;;  %v5072_v20 = vmul.f32 %v5002_v58, %v957_v7  ;;  %v1908_v36 = vunpack.c.h.bf16 %v1392_v26 }
  0xfc   :  { %v5017_v45 = vrot.slane %v4453_v42, %v4972_v0  ;;  %v5030_v51 = vmul.f32 %v5005_v37, %v946_v35  ;;  %v5069_v17 = vmul.f32 %v5005_v37, %v959_v61  ;;  %v986_v35 = vunpack.c.h.bf16 %v5080_v22 }
  0xfd   :  { %v5026_v49 = vmul.f32 %v5011_v43, %v945_v34  ;;  %v5049_v57 = vmul.f32 %v5011_v43, %v958_v46  ;;  %v5090_v28 = vmul.f32 %v5011_v43, %v971_v13  ;;  %v916_v34 = vld [vmem:[%s7151_s3 + $0x9c] sm:$0xff]  ;;  %v1811_v42 = vunpack.c.l.bf16 %v1328_v21 }
  0xfe   :  { %v5033_v53 = vmul.f32 %v5017_v45, %v947_v40  ;;  %v5056_v9 = vmul.f32 %v5017_v45, %v960_v52  ;;  %v5094_v32 = vmul.f32 %v5017_v45, %v973_v18  ;;  %v984_v39 = vunpack.c.h.bf16 %v916_v34  ;;  %v1326_v40 = vld [vmem:[%s7149_s4 + $0x378] sm:$0xff]  ;;  %v5118_v52 = vpop.f32.mrf.mxu0 }
  0xff   :  { %2284 = vmatprep.mubr.f32.mxu1 %v5026_v49  ;;  %v5107_v44 = vmul.f32 %v5005_v37, %v972_v27  ;;  %v1390_v46 = vld [vmem:[%s7149_s4 + $0x4f8] sm:$0xff]  ;;  %v5113_v48 = vmul.f32 %v5002_v58, %v970_v31  ;;  %v1809_v56 = vunpack.c.h.bf16 %v1326_v40  ;;  %v1808_v60 = vunpack.c.l.bf16 %v1326_v40 }
 0x100   :  { %2391 = vmatprep.mubr.f32.mxu0 %v5033_v53  ;;  %2285 = vmatmul.mubr.f32.vlgmr.msra.gmra.mxu1 %v5037_v55  ;;  %v1905_v61 = vunpack.c.h.bf16 %v1390_v46  ;;  %v1904_v7 = vunpack.c.l.bf16 %v1390_v46  ;;  %v997_v13 = vunpack.c.h.bf16 %v923_v11  ;;  %v234_v21 = vsub.s32 5, %v4969_v63 }
 0x101   :  { %2392 = vmatmul.mubr.f32.vlgmr.msra.gmra.mxu0 %v5030_v51  ;;  %2435 = vmatpush1.msra.mxu1 %v1823_v50  ;;  %v1324_v50 = vld [vmem:[%s7149_s4 + $0x36c] sm:$0xff]  ;;  %v996_v26 = vunpack.c.l.bf16 %v923_v11  ;;  %v1803_v31 = vunpack.c.h.bf16 %v1322_v14  ;;  %v1898_v40 = vunpack.c.l.bf16 %v1386_v15  ;;  %v238_v46 = vsub.s32 6, %v4969_v63 }
 0x102   :  { %2542 = vmatpush1.msra.mxu0 %v1919_v54  ;;  %2290 = vmatprep.mubr.f32.mxu1 %v5049_v57  ;;  %v5122_v54 = vmul.f32 %v5017_v45, %v986_v35  ;;  %v1806_v8 = vunpack.c.h.bf16 %v1324_v50  ;;  %v1805_v18 = vunpack.c.l.bf16 %v1324_v50  ;;  %v242_v35 = vsub.s32 7, %v4969_v63 }
 0x103   :  { %2436 = vmatprep.subr.mxu1 %v1821_v59  ;;  %2543 = vmatprep.subr.mxu0 %v1917_v38  ;;  %v1388_v59 = vld [vmem:[%s7149_s4 + $0x4ec] sm:$0xff]  ;;  %v5129_v38 = vmul.f32 %v5011_v43, %v984_v39  ;;  %v1802_v39 = vunpack.c.l.bf16 %v1322_v14 }
 0x104   :  { %2437 = vmatpush1.msra.mxu1 %v1820_v62  ;;  %2544 = vmatpush1.msra.mxu0 %v1916_v6  ;;  %v983_v62 = vunpack.c.l.bf16 %v916_v34  ;;  %v5134_v6 = vld [vmem:[%s7151_s3 + $0xd8] sm:$0xff] }
 0x105   :  { %2397 = vmatprep.mubr.f32.mxu0 %v5056_v9  ;;  %2438 = vmatprep.subr.mxu1 %v1818_v10  ;;  %v985_v10 = vunpack.c.l.bf16 %v5080_v22  ;;  %v1901_v22 = vunpack.c.l.bf16 %v1388_v59  ;;  %v998_v27 = vunpack.c.l.bf16 %v5134_v6  ;;  %v1384_v34 = vld [vmem:[%s7149_s4 + $0x4d4] sm:$0xff] }
 0x106   :  { %2545 = vmatprep.subr.mxu0 %v1914_v12  ;;  %2291 = vmatmul.mubr.f32.gmra.mxu1 %v5072_v20  ;;  %v1902_v12 = vunpack.c.h.bf16 %v1388_v59  ;;  %v1895_v14 = vunpack.c.l.bf16 %v1384_v34 }
 0x107   :  { %2398 = vmatmul.mubr.f32.gmra.mxu0 %v5069_v17  ;;  %2439 = vmatpush1.msra.mxu1 %v1817_v16  ;;  %v5148_v16 = vpop.f32.mrf.mxu0 }
 0x108   :  { %2546 = vmatpush1.msra.mxu0 %v1913_v19  ;;  %2296 = vmatprep.mubr.f32.mxu1 %v5090_v28  ;;  %v999_v19 = vunpack.c.h.bf16 %v5134_v6  ;;  %v1896_v6 = vunpack.c.h.bf16 %v1384_v34 }
 0x109   :  { %2440 = vmatprep.subr.mxu1 %v1815_v24  ;;  %2547 = vmatprep.subr.mxu0 %v1911_v25  ;;  %v5154_v24 = vmul.f32 %v5002_v58, %v983_v62  ;;  %v1320_v25 = vld [vmem:[%s7149_s4 + $0x354] sm:$0xff]  ;;  %v235_v62 = vrot.slane %v4980_v2, %v234_v21  ;;  %v239_v21 = vrot.slane %v4980_v2, %v238_v46  ;;  %v5223_v46 = vld [vmem:[%s7151_s3 + $0x140] sm:$0x11] }
 0x10a   :  { %2441 = vmatpush1.msra.mxu1 %v1814_v29  ;;  %2548 = vmatpush1.msra.mxu0 %v1910_v30  ;;  %v5163_v30 = vmul.f32 %v5005_v37, %v985_v10  ;;  %v1800_v59 = vunpack.c.h.bf16 %v1320_v25  ;;  %v1799_v10 = vunpack.c.l.bf16 %v1320_v25  ;;  %v5206_v25 = vmul.f32 %v5005_v37, %v998_v27 }
 0x10b   :  { %2403 = vmatprep.mubr.f32.mxu0 %v5094_v32  ;;  %2442 = vmatprep.subr.mxu1 %v1812_v33  ;;  %v1899_v33 = vunpack.c.h.bf16 %v1386_v15  ;;  %v5199_v15 = vmul.f32 %v5002_v58, %v996_v26  ;;  %v532_v34 = vadd.f32 %v5104_v41, %v235_v62  ;;  %v1024_v3 = vunpack.c.l.bf16 %v5223_v46 }
 0x10c   :  { %2549 = vmatprep.subr.mxu0 %v1908_v36  ;;  %2297 = vmatmul.mubr.f32.gmra.mxu1 %v5113_v48  ;;  %7238 = vst [vmem:[#allocation6_spill] sm:$0xff] %v5163_v30  ;;  %v5171_v36 = vmul.f32 %v5011_v43, %v997_v13  ;;  %v243_v13 = vrot.slane %v4980_v2, %v242_v35  ;;  %7240 = vst [vmem:[#allocation8_spill] sm:$0xff] %v5206_v25 }
 0x10d   :  { %2404 = vmatmul.mubr.f32.gmra.mxu0 %v5107_v44  ;;  %2443 = vmatpush1.msra.mxu1 %v1811_v42  ;;  %v5176_v42 = vld [vmem:[%s7151_s3 + $0x10c] sm:$0xff] }
 0x10e   :  { %2550 = vmatpush1.msra.mxu0 %v1907_v47  ;;  %2302 = vmatprep.mubr.f32.mxu1 %v5129_v38  ;;  %v600_v47 = vpop.f32.mrf.mxu1  ;;  %v1012_v11 = vunpack.c.h.bf16 %v5176_v42 }
 0x10f   :  { %2409 = vmatprep.mubr.f32.mxu0 %v5122_v54  ;;  %2444 = vmatprep.subr.mxu1 %v1809_v56  ;;  %v5181_v56 = vmul.f32 %v5017_v45, %v999_v19  ;;  %v601_v62 = vadd.f32 %v600_v47, %v239_v21  ;;  %v1312_v21 = vld [vmem:[%s7149_s4 + $0x324] sm:$0xff] }
 0x110   :  { %2551 = vmatprep.subr.mxu0 %v1905_v61  ;;  %2445 = vmatpush1.msra.mxu1 %v1808_v60  ;;  %v5160_v29 = vpop.f32.mrf.mxu0  ;;  %v930_v60 = vld [vmem:[%s7151_s3 + $0x104] sm:$0xff]  ;;  %v7157_v61 = vsub.s32 4, %v4969_v63 }
 0x111   :  { %2552 = vmatpush1.msra.mxu0 %v1904_v7  ;;  %2446 = vmatprep.subr.mxu1 %v1806_v8  ;;  %7239 = vst [vmem:[#allocation7_spill] sm:$0xff] %v5181_v56  ;;  %v1010_v7 = vunpack.c.h.bf16 %v930_v60  ;;  %v1318_v8 = vld [vmem:[%s7149_s4 + $0x348] sm:$0xff]  ;;  %v1009_v19 = vunpack.c.l.bf16 %v930_v60 }
 0x112   :  { %2553 = vmatprep.subr.mxu0 %v1902_v12  ;;  %2303 = vmatmul.mubr.f32.gmra.mxu1 %v5154_v24  ;;  %v4365_v50 = vpop.f32.mrf.mxu0  ;;  %v1382_v12 = vld [vmem:[%s7149_s4 + $0x4c8] sm:$0xff]  ;;  %v231_v26 = vrot.slane %v4980_v2, %v7157_v61  ;;  %v5227_v2 = vmul.f32 %v5017_v45, %v1012_v11 }
 0x113   :  { %2410 = vmatmul.mubr.f32.gmra.mxu0 %v5163_v30  ;;  %2447 = vmatpush1.msra.mxu1 %v1805_v18  ;;  %v1316_v18 = vld [vmem:[%s7149_s4 + $0x33c] sm:$0xff]  ;;  %v5217_v35 = vmul.f32 %v5011_v43, %v1010_v7  ;;  %v1893_v27 = vunpack.c.h.bf16 %v1382_v12  ;;  %v1892_v41 = vunpack.c.l.bf16 %v1382_v12  ;;  %v1314_v7 = vld [vmem:[%s7149_s4 + $0x330] sm:$0xff]  ;;  %v1025_v12 = vunpack.c.h.bf16 %v5223_v46  ;;  %v904_v61 = vld [vmem:[%s7151_s3 + $0x44] sm:$0xff] }
 0x114   :  { %2554 = vmatpush1.msra.mxu0 %v1901_v22  ;;  %2308 = vmatprep.mubr.f32.mxu1 %v5171_v36  ;;  %v602_v22 = vpop.f32.mrf.mxu1  ;;  %7241 = vst [vmem:[#allocation9_spill] sm:$0xff] %v5227_v2  ;;  %v1794_v50 = vunpack.c.h.bf16 %v1316_v18  ;;  %v530_v11 = vadd.f32 %v5082_v23, %v231_v26 }
 0x115   :  { %2415 = vmatprep.mubr.f32.mxu0 %v5181_v56  ;;  %2448 = vmatprep.subr.mxu1 %v1803_v31  ;;  %v1797_v31 = vunpack.c.h.bf16 %v1318_v8  ;;  %v603_v60 = vadd.f32 %v602_v22, %v243_v13  ;;  %v3976_v13 = vmul.f32 -1.442695, %v532_v34 }
 0x116   :  { %2555 = vmatprep.subr.mxu0 %v1899_v33  ;;  %2449 = vmatpush1.msra.mxu1 %v1802_v39  ;;  %v1380_v33 = vld [vmem:[%s7149_s4 + $0x4bc] sm:$0xff]  ;;  %v1796_v39 = vunpack.c.l.bf16 %v1318_v8  ;;  %v1378_v8 = vld [vmem:[%s7149_s4 + $0x4b0] sm:$0xff]  ;;  %v3975_v46 = vmul.f32 -1.442695, %v530_v11 }
 0x117   :  { %2556 = vmatpush1.msra.mxu0 %v1898_v40  ;;  %2450 = vmatprep.subr.mxu1 %v1800_v59  ;;  %v1011_v40 = vunpack.c.l.bf16 %v5176_v42  ;;  %v937_v59 = vld [vmem:[%s7151_s3 + $0x138] sm:$0x11]  ;;  %v1890_v42 = vunpack.c.h.bf16 %v1380_v33  ;;  %v1889_v47 = vunpack.c.l.bf16 %v1380_v33  ;;  %v3978_v26 = vmul.f32 -1.442695, %v603_v60  ;;  %v1308_v60 = vld [vmem:[%s7149_s4 + $0x30c] sm:$0xff] }
 0x118   :  { %2557 = vmatprep.subr.mxu0 %v1896_v6  ;;  %2309 = vmatmul.mubr.f32.gmra.mxu1 %v5199_v15  ;;  %v1023_v6 = vunpack.c.h.bf16 %v937_v59  ;;  %v1022_v22 = vunpack.c.l.bf16 %v937_v59  ;;  %v3977_v33 = vmul.f32 -1.442695, %v601_v62  ;;  %4454 = vpow2.f32 %v3976_v13  ;;  %v1374_v59 = vld [vmem:[%s7149_s4 + $0x498] sm:$0xff] }
 0x119   :  { %2416 = vmatmul.mubr.f32.gmra.mxu0 %v5206_v25  ;;  %2451 = vmatpush1.msra.mxu1 %v1799_v10  ;;  %v1793_v10 = vunpack.c.l.bf16 %v1316_v18  ;;  %v5250_v23 = vmul.f32 %v5005_v37, %v1011_v40  ;;  %v1791_v18 = vunpack.c.h.bf16 %v1314_v7  ;;  %v5261_v40 = vmul.f32 %v5017_v45, %v1025_v12  ;;  %v1306_v12 = vld [vmem:[%s7149_s4 + $0x300] sm:$0xff] }
 0x11a   :  { %2558 = vmatpush1.msra.mxu0 %v1895_v14  ;;  %2314 = vmatprep.mubr.f32.mxu1 %v5217_v35  ;;  %v5243_v14 = vmul.f32 %v5002_v58, %v1009_v19  ;;  %v1376_v19 = vld [vmem:[%s7149_s4 + $0x4a4] sm:$0xff]  ;;  %v5257_v34 = vmul.f32 %v5011_v43, %v1023_v6  ;;  %4456 = vpow2.f32 %v3978_v26  ;;  %v1787_v45 = vunpack.c.l.bf16 %v1312_v21 }
 0x11b   :  { %2421 = vmatprep.mubr.f32.mxu0 %v5227_v2  ;;  %2452 = vmatprep.subr.mxu1 %v1797_v31  ;;  %7242 = vst [vmem:[#allocation10_spill] sm:$0xff] %v5250_v23  ;;  %v1887_v31 = vunpack.c.h.bf16 %v1378_v8  ;;  %7243 = vst [vmem:[#allocation11_spill] sm:$0xff] %v5261_v40  ;;  %v1884_v43 = vunpack.c.h.bf16 %v1376_v19  ;;  %4458 = vpow2.f32 %v3977_v33  ;;  %v5275_v62 = vmul.f32 %v5002_v58, %v1022_v22  ;;  %v1366_v33 = vld [vmem:[%s7149_s4 + $0x468] sm:$0xff] }
 0x11c   :  { %2559 = vmatprep.subr.mxu0 %v1893_v27  ;;  %2453 = vmatpush1.msra.mxu1 %v1796_v39  ;;  %v1790_v39 = vunpack.c.l.bf16 %v1314_v7  ;;  %v1886_v27 = vunpack.c.l.bf16 %v1378_v8  ;;  %v1372_v7 = vld [vmem:[%s7149_s4 + $0x48c] sm:$0xff]  ;;  %4460 = vpow2.f32 %v3975_v46  ;;  %v5281_v8 = vmul.f32 %v5005_v37, %v1024_v3 }
 0x11d   :  { %2560 = vmatpush1.msra.mxu0 %v1892_v41  ;;  %2454 = vmatprep.subr.mxu1 %v1794_v50  ;;  %v1788_v41 = vunpack.c.h.bf16 %v1312_v21  ;;  %v1310_v50 = vld [vmem:[%s7149_s4 + $0x318] sm:$0xff]  ;;  %v1881_v11 = vunpack.c.h.bf16 %v1374_v59  ;;  %v1880_v58 = vunpack.c.l.bf16 %v1374_v59  ;;  %v1782_v13 = vunpack.c.h.bf16 %v1308_v60  ;;  %v1430_v46 = vld [vmem:[%s7149_s4 + $0x5e8] sm:$0xff] }
 0x11e   :  { %2561 = vmatprep.subr.mxu0 %v1890_v42  ;;  %2315 = vmatmul.mubr.f32.gmra.mxu1 %v5243_v14  ;;  %v1883_v42 = vunpack.c.l.bf16 %v1376_v19  ;;  %v1785_v6 = vunpack.c.h.bf16 %v1310_v50  ;;  %7244 = vst [vmem:[#allocation12_spill] sm:$0xff] %v5281_v8  ;;  %v1781_v3 = vunpack.c.l.bf16 %v1308_v60  ;;  %v1878_v37 = vunpack.c.h.bf16 %v1372_v7  ;;  %v1368_v21 = vld [vmem:[%s7149_s4 + $0x474] sm:$0xff]  ;;  %v1428_v60 = vld [vmem:[%s7149_s4 + $0x5dc] sm:$0xff] }
 0x11f   :  { %2422 = vmatmul.mubr.f32.gmra.mxu0 %v5250_v23  ;;  %2455 = vmatpush1.msra.mxu1 %v1793_v10  ;;  %v1784_v10 = vunpack.c.l.bf16 %v1310_v50  ;;  %v1877_v22 = vunpack.c.l.bf16 %v1372_v7  ;;  %v1778_v26 = vunpack.c.l.bf16 %v1306_v12  ;;  %v1362_v7 = vld [vmem:[%s7149_s4 + $0x450] sm:$0xff] }
 0x120   :  { %2562 = vmatpush1.msra.mxu0 %v1889_v47  ;;  %2320 = vmatprep.mubr.f32.mxu1 %v5257_v34  ;;  %v1370_v47 = vld [vmem:[%s7149_s4 + $0x480] sm:$0xff] }
 0x121   :  { %2427 = vmatprep.mubr.f32.mxu0 %v5261_v40  ;;  %2456 = vmatprep.subr.mxu1 %v1791_v18  ;;  %v1779_v18 = vunpack.c.h.bf16 %v1306_v12  ;;  %v1875_v19 = vunpack.c.h.bf16 %v1370_v47 }
 0x122   :  { %2563 = vmatprep.subr.mxu0 %v1887_v31  ;;  %2457 = vmatpush1.msra.mxu1 %v1790_v39  ;;  %v1432_v31 = vld [vmem:[%s7149_s4 + $0x5f4] sm:$0xff]  ;;  %v1874_v39 = vunpack.c.l.bf16 %v1370_v47  ;;  %v1962_v47 = vunpack.c.h.bf16 %v1428_v60 }
 0x123   :  { %2564 = vmatpush1.msra.mxu0 %v1886_v27  ;;  %2458 = vmatprep.subr.mxu1 %v1788_v41  ;;  %v1872_v27 = vunpack.c.h.bf16 %v1368_v21  ;;  %v1871_v41 = vunpack.c.l.bf16 %v1368_v21  ;;  %v1968_v50 = vunpack.c.h.bf16 %v1432_v31  ;;  %v1967_v59 = vunpack.c.l.bf16 %v1432_v31 }
 0x124   :  { %2565 = vmatprep.subr.mxu0 %v1884_v43  ;;  %2321 = vmatmul.mubr.f32.gmra.mxu1 %v5275_v62  ;;  %v1364_v43 = vld [vmem:[%s7149_s4 + $0x45c] sm:$0xff]  ;;  %v1961_v21 = vunpack.c.l.bf16 %v1428_v60  ;;  %v1356_v60 = vld [vmem:[%s7149_s4 + $0x42c] sm:$0xff] }
 0x125   :  { %2428 = vmatmul.mubr.f32.gmra.mxu0 %v5281_v8  ;;  %2459 = vmatpush1.msra.mxu1 %v1787_v45  ;;  %v1869_v45 = vunpack.c.h.bf16 %v1366_v33  ;;  %v1866_v12 = vunpack.c.h.bf16 %v1364_v43 }
 0x126   :  { %2566 = vmatpush1.msra.mxu0 %v1883_v42  ;;  %2460 = vmatprep.subr.mxu1 %v1785_v6  ;;  %v1868_v42 = vunpack.c.l.bf16 %v1366_v33  ;;  %v1965_v6 = vunpack.c.h.bf16 %v1430_v46 }
 0x127   :  { %2567 = vmatprep.subr.mxu0 %v1881_v11  ;;  %2461 = vmatpush1.msra.mxu1 %v1784_v10  ;;  %v4455_v10 = vpop.eup %4454  ;;  %v1964_v11 = vunpack.c.l.bf16 %v1430_v46 }
 0x128   :  { %2568 = vmatpush1.msra.mxu0 %v1880_v58  ;;  %2462 = vmatprep.subr.mxu1 %v1782_v13  ;;  %v1426_v58 = vld [vmem:[%s7149_s4 + $0x5d0] sm:$0xff]  ;;  %v1865_v13 = vunpack.c.l.bf16 %v1364_v43 }
 0x129   :  { %2569 = vmatprep.subr.mxu0 %v1878_v37  ;;  %2463 = vmatpush1.msra.mxu1 %v1781_v3  ;;  %v1360_v3 = vld [vmem:[%s7149_s4 + $0x444] sm:$0xff]  ;;  %v4457_v37 = vpop.eup %4456  ;;  %v1959_v33 = vunpack.c.h.bf16 %v1426_v58  ;;  %v1958_v46 = vunpack.c.l.bf16 %v1426_v58 }
 0x12a   :  { %2570 = vmatpush1.msra.mxu0 %v1877_v22  ;;  %2464 = vmatprep.subr.mxu1 %v1779_v18  ;;  %v1863_v22 = vunpack.c.h.bf16 %v1362_v7  ;;  %v1424_v18 = vld [vmem:[%s7149_s4 + $0x5c4] sm:$0xff]  ;;  %v4459_v31 = vpop.eup %4458  ;;  %v863_v43 = vadd.f32 1.0, %v4457_v37 }
 0x12b   :  { %2571 = vmatprep.subr.mxu0 %v1875_v19  ;;  %2465 = vmatpush1.msra.mxu1 %v1778_v26  ;;  %v861_v26 = vadd.f32 1.0, %v4455_v10  ;;  %v1862_v19 = vunpack.c.l.bf16 %v1362_v7  ;;  %v1420_v10 = vld [vmem:[%s7149_s4 + $0x5ac] sm:$0xff]  ;;  %v1418_v37 = vld [vmem:[%s7149_s4 + $0x5a0] sm:$0xff] }
 0x12c   :  { %2572 = vmatpush1.msra.mxu0 %v1874_v39  ;;  %2466 = vmatprep.subr.mxu1 %v1872_v27  ;;  %v1358_v39 = vld [vmem:[%s7149_s4 + $0x438] sm:$0xff]  ;;  %v4461_v27 = vpop.eup %4460 }
 0x12d   :  { %2573 = vmatprep.subr.mxu0 %v1968_v50  ;;  %2467 = vmatpush2.msra.mxu1 %v1871_v41  ;;  %v1860_v41 = vunpack.c.h.bf16 %v1360_v3  ;;  %v1422_v50 = vld [vmem:[%s7149_s4 + $0x5b8] sm:$0xff]  ;;  %v1857_v7 = vunpack.c.h.bf16 %v1358_v39  ;;  %4462 = vrcp.f32 %v861_v26 }
 0x12e   :  { %2574 = vmatpush2.msra.mxu0 %v1967_v59  ;;  %2468 = vmatprep.subr.mxu1 %v1869_v45  ;;  %v1859_v59 = vunpack.c.l.bf16 %v1360_v3  ;;  %v1956_v45 = vunpack.c.h.bf16 %v1424_v18  ;;  %v1953_v58 = vunpack.c.h.bf16 %v1422_v50  ;;  %v1854_v3 = vunpack.c.h.bf16 %v1356_v60 }
 0x12f   :  { %2575 = vmatprep.subr.mxu0 %v1965_v6  ;;  %2469 = vmatpush2.msra.mxu1 %v1868_v42  ;;  %v862_v42 = vadd.f32 1.0, %v4459_v31  ;;  %v1955_v6 = vunpack.c.l.bf16 %v1424_v18  ;;  %4464 = vrcp.f32 %v863_v43  ;;  %v1352_v18 = vld [vmem:[%s7149_s4 + $0x414] sm:$0xff]  ;;  %v1949_v31 = vunpack.c.l.bf16 %v1420_v10 }
 0x130   :  { %2576 = vmatpush2.msra.mxu0 %v1964_v11  ;;  %2470 = vmatprep.subr.mxu1 %v1866_v12  ;;  %v860_v11 = vadd.f32 1.0, %v4461_v27  ;;  %v1856_v12 = vunpack.c.l.bf16 %v1358_v39  ;;  %v1947_v39 = vunpack.c.h.bf16 %v1418_v37  ;;  %v1350_v27 = vld [vmem:[%s7149_s4 + $0x408] sm:$0xff]  ;;  %v1847_v43 = vunpack.c.l.bf16 %v1352_v18 }
 0x131   :  { %2577 = vmatprep.subr.mxu0 %v1962_v47  ;;  %2471 = vmatpush2.msra.mxu1 %v1865_v13  ;;  %v1354_v13 = vld [vmem:[%s7149_s4 + $0x420] sm:$0xff]  ;;  %v1952_v47 = vunpack.c.l.bf16 %v1422_v50  ;;  %4466 = vrcp.f32 %v862_v42  ;;  %v1414_v50 = vld [vmem:[%s7149_s4 + $0x588] sm:$0xff]  ;;  %v1845_v42 = vunpack.c.h.bf16 %v1350_v27 }
 0x132   :  { %2578 = vmatpush2.msra.mxu0 %v1961_v21  ;;  %2472 = vmatprep.subr.mxu1 %v1863_v22  ;;  %v1853_v21 = vunpack.c.l.bf16 %v1356_v60  ;;  %v1950_v22 = vunpack.c.h.bf16 %v1420_v10  ;;  %v1851_v26 = vunpack.c.h.bf16 %v1354_v13  ;;  %4468 = vrcp.f32 %v860_v11  ;;  %v1346_v11 = vld [vmem:[%s7149_s4 + $0x3f0] sm:$0xff] }
 0x133   :  { %2579 = vmatprep.subr.mxu0 %v1959_v33  ;;  %2473 = vmatpush2.msra.mxu1 %v1862_v19  ;;  %v1416_v19 = vld [vmem:[%s7149_s4 + $0x594] sm:$0xff]  ;;  %v1850_v33 = vunpack.c.l.bf16 %v1354_v13  ;;  %v1941_v10 = vunpack.c.h.bf16 %v1414_v50 }
 0x134   :  { %2580 = vmatpush2.msra.mxu0 %v1958_v46  ;;  %2474 = vmatprep.subr.mxu1 %v1860_v41  ;;  %v1946_v46 = vunpack.c.l.bf16 %v1418_v37  ;;  %v1848_v41 = vunpack.c.h.bf16 %v1352_v18  ;;  %v1943_v60 = vunpack.c.l.bf16 %v1416_v19  ;;  %v1410_v13 = vld [vmem:[%s7149_s4 + $0x570] sm:$0xff]  ;;  %v1344_v37 = vld [vmem:[%s7149_s4 + $0x3e4] sm:$0xff] }
 0x135   :  { %2581 = vmatprep.subr.mxu0 %v1956_v45  ;;  %2475 = vmatpush2.msra.mxu1 %v1859_v59  ;;  %v1944_v59 = vunpack.c.h.bf16 %v1416_v19  ;;  %v1348_v45 = vld [vmem:[%s7149_s4 + $0x3fc] sm:$0xff]  ;;  %v1408_v18 = vld [vmem:[%s7149_s4 + $0x564] sm:$0xff] }
 0x136   :  { %2582 = vmatpush2.msra.mxu0 %v1955_v6  ;;  %2476 = vmatprep.subr.mxu1 %v1857_v7  ;;  %v1412_v6 = vld [vmem:[%s7149_s4 + $0x57c] sm:$0xff]  ;;  %v1844_v7 = vunpack.c.l.bf16 %v1350_v27  ;;  %v1836_v27 = vunpack.c.h.bf16 %v1344_v37 }
 0x137   :  { %2583 = vmatprep.subr.mxu0 %v1953_v58  ;;  %2477 = vmatpush2.msra.mxu1 %v1856_v12  ;;  %v1940_v12 = vunpack.c.l.bf16 %v1414_v50  ;;  %v1842_v58 = vunpack.c.h.bf16 %v1348_v45  ;;  %v1342_v19 = vld [vmem:[%s7149_s4 + $0x3d8] sm:$0xff]  ;;  %v1835_v50 = vunpack.c.l.bf16 %v1344_v37 }
 0x138   :  { %2584 = vmatpush2.msra.mxu0 %v1952_v47  ;;  %2478 = vmatprep.subr.mxu1 %v1854_v3  ;;  %v1841_v47 = vunpack.c.l.bf16 %v1348_v45  ;;  %v1938_v3 = vunpack.c.h.bf16 %v1412_v6 }
 0x139   :  { %2585 = vmatprep.subr.mxu0 %v1950_v22  ;;  %2479 = vmatpush2.msra.mxu1 %v1853_v21  ;;  %v1937_v21 = vunpack.c.l.bf16 %v1412_v6  ;;  %v1839_v22 = vunpack.c.h.bf16 %v1346_v11  ;;  %v1404_v6 = vld [vmem:[%s7149_s4 + $0x54c] sm:$0xff] }
 0x13a   :  { %2586 = vmatpush2.msra.mxu0 %v1949_v31  ;;  %2480 = vmatprep.subr.mxu1 %v1851_v26  ;;  %v1838_v31 = vunpack.c.l.bf16 %v1346_v11  ;;  %v1935_v26 = vunpack.c.h.bf16 %v1410_v13 }
 0x13b   :  { %2587 = vmatprep.subr.mxu0 %v1947_v39  ;;  %2481 = vmatpush2.msra.mxu1 %v1850_v33  ;;  %v4463_v33 = vpop.eup %4462  ;;  %v1934_v39 = vunpack.c.l.bf16 %v1410_v13  ;;  %v1338_v13 = vld [vmem:[%s7149_s4 + $0x3c0] sm:$0xff] }
 0x13c   :  { %2588 = vmatpush2.msra.mxu0 %v1946_v46  ;;  %2482 = vmatprep.subr.mxu1 %v1848_v41  ;;  %v1406_v46 = vld [vmem:[%s7149_s4 + $0x558] sm:$0xff]  ;;  %v5378_v41 = vld [vmem:[%s7151_s3 + $0x10] sm:$0xff]  ;;  %v4465_v45 = vpop.eup %4464  ;;  %v5390_v11 = vrot.slane %v4463_v33, %v4972_v0 }
 0x13d   :  { %2589 = vmatprep.subr.mxu0 %v1944_v59  ;;  %2483 = vmatpush2.msra.mxu1 %v1847_v43  ;;  %v1932_v43 = vunpack.c.h.bf16 %v1408_v18  ;;  %v1340_v59 = vld [vmem:[%s7149_s4 + $0x3cc] sm:$0xff]  ;;  %v1928_v37 = vunpack.c.l.bf16 %v1406_v46 }
 0x13e   :  { %2590 = vmatpush2.msra.mxu0 %v1943_v60  ;;  %2484 = vmatprep.subr.mxu1 %v1845_v42  ;;  %v1931_v60 = vunpack.c.l.bf16 %v1408_v18  ;;  %v1833_v42 = vunpack.c.h.bf16 %v1342_v19  ;;  %v5400_v18 = vrot.slane %v4465_v45, %v4972_v0 }
 0x13f   :  { %2591 = vmatprep.subr.mxu0 %v1941_v10  ;;  %2485 = vmatpush2.msra.mxu1 %v1844_v7  ;;  %v898_v7 = vld [vmem:[%s7151_s3 + $0x18] sm:$0xff]  ;;  %v4467_v10 = vpop.eup %4466 }
 0x140   :  { %2592 = vmatpush2.msra.mxu0 %v1940_v12  ;;  %2486 = vmatprep.subr.mxu1 %v1842_v58  ;;  %v1832_v12 = vunpack.c.l.bf16 %v1342_v19  ;;  %v1929_v58 = vunpack.c.h.bf16 %v1406_v46  ;;  %v951_v19 = vunpack.c.h.bf16 %v898_v7  ;;  %v5403_v33 = vrot.slane %v4467_v10, %v4972_v0 }
 0x141   :  { %2593 = vmatprep.subr.mxu0 %v1938_v3  ;;  %2487 = vmatpush2.msra.mxu1 %v1841_v47  ;;  %v949_v47 = vunpack.c.h.bf16 %v5378_v41  ;;  %v4469_v3 = vpop.eup %4468  ;;  %v950_v46 = vunpack.c.l.bf16 %v898_v7 }
 0x142   :  { %2594 = vmatpush2.msra.mxu0 %v1937_v21  ;;  %2488 = vmatprep.subr.mxu1 %v1839_v22  ;;  %v1830_v21 = vunpack.c.h.bf16 %v1340_v59  ;;  %v1402_v22 = vld [vmem:[%s7149_s4 + $0x540] sm:$0xff]  ;;  %v5409_v45 = vrot.slane %v4469_v3, %v4972_v0  ;;  %v5425_v10 = vmul.f32 %v5400_v18, %v951_v19  ;;  %v1526_v3 = vld [vmem:[%s7149_s4 + $0x828] sm:$0xff] }
 0x143   :  { %2595 = vmatprep.subr.mxu0 %v1935_v26  ;;  %2489 = vmatpush2.msra.mxu1 %v1838_v31  ;;  %v1829_v31 = vunpack.c.l.bf16 %v1340_v59  ;;  %v1926_v26 = vunpack.c.h.bf16 %v1404_v6  ;;  %v1923_v59 = vunpack.c.h.bf16 %v1402_v22  ;;  %v1922_v7 = vunpack.c.l.bf16 %v1402_v22 }
 0x144   :  { %2596 = vmatpush2.msra.mxu0 %v1934_v39  ;;  %2490 = vmatprep.subr.mxu1 %v1836_v27  ;;  %v1925_v39 = vunpack.c.l.bf16 %v1404_v6  ;;  %v1827_v27 = vunpack.c.h.bf16 %v1338_v13  ;;  %v1826_v6 = vunpack.c.l.bf16 %v1338_v13  ;;  %7245 = vst [vmem:[#allocation13_spill] sm:$0xff] %v5425_v10  ;;  %v1462_v13 = vld [vmem:[%s7149_s4 + $0x6a8] sm:$0xff] }
 0x145   :  { %2597 = vmatprep.subr.mxu0 %v1932_v43  ;;  %2491 = vmatpush2.msra.mxu1 %v1835_v50  ;;  %v948_v50 = vunpack.c.l.bf16 %v5378_v41  ;;  %v5413_v43 = vmul.f32 %v5390_v11, %v949_v47  ;;  %v1528_v41 = vld [vmem:[%s7149_s4 + $0x834] sm:$0xff] }
 0x146   :  { %2598 = vmatpush2.msra.mxu0 %v1931_v60  ;;  %2492 = vmatprep.subr.mxu1 %v1833_v42  ;;  %v1464_v60 = vld [vmem:[%s7149_s4 + $0x6b4] sm:$0xff]  ;;  %v905_v42 = vld [vmem:[%s7151_s3 + $0x4c] sm:$0xff]  ;;  %v2112_v22 = vunpack.c.h.bf16 %v1528_v41 }
 0x147   :  { %2599 = vmatprep.subr.mxu0 %v1929_v58  ;;  %2493 = vmatpush2.msra.mxu1 %v1832_v12  ;;  %v962_v12 = vunpack.c.h.bf16 %v904_v61  ;;  %v5428_v58 = vmul.f32 %v5403_v33, %v950_v46  ;;  %v2016_v47 = vunpack.c.h.bf16 %v1464_v60  ;;  %v963_v19 = vunpack.c.l.bf16 %v905_v42 }
 0x148   :  { %2600 = vmatpush2.msra.mxu0 %v1928_v37  ;;  %2494 = vmatprep.subr.mxu1 %v1830_v21  ;;  %v964_v37 = vunpack.c.h.bf16 %v905_v42  ;;  %v5437_v21 = vmul.f32 %v5409_v45, %v948_v50  ;;  %v2013_v46 = vunpack.c.h.bf16 %v1462_v13  ;;  %v2109_v50 = vunpack.c.h.bf16 %v1526_v3  ;;  %v912_v42 = vld [vmem:[%s7151_s3 + $0x80] sm:$0xff] }
 0x149   :  { %2601 = vmatprep.subr.mxu0 %v1926_v26  ;;  %2495 = vmatpush2.msra.mxu1 %v1829_v31  ;;  %7246 = vst [vmem:[#allocation14_spill] sm:$0xff] %v5428_v58  ;;  %v2015_v31 = vunpack.c.l.bf16 %v1464_v60  ;;  %v2111_v26 = vunpack.c.l.bf16 %v1528_v41  ;;  %v1460_v60 = vld [vmem:[%s7149_s4 + $0x69c] sm:$0xff]  ;;  %v5463_v5 = vmul.f32 %v5403_v33, %v963_v19 }
 0x14a   :  { %2602 = vmatpush2.msra.mxu0 %v1925_v39  ;;  %2496 = vmatprep.subr.mxu1 %v1827_v27  ;;  %v911_v39 = vld [vmem:[%s7151_s3 + $0x78] sm:$0xff]  ;;  %v5446_v27 = vmul.f32 %v5390_v11, %v962_v12 }
 0x14b   :  { %2498 = vmatprep.mubr.f32.mxu1 %v5413_v43  ;;  %2603 = vmatprep.subr.mxu0 %v1923_v59  ;;  %v961_v59 = vunpack.c.l.bf16 %v904_v61  ;;  %v1524_v41 = vld [vmem:[%s7149_s4 + $0x81c] sm:$0xff]  ;;  %v2108_v61 = vunpack.c.l.bf16 %v1526_v3  ;;  %v975_v12 = vunpack.c.h.bf16 %v911_v39  ;;  %7248 = vst [vmem:[#allocation16_spill] sm:$0xff] %v5463_v5  ;;  %v974_v40 = vunpack.c.l.bf16 %v911_v39 }
 0x14c   :  { %2497 = vmatpush2.msra.mxu1 %v1826_v6  ;;  %2604 = vmatpush2.msra.mxu0 %v1922_v7  ;;  %v2012_v6 = vunpack.c.l.bf16 %v1462_v13  ;;  %v5456_v7 = vmul.f32 %v5400_v18, %v964_v37  ;;  %v1522_v13 = vld [vmem:[%s7149_s4 + $0x810] sm:$0xff]  ;;  %v977_v37 = vunpack.c.h.bf16 %v912_v42  ;;  %v2105_v19 = vunpack.c.l.bf16 %v1524_v41 }
 0x14d   :  { %2605 = vmatprep.mubr.f32.mxu0 %v5425_v10  ;;  %2499 = vmatmul.mubr.f32.vlgmr.msra.gmra.mxu1 %v5437_v21  ;;  %v5472_v3 = vmul.f32 %v5409_v45, %v961_v59  ;;  %v976_v10 = vunpack.c.l.bf16 %v912_v42  ;;  %v2103_v8 = vunpack.c.h.bf16 %v1522_v13  ;;  %v2102_v39 = vunpack.c.l.bf16 %v1522_v13  ;;  %v1518_v13 = vld [vmem:[%s7149_s4 + $0x7f8] sm:$0xff] }
 0x14e   :  { %2606 = vmatmul.mubr.f32.vlgmr.msra.gmra.mxu0 %v5428_v58  ;;  %2648 = vmatprep.subr.mxu1 %v2016_v47  ;;  %7247 = vst [vmem:[#allocation15_spill] sm:$0xff] %v5456_v7  ;;  %v2010_v58 = vunpack.c.h.bf16 %v1460_v60  ;;  %v1458_v47 = vld [vmem:[%s7149_s4 + $0x690] sm:$0xff]  ;;  %v5492_v42 = vmul.f32 %v5400_v18, %v977_v37  ;;  %v5506_v37 = vmul.f32 %v5409_v45, %v974_v40 }
 0x14f   :  { %2755 = vmatprep.subr.mxu0 %v2112_v22  ;;  %2504 = vmatprep.mubr.f32.mxu1 %v5446_v27  ;;  %v2106_v22 = vunpack.c.h.bf16 %v1524_v41  ;;  %v2007_v59 = vunpack.c.h.bf16 %v1458_v47  ;;  %v1520_v41 = vld [vmem:[%s7149_s4 + $0x804] sm:$0xff] }
 0x150   :  { %2649 = vmatpush1.msra.mxu1 %v2015_v31  ;;  %2756 = vmatpush1.msra.mxu0 %v2111_v26  ;;  %v5477_v31 = vld [vmem:[%s7151_s3 + $0xb4] sm:$0xff]  ;;  %v2009_v26 = vunpack.c.l.bf16 %v1460_v60  ;;  %v2006_v60 = vunpack.c.l.bf16 %v1458_v47  ;;  %7249 = vst [vmem:[#allocation17_spill] sm:$0xff] %v5492_v42  ;;  %7251 = vst [vmem:[#allocation19_spill] sm:$0xff] %v5506_v37  ;;  %v2099_v40 = vunpack.c.l.bf16 %v1520_v41 }
 0x151   :  { %2650 = vmatprep.subr.mxu1 %v2013_v46  ;;  %2757 = vmatprep.subr.mxu0 %v2109_v50  ;;  %v918_v46 = vld [vmem:[%s7151_s3 + $0xac] sm:$0xff]  ;;  %v5485_v50 = vmul.f32 %v5390_v11, %v975_v12  ;;  %v1454_v47 = vld [vmem:[%s7149_s4 + $0x678] sm:$0xff] }
 0x152   :  { %2611 = vmatprep.mubr.f32.mxu0 %v5456_v7  ;;  %2651 = vmatpush1.msra.mxu1 %v2012_v6  ;;  %v1456_v6 = vld [vmem:[%s7149_s4 + $0x684] sm:$0xff]  ;;  %v988_v12 = vunpack.c.h.bf16 %v918_v46  ;;  %v987_v7 = vunpack.c.l.bf16 %v918_v46  ;;  %v1516_v46 = vld [vmem:[%s7149_s4 + $0x7ec] sm:$0xff] }
 0x153   :  { %2758 = vmatpush1.msra.mxu0 %v2108_v61  ;;  %2505 = vmatmul.mubr.f32.gmra.mxu1 %v5472_v3  ;;  %v990_v61 = vunpack.c.h.bf16 %v5477_v31 }
 0x154   :  { %2612 = vmatmul.mubr.f32.gmra.mxu0 %v5463_v5  ;;  %2652 = vmatprep.subr.mxu1 %v2010_v58  ;;  %v5500_v5 = vmul.f32 %v5403_v33, %v976_v10  ;;  %v2004_v58 = vunpack.c.h.bf16 %v1456_v6  ;;  %v2003_v10 = vunpack.c.l.bf16 %v1456_v6  ;;  %v1452_v6 = vld [vmem:[%s7149_s4 + $0x66c] sm:$0xff] }
 0x155   :  { %2759 = vmatprep.subr.mxu0 %v2106_v22  ;;  %2510 = vmatprep.mubr.f32.mxu1 %v5485_v50  ;;  %v2100_v22 = vunpack.c.h.bf16 %v1520_v41  ;;  %v989_v41 = vunpack.c.l.bf16 %v5477_v31  ;;  %v1998_v23 = vunpack.c.h.bf16 %v1452_v6  ;;  %v1450_v31 = vld [vmem:[%s7149_s4 + $0x660] sm:$0xff] }
 0x156   :  { %2653 = vmatpush1.msra.mxu1 %v2009_v26  ;;  %2760 = vmatpush1.msra.mxu0 %v2105_v19  ;;  %7250 = vst [vmem:[#allocation18_spill] sm:$0xff] %v5500_v5  ;;  %v5513_v26 = vmul.f32 %v5400_v18, %v990_v61  ;;  %v5518_v19 = vld [vmem:[%s7151_s3 + $0xe0] sm:$0xff]  ;;  %v2000_v61 = vunpack.c.l.bf16 %v1454_v47 }
 0x157   :  { %2654 = vmatprep.subr.mxu1 %v2007_v59  ;;  %2761 = vmatprep.subr.mxu0 %v2103_v8  ;;  %v5522_v8 = vmul.f32 %v5390_v11, %v988_v12  ;;  %v2001_v59 = vunpack.c.h.bf16 %v1454_v47  ;;  %v2096_v12 = vunpack.c.l.bf16 %v1518_v13  ;;  %v5545_v47 = vmul.f32 %v5409_v45, %v987_v7  ;;  %v5562_v7 = vld [vmem:[%s7151_s3 + $0x114] sm:$0xff] }
 0x158   :  { %2617 = vmatprep.mubr.f32.mxu0 %v5492_v42  ;;  %2655 = vmatpush1.msra.mxu1 %v2006_v60  ;;  %7252 = vst [vmem:[#allocation20_spill] sm:$0xff] %v5513_v26  ;;  %v5530_v60 = vld [vmem:[%s7151_s3 + $0xe8] sm:$0xff]  ;;  %v1001_v42 = vunpack.c.h.bf16 %v5518_v19 }
 0x159   :  { %2762 = vmatpush1.msra.mxu0 %v2102_v39  ;;  %2511 = vmatmul.mubr.f32.gmra.mxu1 %v5506_v37  ;;  %7253 = vst [vmem:[#allocation21_spill] sm:$0xff] %v5522_v8  ;;  %v2097_v39 = vunpack.c.h.bf16 %v1518_v13  ;;  %7254 = vst [vmem:[#allocation22_spill] sm:$0xff] %v5545_v47  ;;  %v1514_v13 = vld [vmem:[%s7149_s4 + $0x7e0] sm:$0xff] }
 0x15a   :  { %2618 = vmatmul.mubr.f32.gmra.mxu0 %v5500_v5  ;;  %2656 = vmatprep.subr.mxu1 %v2004_v58  ;;  %v1003_v58 = vunpack.c.h.bf16 %v5530_v60  ;;  %v2093_v5 = vunpack.c.l.bf16 %v1516_v46  ;;  %v5566_v2 = vmul.f32 %v5390_v11, %v1001_v42  ;;  %v1994_v42 = vunpack.c.l.bf16 %v1450_v31 }
 0x15b   :  { %2763 = vmatprep.subr.mxu0 %v2100_v22  ;;  %2516 = vmatprep.mubr.f32.mxu1 %v5522_v8  ;;  %v2094_v22 = vunpack.c.h.bf16 %v1516_v46  ;;  %v2091_v46 = vunpack.c.h.bf16 %v1514_v13  ;;  %v2090_v25 = vunpack.c.l.bf16 %v1514_v13  ;;  %v1510_v13 = vld [vmem:[%s7149_s4 + $0x7c8] sm:$0xff] }
 0x15c   :  { %2623 = vmatprep.mubr.f32.mxu0 %v5513_v26  ;;  %2657 = vmatpush1.msra.mxu1 %v2003_v10  ;;  %v5553_v10 = vld [vmem:[%s7150_s2 + $0x8] sm:$0x1f]  ;;  %v5556_v26 = vmul.f32 %v5403_v33, %v989_v41  ;;  %7256 = vst [vmem:[#allocation24_spill] sm:$0xff] %v5566_v2  ;;  %v5579_v41 = vmul.f32 %v5400_v18, %v1003_v58 }
 0x15d   :  { %2764 = vmatpush1.msra.mxu0 %v2099_v40  ;;  %2658 = vmatprep.subr.mxu1 %v2001_v59  ;;  %v1997_v40 = vunpack.c.l.bf16 %v1452_v6  ;;  %v1000_v59 = vunpack.c.l.bf16 %v5518_v19  ;;  %v1448_v6 = vld [vmem:[%s7149_s4 + $0x654] sm:$0xff]  ;;  %v5575_v19 = vld [vmem:[%s7151_s3 + $0x11c] sm:$0xff] }
 0x15e   :  { %2765 = vmatprep.subr.mxu0 %v2097_v39  ;;  %2659 = vmatpush1.msra.mxu1 %v2000_v61  ;;  %7255 = vst [vmem:[#allocation23_spill] sm:$0xff] %v5556_v26  ;;  %v1995_v39 = vunpack.c.h.bf16 %v1450_v31  ;;  %v1002_v61 = vunpack.c.l.bf16 %v5530_v60  ;;  %7257 = vst [vmem:[#allocation25_spill] sm:$0xff] %v5579_v41  ;;  %v1512_v60 = vld [vmem:[%s7149_s4 + $0x7d4] sm:$0xff]  ;;  %v1016_v58 = vunpack.c.h.bf16 %v5575_v19  ;;  %v1446_v31 = vld [vmem:[%s7149_s4 + $0x648] sm:$0xff] }
 0x15f   :  { %2766 = vmatpush1.msra.mxu0 %v2096_v12  ;;  %2517 = vmatmul.mubr.f32.gmra.mxu1 %v5545_v47  ;;  %v251_v12 = vrot.slane %v5553_v10, %v4983_v4  ;;  %v742_v47 = vpop.f32.mrf.mxu1  ;;  %v5594_v4 = vmul.f32 %v5409_v45, %v1000_v59  ;;  %v5609_v59 = vld [vmem:[%s7151_s3 + $0x148] sm:$0x11] }
 0x160   :  { %2624 = vmatmul.mubr.f32.gmra.mxu0 %v5556_v26  ;;  %2660 = vmatprep.subr.mxu1 %v1998_v23  ;;  %v1014_v26 = vunpack.c.h.bf16 %v5562_v7  ;;  %v1992_v23 = vunpack.c.h.bf16 %v1448_v6  ;;  %v5604_v8 = vmul.f32 %v5403_v33, %v1002_v61  ;;  %v1989_v61 = vunpack.c.h.bf16 %v1446_v31 }
 0x161   :  { %2767 = vmatprep.subr.mxu0 %v2094_v22  ;;  %2522 = vmatprep.mubr.f32.mxu1 %v5566_v2  ;;  %7258 = vst [vmem:[#allocation26_spill] sm:$0xff] %v5594_v4  ;;  %v2088_v22 = vunpack.c.h.bf16 %v1512_v60  ;;  %v744_v37 = vpop.f32.mrf.mxu1  ;;  %v1027_v56 = vunpack.c.h.bf16 %v5609_v59 }
 0x162   :  { %2629 = vmatprep.mubr.f32.mxu0 %v5579_v41  ;;  %2661 = vmatpush1.msra.mxu1 %v1997_v40  ;;  %v1013_v41 = vunpack.c.l.bf16 %v5562_v7  ;;  %v7259_v40 = vsub.s32 3, %v4969_v63  ;;  %7260 = vst [vmem:[#allocation27_spill] sm:$0xff] %v5604_v8  ;;  %v255_v7 = vrot.slane %v5553_v10, %v4975_v1  ;;  %v1508_v1 = vld [vmem:[%s7149_s4 + $0x7bc] sm:$0xff] }
 0x163   :  { %2768 = vmatpush1.msra.mxu0 %v2093_v5  ;;  %2662 = vmatprep.subr.mxu1 %v1995_v39  ;;  %v1991_v5 = vunpack.c.l.bf16 %v1448_v6  ;;  %v674_v39 = vadd.f32 %v5148_v16, %v251_v12  ;;  %v247_v6 = vrot.slane %v5553_v10, %v4972_v0  ;;  %v5626_v16 = vld [vmem:[%s7151_s3 + $0x150] sm:$0x11]  ;;  %v1015_v12 = vunpack.c.l.bf16 %v5575_v19 }
 0x164   :  { %v259_v2 = vrot.slane %v5553_v10, %v7259_v40  ;;  %2769 = vmatprep.subr.mxu0 %v2091_v46  ;;  %2663 = vmatpush1.msra.mxu1 %v1994_v42  ;;  %v2087_v46 = vunpack.c.l.bf16 %v1512_v60  ;;  %v5616_v42 = vmul.f32 %v5390_v11, %v1014_v26  ;;  %v1444_v40 = vld [vmem:[%s7149_s4 + $0x63c] sm:$0xff]  ;;  %v1988_v26 = vunpack.c.l.bf16 %v1446_v31  ;;  %v1442_v19 = vld [vmem:[%s7149_s4 + $0x630] sm:$0xff] }
 0x165   :  { %2770 = vmatpush1.msra.mxu0 %v2090_v25  ;;  %2523 = vmatmul.mubr.f32.gmra.mxu1 %v5594_v4  ;;  %v5630_v25 = vmul.f32 %v5400_v18, %v1016_v58  ;;  %v2085_v60 = vunpack.c.h.bf16 %v1510_v13  ;;  %v2084_v4 = vunpack.c.l.bf16 %v1510_v13  ;;  %v1029_v58 = vunpack.c.h.bf16 %v5626_v16 }
 0x166   :  { %2630 = vmatmul.mubr.f32.gmra.mxu0 %v5604_v8  ;;  %2664 = vmatprep.subr.mxu1 %v1992_v23  ;;  %v745_v30 = vadd.f32 %v744_v37, %v259_v2  ;;  %v1986_v23 = vunpack.c.h.bf16 %v1444_v40  ;;  %v3980_v31 = vmul.f32 -1.442695, %v674_v39  ;;  %v743_v8 = vadd.f32 %v742_v47, %v255_v7  ;;  %v1506_v37 = vld [vmem:[%s7149_s4 + $0x7b0] sm:$0xff] }
 0x167   :  { %7261 = vst [vmem:[#allocation28_spill] sm:$0xff] %v5630_v25  ;;  %2771 = vmatprep.subr.mxu0 %v2088_v22  ;;  %2528 = vmatprep.mubr.f32.mxu1 %v5616_v42  ;;  %v672_v22 = vadd.f32 %v5118_v52, %v247_v6  ;;  %v5645_v13 = vmul.f32 %v5409_v45, %v1013_v41  ;;  %v2082_v2 = vunpack.c.h.bf16 %v1508_v1  ;;  %v1985_v39 = vunpack.c.l.bf16 %v1444_v40 }
 0x168   :  { %2635 = vmatprep.mubr.f32.mxu0 %v5630_v25  ;;  %2665 = vmatpush1.msra.mxu1 %v1991_v5  ;;  %v1026_v5 = vunpack.c.l.bf16 %v5609_v59  ;;  %v5652_v47 = vmul.f32 %v5403_v33, %v1015_v12  ;;  %v2081_v7 = vunpack.c.l.bf16 %v1508_v1  ;;  %v5657_v52 = vmul.f32 %v5390_v11, %v1027_v56  ;;  %v1440_v59 = vld [vmem:[%s7149_s4 + $0x624] sm:$0xff] }
 0x169   :  { %2772 = vmatpush1.msra.mxu0 %v2087_v46  ;;  %2666 = vmatprep.subr.mxu1 %v1989_v61  ;;  %v1028_v46 = vunpack.c.l.bf16 %v5626_v16  ;;  %v1982_v41 = vunpack.c.l.bf16 %v1442_v19  ;;  %v1983_v61 = vunpack.c.h.bf16 %v1442_v19  ;;  %v3982_v6 = vmul.f32 -1.442695, %v745_v30  ;;  %v1504_v56 = vld [vmem:[%s7149_s4 + $0x7a4] sm:$0xff]  ;;  %v1438_v16 = vld [vmem:[%s7149_s4 + $0x618] sm:$0xff] }
 0x16a   :  { %2773 = vmatprep.subr.mxu0 %v2085_v60  ;;  %2667 = vmatpush1.msra.mxu1 %v1988_v26  ;;  %7262 = vst [vmem:[#allocation29_spill] sm:$0xff] %v5652_v47  ;;  %v5664_v1 = vmul.f32 %v5400_v18, %v1029_v58  ;;  %4470 = vpow2.f32 %v3980_v31  ;;  %v2079_v40 = vunpack.c.h.bf16 %v1506_v37  ;;  %v3979_v11 = vmul.f32 -1.442695, %v672_v22  ;;  %v1500_v22 = vld [vmem:[%s7149_s4 + $0x78c] sm:$0xff] }
 0x16b   :  { %2774 = vmatpush1.msra.mxu0 %v2084_v4  ;;  %2529 = vmatmul.mubr.f32.gmra.mxu1 %v5645_v13  ;;  %v3981_v4 = vmul.f32 -1.442695, %v743_v8  ;;  %v2078_v30 = vunpack.c.l.bf16 %v1506_v37  ;;  %v1980_v18 = vunpack.c.h.bf16 %v1440_v59  ;;  %v1502_v8 = vld [vmem:[%s7149_s4 + $0x798] sm:$0xff]  ;;  %4472 = vpow2.f32 %v3982_v6  ;;  %v1434_v37 = vld [vmem:[%s7149_s4 + $0x600] sm:$0xff] }
 0x16c   :  { %2636 = vmatmul.mubr.f32.gmra.mxu0 %v5652_v47  ;;  %2668 = vmatprep.subr.mxu1 %v1986_v23  ;;  %7263 = vst [vmem:[#allocation30_spill] sm:$0xff] %v5664_v1  ;;  %v5678_v26 = vmul.f32 %v5409_v45, %v1026_v5  ;;  %v1979_v60 = vunpack.c.l.bf16 %v1440_v59  ;;  %v2076_v12 = vunpack.c.h.bf16 %v1504_v56  ;;  %v1436_v23 = vld [vmem:[%s7149_s4 + $0x60c] sm:$0xff]  ;;  %v5684_v58 = vmul.f32 %v5403_v33, %v1028_v46  ;;  %v1560_v59 = vld [vmem:[%s7149_s4 + $0x8f4] sm:$0xff] }
 0x16d   :  { %2775 = vmatprep.subr.mxu0 %v2082_v2  ;;  %2534 = vmatprep.mubr.f32.mxu1 %v5657_v52  ;;  %4474 = vpow2.f32 %v3981_v4  ;;  %v2075_v31 = vunpack.c.l.bf16 %v1504_v56  ;;  %v1977_v19 = vunpack.c.h.bf16 %v1438_v16  ;;  %v1976_v45 = vunpack.c.l.bf16 %v1438_v16  ;;  %v1494_v56 = vld [vmem:[%s7149_s4 + $0x768] sm:$0xff] }
 0x16e   :  { %2641 = vmatprep.mubr.f32.mxu0 %v5664_v1  ;;  %2669 = vmatpush1.msra.mxu1 %v1985_v39  ;;  %7264 = vst [vmem:[#allocation31_spill] sm:$0xff] %v5684_v58  ;;  %4476 = vpow2.f32 %v3979_v11  ;;  %v2073_v2 = vunpack.c.h.bf16 %v1502_v8  ;;  %v2072_v33 = vunpack.c.l.bf16 %v1502_v8  ;;  %v1974_v5 = vunpack.c.h.bf16 %v1436_v23  ;;  %v1498_v39 = vld [vmem:[%s7149_s4 + $0x780] sm:$0xff]  ;;  %v1558_v16 = vld [vmem:[%s7149_s4 + $0x8e8] sm:$0xff] }
 0x16f   :  { %2776 = vmatpush1.msra.mxu0 %v2081_v7  ;;  %2670 = vmatprep.subr.mxu1 %v1983_v61  ;;  %v1973_v7 = vunpack.c.l.bf16 %v1436_v23  ;;  %v2070_v46 = vunpack.c.h.bf16 %v1500_v22  ;;  %v2069_v61 = vunpack.c.l.bf16 %v1500_v22  ;;  %v1971_v6 = vunpack.c.h.bf16 %v1434_v37 }
 0x170   :  { %2777 = vmatprep.subr.mxu0 %v2079_v40  ;;  %2671 = vmatpush1.msra.mxu1 %v1982_v41  ;;  %v1496_v41 = vld [vmem:[%s7149_s4 + $0x774] sm:$0xff]  ;;  %v1970_v4 = vunpack.c.l.bf16 %v1434_v37  ;;  %v2067_v40 = vunpack.c.h.bf16 %v1498_v39  ;;  %v2066_v11 = vunpack.c.l.bf16 %v1498_v39  ;;  %v2160_v8 = vunpack.c.h.bf16 %v1560_v59 }
 0x171   :  { %2778 = vmatpush1.msra.mxu0 %v2078_v30  ;;  %2535 = vmatmul.mubr.f32.gmra.mxu1 %v5678_v26  ;;  %v2064_v30 = vunpack.c.h.bf16 %v1496_v41  ;;  %v2061_v23 = vunpack.c.h.bf16 %v1494_v56  ;;  %v2060_v22 = vunpack.c.l.bf16 %v1494_v56  ;;  %v2156_v37 = vunpack.c.l.bf16 %v1558_v16 }
 0x172   :  { %2642 = vmatmul.mubr.f32.gmra.mxu0 %v5684_v58  ;;  %2672 = vmatprep.subr.mxu1 %v1980_v18  ;;  %v2063_v18 = vunpack.c.l.bf16 %v1496_v41 }
 0x173   :  { %2779 = vmatprep.subr.mxu0 %v2076_v12  ;;  %2673 = vmatpush1.msra.mxu1 %v1979_v60  ;;  %v1492_v60 = vld [vmem:[%s7149_s4 + $0x75c] sm:$0xff]  ;;  %v2159_v12 = vunpack.c.l.bf16 %v1560_v59 }
 0x174   :  { %2780 = vmatpush1.msra.mxu0 %v2075_v31  ;;  %2674 = vmatprep.subr.mxu1 %v1977_v19  ;;  %v1556_v31 = vld [vmem:[%s7149_s4 + $0x8dc] sm:$0xff]  ;;  %v2057_v39 = vunpack.c.l.bf16 %v1492_v60 }
 0x175   :  { %2781 = vmatprep.subr.mxu0 %v2073_v2  ;;  %2675 = vmatpush1.msra.mxu1 %v1976_v45  ;;  %v2157_v45 = vunpack.c.h.bf16 %v1558_v16  ;;  %v1490_v2 = vld [vmem:[%s7149_s4 + $0x750] sm:$0xff] }
 0x176   :  { %2782 = vmatpush1.msra.mxu0 %v2072_v33  ;;  %2676 = vmatprep.subr.mxu1 %v1974_v5  ;;  %v2058_v33 = vunpack.c.h.bf16 %v1492_v60  ;;  %v1554_v5 = vld [vmem:[%s7149_s4 + $0x8d0] sm:$0xff]  ;;  %v2055_v59 = vunpack.c.h.bf16 %v1490_v2  ;;  %v2054_v56 = vunpack.c.l.bf16 %v1490_v2  ;;  %v1550_v60 = vld [vmem:[%s7149_s4 + $0x8b8] sm:$0xff] }
 0x177   :  { %2783 = vmatprep.subr.mxu0 %v2070_v46  ;;  %2677 = vmatpush1.msra.mxu1 %v1973_v7  ;;  %v4471_v19 = vpop.eup %4470  ;;  %v2154_v7 = vunpack.c.h.bf16 %v1556_v31  ;;  %v1488_v46 = vld [vmem:[%s7149_s4 + $0x744] sm:$0xff] }
 0x178   :  { %2784 = vmatpush1.msra.mxu0 %v2069_v61  ;;  %2678 = vmatprep.subr.mxu1 %v1971_v6  ;;  %v4473_v41 = vpop.eup %4472  ;;  %v865_v61 = vadd.f32 1.0, %v4471_v19  ;;  %v2153_v6 = vunpack.c.l.bf16 %v1556_v31  ;;  %v1484_v19 = vld [vmem:[%s7149_s4 + $0x72c] sm:$0xff] }
 0x179   :  { %2785 = vmatprep.subr.mxu0 %v2067_v40  ;;  %2679 = vmatpush1.msra.mxu1 %v1970_v4  ;;  %v1552_v4 = vld [vmem:[%s7149_s4 + $0x8c4] sm:$0xff] }
 0x17a   :  { %2786 = vmatpush1.msra.mxu0 %v2066_v11  ;;  %2680 = vmatprep.subr.mxu1 %v2064_v30  ;;  %v4475_v40 = vpop.eup %4474  ;;  %v2151_v11 = vunpack.c.h.bf16 %v1554_v5  ;;  %v1486_v30 = vld [vmem:[%s7149_s4 + $0x738] sm:$0xff]  ;;  %v2148_v31 = vunpack.c.h.bf16 %v1552_v4  ;;  %4478 = vrcp.f32 %v865_v61  ;;  %v1546_v61 = vld [vmem:[%s7149_s4 + $0x8a0] sm:$0xff] }
 0x17b   :  { %2787 = vmatprep.subr.mxu0 %v2160_v8  ;;  %2681 = vmatpush2.msra.mxu1 %v2063_v18  ;;  %v4477_v16 = vpop.eup %4476  ;;  %v2150_v18 = vunpack.c.l.bf16 %v1554_v5  ;;  %v2052_v8 = vunpack.c.h.bf16 %v1488_v46  ;;  %v2049_v2 = vunpack.c.h.bf16 %v1486_v30  ;;  %v2048_v5 = vunpack.c.l.bf16 %v1486_v30 }
 0x17c   :  { %2788 = vmatpush2.msra.mxu0 %v2159_v12  ;;  %2682 = vmatprep.subr.mxu1 %v2061_v23  ;;  %v867_v12 = vadd.f32 1.0, %v4473_v41  ;;  %v2051_v23 = vunpack.c.l.bf16 %v1488_v46  ;;  %v2144_v46 = vunpack.c.l.bf16 %v1550_v60  ;;  %v2046_v41 = vunpack.c.h.bf16 %v1484_v19 }
 0x17d   :  { %2789 = vmatprep.subr.mxu0 %v2157_v45  ;;  %2683 = vmatpush2.msra.mxu1 %v2060_v22  ;;  %v866_v22 = vadd.f32 1.0, %v4475_v40  ;;  %v2147_v45 = vunpack.c.l.bf16 %v1552_v4  ;;  %v1480_v4 = vld [vmem:[%s7149_s4 + $0x714] sm:$0xff] }
 0x17e   :  { %2790 = vmatpush2.msra.mxu0 %v2156_v37  ;;  %2684 = vmatprep.subr.mxu1 %v2058_v33  ;;  %v1548_v37 = vld [vmem:[%s7149_s4 + $0x8ac] sm:$0xff]  ;;  %v864_v33 = vadd.f32 1.0, %v4477_v16  ;;  %4480 = vrcp.f32 %v867_v12  ;;  %v2139_v16 = vunpack.c.h.bf16 %v1546_v61 }
 0x17f   :  { %2791 = vmatprep.subr.mxu0 %v2154_v7  ;;  %2685 = vmatpush2.msra.mxu1 %v2057_v39  ;;  %v2145_v39 = vunpack.c.h.bf16 %v1550_v60  ;;  %v1482_v7 = vld [vmem:[%s7149_s4 + $0x720] sm:$0xff]  ;;  %4482 = vrcp.f32 %v866_v22  ;;  %v2141_v40 = vunpack.c.l.bf16 %v1548_v37  ;;  %v2040_v60 = vunpack.c.h.bf16 %v1480_v4  ;;  %v1542_v12 = vld [vmem:[%s7149_s4 + $0x888] sm:$0xff] }
 0x180   :  { %2792 = vmatpush2.msra.mxu0 %v2153_v6  ;;  %2686 = vmatprep.subr.mxu1 %v2055_v59  ;;  %v2045_v6 = vunpack.c.l.bf16 %v1484_v19  ;;  %v2142_v59 = vunpack.c.h.bf16 %v1548_v37  ;;  %4484 = vrcp.f32 %v864_v33  ;;  %v2042_v30 = vunpack.c.l.bf16 %v1482_v7  ;;  %v1476_v19 = vld [vmem:[%s7149_s4 + $0x6fc] sm:$0xff] }
 0x181   :  { %2793 = vmatprep.subr.mxu0 %v2151_v11  ;;  %2687 = vmatpush2.msra.mxu1 %v2054_v56  ;;  %v2043_v56 = vunpack.c.h.bf16 %v1482_v7  ;;  %v1544_v11 = vld [vmem:[%s7149_s4 + $0x894] sm:$0xff]  ;;  %v2133_v33 = vunpack.c.h.bf16 %v1542_v12  ;;  %v7265_v7 = vsub.s32 4, %v4969_v63 }
 0x182   :  { %2794 = vmatpush2.msra.mxu0 %v2150_v18  ;;  %2688 = vmatprep.subr.mxu1 %v2052_v8  ;;  %v1478_v18 = vld [vmem:[%s7149_s4 + $0x708] sm:$0xff]  ;;  %v2138_v8 = vunpack.c.l.bf16 %v1546_v61  ;;  %v2135_v22 = vunpack.c.l.bf16 %v1544_v11  ;;  %v1538_v61 = vld [vmem:[%s7149_s4 + $0x870] sm:$0xff] }
 0x183   :  { %2795 = vmatprep.subr.mxu0 %v2148_v31  ;;  %2689 = vmatpush2.msra.mxu1 %v2051_v23  ;;  %v2039_v23 = vunpack.c.l.bf16 %v1480_v4  ;;  %v2136_v31 = vunpack.c.h.bf16 %v1544_v11  ;;  %v2036_v37 = vunpack.c.l.bf16 %v1478_v18  ;;  %v1472_v4 = vld [vmem:[%s7149_s4 + $0x6e4] sm:$0xff] }
 0x184   :  { %2796 = vmatpush2.msra.mxu0 %v2147_v45  ;;  %2690 = vmatprep.subr.mxu1 %v2049_v2  ;;  %v2037_v45 = vunpack.c.h.bf16 %v1478_v18  ;;  %v1540_v2 = vld [vmem:[%s7149_s4 + $0x87c] sm:$0xff] }
 0x185   :  { %2797 = vmatprep.subr.mxu0 %v2145_v39  ;;  %2691 = vmatpush2.msra.mxu1 %v2048_v5  ;;  %v1474_v5 = vld [vmem:[%s7149_s4 + $0x6f0] sm:$0xff]  ;;  %v2132_v39 = vunpack.c.l.bf16 %v1542_v12  ;;  %v1470_v18 = vld [vmem:[%s7149_s4 + $0x6d8] sm:$0xff]  ;;  %v2126_v12 = vunpack.c.l.bf16 %v1538_v61 }
 0x186   :  { %2798 = vmatpush2.msra.mxu0 %v2144_v46  ;;  %2692 = vmatprep.subr.mxu1 %v2046_v41  ;;  %v263_v46 = vrot.slane %v5553_v10, %v7265_v7  ;;  %v2034_v41 = vunpack.c.h.bf16 %v1476_v19  ;;  %v1536_v10 = vld [vmem:[%s7149_s4 + $0x864] sm:$0xff] }
 0x187   :  { %2799 = vmatprep.subr.mxu0 %v2142_v59  ;;  %2693 = vmatpush2.msra.mxu1 %v2045_v6  ;;  %v2033_v6 = vunpack.c.l.bf16 %v1476_v19  ;;  %v2130_v59 = vunpack.c.h.bf16 %v1540_v2  ;;  %v4479_v11 = vpop.eup %4478  ;;  %v2027_v19 = vunpack.c.l.bf16 %v1472_v4  ;;  %v900_v7 = vld [vmem:[%s7151_s3 + $0x28] sm:$0xff] }
 0x188   :  { %2800 = vmatpush2.msra.mxu0 %v2141_v40  ;;  %2694 = vmatprep.subr.mxu1 %v2043_v56  ;;  %v2129_v40 = vunpack.c.l.bf16 %v1540_v2  ;;  %v2031_v56 = vunpack.c.h.bf16 %v1474_v5 }
 0x189   :  { %2801 = vmatprep.subr.mxu0 %v2139_v16  ;;  %2695 = vmatpush2.msra.mxu1 %v2042_v30  ;;  %v2030_v30 = vunpack.c.l.bf16 %v1474_v5  ;;  %v2127_v16 = vunpack.c.h.bf16 %v1538_v61  ;;  %v1532_v5 = vld [vmem:[%s7149_s4 + $0x84c] sm:$0xff] }
 0x18a   :  { %2802 = vmatpush2.msra.mxu0 %v2138_v8  ;;  %2696 = vmatprep.subr.mxu1 %v2040_v60  ;;  %v5784_v8 = vld [vmem:[%s7151_s3 + $0x20] sm:$0xff]  ;;  %v814_v60 = vadd.f32 %v5160_v29, %v263_v46  ;;  %v2123_v29 = vunpack.c.l.bf16 %v1536_v10 }
 0x18b   :  { %2803 = vmatprep.subr.mxu0 %v2136_v31  ;;  %2697 = vmatpush2.msra.mxu1 %v2039_v23  ;;  %v2028_v23 = vunpack.c.h.bf16 %v1472_v4  ;;  %v1534_v31 = vld [vmem:[%s7149_s4 + $0x858] sm:$0xff]  ;;  %v4481_v2 = vpop.eup %4480 }
 0x18c   :  { %2804 = vmatpush2.msra.mxu0 %v2135_v22  ;;  %2698 = vmatprep.subr.mxu1 %v2037_v45  ;;  %v2124_v22 = vunpack.c.h.bf16 %v1536_v10  ;;  %v1468_v45 = vld [vmem:[%s7149_s4 + $0x6cc] sm:$0xff]  ;;  %v4483_v46 = vpop.eup %4482  ;;  %v2121_v61 = vunpack.c.h.bf16 %v1534_v31  ;;  %v2120_v4 = vunpack.c.l.bf16 %v1534_v31  ;;  %v1530_v10 = vld [vmem:[%s7149_s4 + $0x840] sm:$0xff]  ;;  %v954_v31 = vunpack.c.l.bf16 %v900_v7 }
 0x18d   :  { %2805 = vmatprep.subr.mxu0 %v2133_v33  ;;  %2699 = vmatpush2.msra.mxu1 %v2036_v37  ;;  %v5794_v37 = vrot.slane %v4479_v11, %v4972_v0  ;;  %v2025_v33 = vunpack.c.h.bf16 %v1470_v18  ;;  %v5810_v11 = vrot.slane %v4481_v2, %v4972_v0  ;;  %v5821_v2 = vld [vmem:[%s7151_s3 + $0x54] sm:$0xff] }
 0x18e   :  { %2806 = vmatpush2.msra.mxu0 %v2132_v39  ;;  %2700 = vmatprep.subr.mxu1 %v2034_v41  ;;  %v953_v39 = vunpack.c.h.bf16 %v5784_v8  ;;  %v2024_v41 = vunpack.c.l.bf16 %v1470_v18  ;;  %v955_v18 = vunpack.c.h.bf16 %v900_v7  ;;  %v2114_v7 = vunpack.c.l.bf16 %v1530_v10 }
 0x18f   :  { %2807 = vmatprep.subr.mxu0 %v2130_v59  ;;  %2701 = vmatpush2.msra.mxu1 %v2033_v6  ;;  %v4485_v6 = vpop.eup %4484  ;;  %v3983_v59 = vmul.f32 -1.442695, %v814_v60  ;;  %v5813_v60 = vrot.slane %v4483_v46, %v4972_v0  ;;  %v1241_v46 = vld [vmem:[%s7149_s4 + $0x170] ss:$12 sps:$4 sm:$0xff]  }
 0x190   :  { %2808 = vmatpush2.msra.mxu0 %v2129_v40  ;;  %2702 = vmatprep.subr.mxu1 %v2031_v56  ;;  %v2022_v40 = vunpack.c.h.bf16 %v1468_v45  ;;  %v1466_v56 = vld [vmem:[%s7149_s4 + $0x6c0] sm:$0xff] }
 0x191   :  { %2809 = vmatprep.subr.mxu0 %v2127_v16  ;;  %2703 = vmatpush2.msra.mxu1 %v2030_v30  ;;  %v2021_v30 = vunpack.c.l.bf16 %v1468_v45  ;;  %v2118_v16 = vunpack.c.h.bf16 %v1532_v5  ;;  %v952_v45 = vunpack.c.l.bf16 %v5784_v8  ;;  %4486 = vpow2.f32 %v3983_v59 }
 0x192   :  { %2810 = vmatpush2.msra.mxu0 %v2126_v12  ;;  %2704 = vmatprep.subr.mxu1 %v2028_v23  ;;  %v2117_v12 = vunpack.c.l.bf16 %v1532_v5  ;;  %v5816_v23 = vmul.f32 %v5794_v37, %v953_v39  ;;  %v1584_v5 = vld [vmem:[%s7149_s4 + $0x984] sm:$0xff]  ;;  %v2018_v39 = vunpack.c.l.bf16 %v1466_v56  ;;  %v966_v8 = vunpack.c.h.bf16 %v5821_v2 }
 0x193   :  { %2811 = vmatprep.subr.mxu0 %v2124_v22  ;;  %2705 = vmatpush2.msra.mxu1 %v2027_v19  ;;  %v907_v19 = vld [vmem:[%s7151_s3 + $0x5c] sm:$0xff]  ;;  %v5827_v22 = vrot.slane %v4485_v6, %v4972_v0 }
 0x194   :  { %2812 = vmatpush2.msra.mxu0 %v2123_v29  ;;  %2706 = vmatprep.subr.mxu1 %v2025_v33  ;;  %v2019_v29 = vunpack.c.h.bf16 %v1466_v56  ;;  %v2115_v33 = vunpack.c.h.bf16 %v1530_v10  ;;  %v968_v6 = vunpack.c.h.bf16 %v907_v19  ;;  %v1681_v56 = vunpack.c.h.bf16 %v1241_v46  ;;  %v1582_v10 = vld [vmem:[%s7149_s4 + $0x978] sm:$0xff] }
 0x195   :  { %2813 = vmatprep.subr.mxu0 %v2121_v61  ;;  %2707 = vmatpush2.msra.mxu1 %v2024_v41  ;;  %v5837_v41 = vmul.f32 %v5810_v11, %v955_v18  ;;  %v1209_v61 = vld [vmem:[%s7149_s4 + $0xb0] ss:$12 sps:$4 sm:$0xff]   ;;  %v5848_v59 = vmul.f32 %v5827_v22, %v952_v45  ;;  %v5862_v45 = vmul.f32 %v5794_v37, %v966_v8 }
 0x196   :  { %2814 = vmatpush2.msra.mxu0 %v2120_v4  ;;  %2708 = vmatprep.subr.mxu1 %v2022_v40  ;;  %v5845_v4 = vmul.f32 %v5813_v60, %v954_v31  ;;  %v2196_v40 = vunpack.c.h.bf16 %v1584_v5  ;;  %v1633_v18 = vunpack.c.h.bf16 %v1209_v61  ;;  %v914_v31 = vld [vmem:[%s7151_s3 + $0x90] sm:$0xff] }
 0x197   :  { %2815 = vmatprep.subr.mxu0 %v2118_v16  ;;  %2709 = vmatpush2.msra.mxu1 %v2021_v30  ;;  %7266 = vst [vmem:[#allocation32_spill] sm:$0xff] %v5837_v41  ;;  %v967_v30 = vunpack.c.l.bf16 %v907_v19  ;;  %v2195_v16 = vunpack.c.l.bf16 %v1584_v5  ;;  %v1678_v19 = vunpack.c.l.bf16 %v1241_v46  ;;  %v1237_v5 = vld [vmem:[%s7149_s4 + $0x158] ss:$12 sps:$4 sm:$0xff]   ;;  %v1580_v8 = vld [vmem:[%s7149_s4 + $0x96c] sm:$0xff]  ;;  %v981_v63 = vunpack.c.h.bf16 %v914_v31 }
 0x198   :  { %2712 = vmatprep.mubr.f32.mxu1 %v5816_v23  ;;  %2816 = vmatpush2.msra.mxu0 %v2117_v12  ;;  %7267 = vst [vmem:[#allocation33_spill] sm:$0xff] %v5845_v4  ;;  %v913_v12 = vld [vmem:[%s7151_s3 + $0x88] sm:$0xff]  ;;  %v1672_v58 = vunpack.c.l.bf16 %v1237_v5 }
 0x199   :  { %2710 = vmatprep.subr.mxu1 %v2019_v29  ;;  %2817 = vmatprep.subr.mxu0 %v2115_v33  ;;  %v5865_v29 = vmul.f32 %v5810_v11, %v968_v6  ;;  %v965_v33 = vunpack.c.l.bf16 %v5821_v2  ;;  %v5877_v46 = vmul.f32 %v5813_v60, %v967_v30  ;;  %v979_v2 = vunpack.c.h.bf16 %v913_v12  ;;  %v1205_v6 = vld [vmem:[%s7149_s4 + $0x98] ss:$12 sps:$4 sm:$0xff]  }
 0x19a   :  { %2711 = vmatpush2.msra.mxu1 %v2018_v39  ;;  %2818 = vmatpush2.msra.mxu0 %v2114_v7  ;;  %v2193_v39 = vunpack.c.h.bf16 %v1582_v10  ;;  %v1630_v7 = vunpack.c.l.bf16 %v1209_v61  ;;  %v1675_v61 = vunpack.c.h.bf16 %v1237_v5  ;;  %v2190_v30 = vunpack.c.h.bf16 %v1580_v8 }
 0x19b   :  { %2819 = vmatprep.mubr.f32.mxu0 %v5837_v41  ;;  %2713 = vmatmul.mubr.f32.vlgmr.msra.gmra.mxu1 %v5848_v59  ;;  %7268 = vst [vmem:[#allocation34_spill] sm:$0xff] %v5865_v29  ;;  %7269 = vst [vmem:[#allocation35_spill] sm:$0xff] %v5877_v46  ;;  %v1578_v41 = vld [vmem:[%s7149_s4 + $0x960] sm:$0xff] }
 0x19c   :  { %2820 = vmatmul.mubr.f32.vlgmr.msra.gmra.mxu0 %v5845_v4  ;;  %2870 = vmatprep.subr.mxu1 %v2196_v40  ;;  %v2192_v40 = vunpack.c.l.bf16 %v1582_v10  ;;  %v5885_v4 = vld [vmem:[%s7151_s3 + $0xc4] sm:$0xff]  ;;  %v2189_v10 = vunpack.c.l.bf16 %v1580_v8  ;;  %v1624_v8 = vunpack.c.l.bf16 %v1205_v6 }
 0x19d   :  { %4008 = vmatprep.subr.mxu0 %v1681_v56  ;;  %2718 = vmatprep.mubr.f32.mxu1 %v5862_v45  ;;  %v5889_v56 = vmul.f32 %v5827_v22, %v965_v33  ;;  %v5900_v33 = vmul.f32 %v5794_v37, %v979_v2  ;;  %v994_v5 = vunpack.c.h.bf16 %v5885_v4 }
 0x19e   :  { %2871 = vmatpush1.msra.mxu1 %v2195_v16  ;;  %4009 = vmatpush3.msra.mxu0 %v1633_v18  ;;  %v980_v16 = vunpack.c.l.bf16 %v914_v31  ;;  %v1627_v18 = vunpack.c.h.bf16 %v1205_v6  ;;  %v978_v31 = vunpack.c.l.bf16 %v913_v12  ;;  %v1576_v12 = vld [vmem:[%s7149_s4 + $0x954] sm:$0xff]  ;;  %v4487_v1 = vpop.eup %4486 }
 0x19f   :  { %4010 = vmatprep.subr.mxu0 %v1678_v19  ;;  %2825 = vmatprep.mubr.f32.mxu0 %v5865_v29  ;;  %v920_v19 = vld [vmem:[%s7151_s3 + $0xbc] sm:$0xff]  ;;  %v5903_v29 = vmul.f32 %v5810_v11, %v981_v63 }
 0x1a0   :  { %2872 = vmatprep.subr.mxu1 %v2193_v39  ;;  %4011 = vmatpush3.msra.mxu0 %v1630_v7  ;;  %v1233_v39 = vld [vmem:[%s7149_s4 + $0x140] ss:$12 sps:$4 sm:$0xff]   ;;  %v2187_v7 = vunpack.c.h.bf16 %v1578_v41  ;;  %v5911_v2 = vmul.f32 %v5813_v60, %v980_v16  ;;  %v5929_v16 = vld [vmem:[%s7151_s3 + $0xf0] sm:$0xff]  ;;  %v991_v47 = vunpack.c.l.bf16 %v920_v19 }
 0x1a1   :  { %2719 = vmatmul.mubr.f32.gmra.mxu1 %v5889_v56  ;;  %2826 = vmatmul.mubr.f32.gmra.mxu0 %v5877_v46  ;;  %7270 = vst [vmem:[#allocation36_spill] sm:$0xff] %v5903_v29  ;;  %v992_v46 = vunpack.c.h.bf16 %v920_v19  ;;  %v1201_v63 = vld [vmem:[%s7149_s4 + $0x80] ss:$12 sps:$4 sm:$0xff]   ;;  %v1669_v6 = vunpack.c.h.bf16 %v1233_v39  ;;  %v1229_v19 = vld [vmem:[%s7149_s4 + $0x128] ss:$12 sps:$4 sm:$0xff]   ;;  %v1005_v25 = vunpack.c.h.bf16 %v5929_v16 }
 0x1a2   :  { %2873 = vmatpush1.msra.mxu1 %v2192_v40  ;;  %4012 = vmatprep.subr.mxu0 %v1675_v61  ;;  %7271 = vst [vmem:[#allocation37_spill] sm:$0xff] %v5911_v2  ;;  %v2186_v40 = vunpack.c.l.bf16 %v1578_v41  ;;  %v5921_v61 = vmul.f32 %v5827_v22, %v978_v31  ;;  %v2184_v41 = vunpack.c.h.bf16 %v1576_v12  ;;  %v928_v31 = vld [vmem:[%s7151_s3 + $0xf8] sm:$0xff] }
 0x1a3   :  { %2724 = vmatprep.mubr.f32.mxu1 %v5900_v33  ;;  %2874 = vmatprep.subr.mxu1 %v2190_v30  ;;  %v5924_v30 = vmul.f32 %v5810_v11, %v994_v5  ;;  %v868_v5 = vadd.f32 1.0, %v4487_v1  ;;  %v1197_v1 = vld [vmem:[%s7149_s4 + $0x68] ss:$12 sps:$4 sm:$0xff]  }
 0x1a4   :  { %4013 = vmatpush3.msra.mxu0 %v1627_v18  ;;  %2875 = vmatpush1.msra.mxu1 %v2189_v10  ;;  %7272 = vst [vmem:[#allocation38_spill] sm:$0xff] %v5921_v61  ;;  %v1621_v18 = vunpack.c.h.bf16 %v1201_v63  ;;  %v2183_v10 = vunpack.c.l.bf16 %v1576_v12  ;;  %v993_v12 = vunpack.c.l.bf16 %v5885_v4  ;;  %v1572_v4 = vld [vmem:[%s7149_s4 + $0x93c] sm:$0xff] }
 0x1a5   :  { %4014 = vmatprep.subr.mxu0 %v1672_v58  ;;  %2831 = vmatprep.mubr.f32.mxu0 %v5903_v29  ;;  %7273 = vst [vmem:[#allocation39_spill] sm:$0xff] %v5924_v30  ;;  %v1574_v58 = vld [vmem:[%s7149_s4 + $0x948] sm:$0xff]  ;;  %v1618_v29 = vunpack.c.l.bf16 %v1201_v63  ;;  %v5956_v63 = vmul.f32 %v5827_v22, %v991_v47  ;;  %4488 = vrcp.f32 %v868_v5  ;;  %v5971_v47 = vmul.f32 %v5794_v37, %v1005_v25  ;;  %v1570_v25 = vld [vmem:[%s7149_s4 + $0x930] sm:$0xff] }
 0x1a6   :  { %2876 = vmatprep.subr.mxu1 %v2187_v7  ;;  %4015 = vmatpush3.msra.mxu0 %v1624_v8  ;;  %v5940_v7 = vmul.f32 %v5794_v37, %v992_v46  ;;  %v1666_v8 = vunpack.c.l.bf16 %v1233_v39  ;;  %v2181_v46 = vunpack.c.h.bf16 %v1574_v58  ;;  %v1007_v39 = vunpack.c.h.bf16 %v928_v31 }
 0x1a7   :  { %2725 = vmatmul.mubr.f32.gmra.mxu1 %v5921_v61  ;;  %2832 = vmatmul.mubr.f32.gmra.mxu0 %v5911_v2  ;;  %v2180_v2 = vunpack.c.l.bf16 %v1574_v58  ;;  %7276 = vst [vmem:[#allocation42_spill] sm:$0xff] %v5971_v47  ;;  %v2178_v61 = vunpack.c.h.bf16 %v1572_v4  ;;  %v1004_v5 = vunpack.c.l.bf16 %v5929_v16  ;;  %v1612_v16 = vunpack.c.l.bf16 %v1197_v1 }
 0x1a8   :  { %7274 = vst [vmem:[#allocation40_spill] sm:$0xff] %v5940_v7  ;;  %2877 = vmatpush1.msra.mxu1 %v2186_v40  ;;  %4016 = vmatprep.subr.mxu0 %v1669_v6  ;;  %v1663_v40 = vunpack.c.h.bf16 %v1229_v19  ;;  %v5961_v6 = vld [vmem:[%s7151_s3 + $0x124] sm:$0xff]  ;;  %v5979_v58 = vmul.f32 %v5810_v11, %v1007_v39  ;;  %v2174_v39 = vunpack.c.l.bf16 %v1570_v25 }
 0x1a9   :  { %2730 = vmatprep.mubr.f32.mxu1 %v5940_v7  ;;  %2837 = vmatprep.mubr.f32.mxu0 %v5924_v30  ;;  %v5964_v30 = vmul.f32 %v5813_v60, %v993_v12  ;;  %v1615_v7 = vunpack.c.h.bf16 %v1197_v1  ;;  %v1018_v12 = vunpack.c.h.bf16 %v5961_v6 }
 0x1aa   :  { %4017 = vmatpush3.msra.mxu0 %v1621_v18  ;;  %2878 = vmatprep.subr.mxu1 %v2184_v41  ;;  %v935_v18 = vld [vmem:[%s7151_s3 + $0x12c] sm:$0xff]  ;;  %v2177_v41 = vunpack.c.l.bf16 %v1572_v4  ;;  %7277 = vst [vmem:[#allocation43_spill] sm:$0xff] %v5979_v58 }
 0x1ab   :  { %4018 = vmatprep.subr.mxu0 %v1666_v8  ;;  %2879 = vmatpush1.msra.mxu1 %v2183_v10  ;;  %7275 = vst [vmem:[#allocation41_spill] sm:$0xff] %v5964_v30  ;;  %v1225_v10 = vld [vmem:[%s7149_s4 + $0x110] ss:$12 sps:$4 sm:$0xff]   ;;  %v1006_v8 = vunpack.c.l.bf16 %v928_v31  ;;  %v1020_v4 = vunpack.c.h.bf16 %v935_v18  ;;  %v5991_v31 = vmul.f32 %v5827_v22, %v1004_v5 }
 0x1ac   :  { %4019 = vmatpush3.msra.mxu0 %v1618_v29  ;;  %2731 = vmatmul.mubr.f32.gmra.mxu1 %v5956_v63  ;;  %v1660_v29 = vunpack.c.l.bf16 %v1229_v19  ;;  %v1657_v19 = vunpack.c.h.bf16 %v1225_v10  ;;  %v1654_v5 = vunpack.c.l.bf16 %v1225_v10 }
 0x1ad   :  { %2838 = vmatmul.mubr.f32.gmra.mxu0 %v5964_v30  ;;  %2880 = vmatprep.subr.mxu1 %v2181_v46  ;;  %v1193_v46 = vld [vmem:[%s7149_s4 + $0x50] ss:$12 sps:$4 sm:$0xff]   ;;  %7278 = vst [vmem:[#allocation44_spill] sm:$0xff] %v5991_v31  ;;  %v5997_v1 = vmul.f32 %v5813_v60, %v1006_v8  ;;  %v6000_v30 = vmul.f32 %v5794_v37, %v1018_v12  ;;  %v1019_v8 = vunpack.c.l.bf16 %v935_v18  ;;  %v1221_v12 = vld [vmem:[%s7149_s4 + $0xf8] ss:$12 sps:$4 sm:$0xff]  }
 0x1ae   :  { %4020 = vmatprep.subr.mxu0 %v1663_v40  ;;  %2736 = vmatprep.mubr.f32.mxu1 %v5971_v47  ;;  %v1568_v40 = vld [vmem:[%s7149_s4 + $0x924] sm:$0xff]  ;;  %v1606_v47 = vunpack.c.l.bf16 %v1193_v46 }
 0x1af   :  { %2843 = vmatprep.mubr.f32.mxu0 %v5979_v58  ;;  %2881 = vmatpush1.msra.mxu1 %v2180_v2  ;;  %7279 = vst [vmem:[#allocation45_spill] sm:$0xff] %v5997_v1  ;;  %7280 = vst [vmem:[#allocation46_spill] sm:$0xff] %v6000_v30  ;;  %v2175_v2 = vunpack.c.h.bf16 %v1570_v25  ;;  %v1609_v58 = vunpack.c.h.bf16 %v1193_v46  ;;  %v2172_v25 = vunpack.c.h.bf16 %v1568_v40  ;;  %v1189_v18 = vld [vmem:[%s7149_s4 + $0x38] ss:$12 sps:$4 sm:$0xff]   ;;  %v2171_v10 = vunpack.c.l.bf16 %v1568_v40 }
 0x1b0   :  { %4021 = vmatpush3.msra.mxu0 %v1615_v7  ;;  %2882 = vmatprep.subr.mxu1 %v2178_v61  ;;  %v941_v61 = vld [vmem:[%s7151_s3 + $0x158] sm:$0x11]  ;;  %v942_v7 = vld [vmem:[%s7151_s3 + $0x160] sm:$0x11] }
 0x1b1   :  { %4022 = vmatprep.subr.mxu0 %v1660_v29  ;;  %2883 = vmatpush1.msra.mxu1 %v2177_v41  ;;  %v6010_v41 = vmul.f32 %v5810_v11, %v1020_v4  ;;  %v1017_v29 = vunpack.c.l.bf16 %v5961_v6  ;;  %v1033_v4 = vunpack.c.h.bf16 %v942_v7  ;;  %v1566_v6 = vld [vmem:[%s7149_s4 + $0x918] sm:$0xff] }
 0x1b2   :  { %4023 = vmatpush3.msra.mxu0 %v1612_v16  ;;  %2737 = vmatmul.mubr.f32.gmra.mxu1 %v5991_v31  ;;  %v1031_v16 = vunpack.c.h.bf16 %v941_v61  ;;  %v1603_v31 = vunpack.c.h.bf16 %v1189_v18  ;;  %v4489_v40 = vpop.eup %4488 }
 0x1b3   :  { %7281 = vst [vmem:[#allocation47_spill] sm:$0xff] %v6010_v41  ;;  %2844 = vmatmul.mubr.f32.gmra.mxu0 %v5997_v1  ;;  %4024 = vmatprep.subr.mxu0 %v1657_v19  ;;  %v1651_v19 = vunpack.c.h.bf16 %v1221_v12  ;;  %v6026_v46 = vmul.f32 %v5827_v22, %v1017_v29  ;;  %v1564_v1 = vld [vmem:[%s7149_s4 + $0x90c] sm:$0xff]  ;;  %v2168_v29 = vunpack.c.l.bf16 %v1566_v6 }
 0x1b4   :  { %2742 = vmatprep.mubr.f32.mxu1 %v6000_v30  ;;  %2849 = vmatprep.mubr.f32.mxu0 %v6010_v41  ;;  %v6029_v41 = vmul.f32 %v5813_v60, %v1019_v8  ;;  %v2169_v30 = vunpack.c.h.bf16 %v1566_v6  ;;  %v1648_v8 = vunpack.c.l.bf16 %v1221_v12  ;;  %v2165_v12 = vunpack.c.l.bf16 %v1564_v1 }
 0x1b5   :  { %2884 = vmatprep.subr.mxu1 %v2175_v2  ;;  %4025 = vmatpush3.msra.mxu0 %v1609_v58  ;;  %v1030_v2 = vunpack.c.l.bf16 %v941_v61  ;;  %v1032_v58 = vunpack.c.l.bf16 %v942_v7  ;;  %v2166_v61 = vunpack.c.h.bf16 %v1564_v1  ;;  %v1600_v7 = vunpack.c.l.bf16 %v1189_v18  ;;  %v1273_v1 = vld [vmem:[%s7149_s4 + $0x14] ss:$552 sps:$4 sm:$0xff]  }
 0x1b6   :  { %2885 = vmatpush1.msra.mxu1 %v2174_v39  ;;  %4026 = vmatprep.subr.mxu0 %v1654_v5  ;;  %7282 = vst [vmem:[#allocation48_spill] sm:$0xff] %v6029_v41  ;;  %v6037_v39 = vmul.f32 %v5794_v37, %v1031_v16  ;;  %v6040_v5 = vmul.f32 %v5810_v11, %v1033_v4  ;;  %v1185_v37 = vld [vmem:[%s7149_s4 + $0x20] ss:$12 sps:$4 sm:$0xff]   ;;  %v6054_v11 = vld [vmem:[%s7151_s3 + $0x30] ss:$52 sps:$4 sm:$0xff]  }
 0x1b7   :  { %2886 = vmatprep.subr.mxu1 %v2172_v25  ;;  %4027 = vmatpush3.msra.mxu0 %v1606_v47  ;;  %v1217_v47 = vld [vmem:[%s7149_s4 + $0xe0] ss:$12 sps:$4 sm:$0xff]   ;;  %v6059_v16 = vmul.f32 %v5827_v22, %v1030_v2  ;;  %v6062_v4 = vmul.f32 %v5813_v60, %v1032_v58  ;;  %v6065_v18 = vrot.slane %v4489_v40, %v4972_v0  ;;  %v1594_v2 = vunpack.c.l.bf16 %v1185_v37  ;;  %v1303_v40 = vld [vmem:[%s7149_s4 + $0xc8] ss:$552 sps:$4 sm:$0xff]  }
 0x1b8   :  { %2743 = vmatmul.mubr.f32.gmra.mxu1 %v6026_v46  ;;  %2850 = vmatmul.mubr.f32.gmra.mxu0 %v6029_v41  ;;  %7283 = vst [vmem:[#allocation49_spill] sm:$0xff] %v6040_v5  ;;  %v1562_v25 = vld [vmem:[%s7149_s4 + $0x900] sm:$0xff]  ;;  %v1645_v6 = vunpack.c.h.bf16 %v1217_v47  ;;  %v1642_v60 = vunpack.c.l.bf16 %v1217_v47  ;;  %v1271_v47 = vld [vmem:[%s7149_s4 + $0x8] ss:$552 sps:$4 sm:$0xff]  }
 0x1b9   :  { %2887 = vmatpush1.msra.mxu1 %v2171_v10  ;;  %4028 = vmatprep.subr.mxu0 %v1651_v19  ;;  %7284 = vst [vmem:[#allocation50_spill] sm:$0xff] %v6062_v4  ;;  %v2163_v10 = vunpack.c.h.bf16 %v1562_v25  ;;  %v1597_v19 = vunpack.c.h.bf16 %v1185_v37  ;;  %v2162_v22 = vunpack.c.l.bf16 %v1562_v25  ;;  %v1591_v25 = vunpack.c.l.bf16 %v1273_v1  ;;  %v1301_v37 = vld [vmem:[%s7149_s4 + $0x2e4] ss:$408 sps:$4 sm:$0xff]  }
 0x1ba   :  { %2748 = vmatprep.mubr.f32.mxu1 %v6037_v39  ;;  %2855 = vmatprep.mubr.f32.mxu0 %v6040_v5 }
 0x1bb   :  { %2888 = vmatprep.subr.mxu1 %v2169_v30  ;;  %4029 = vmatpush3.msra.mxu0 %v1603_v31  ;;  %v1305_v30 = vld [vmem:[%s7149_s4 + $0xd4] ss:$552 sps:$4 sm:$0xff]   ;;  %v956_v31 = vunpack.c.l.bf16 %v6054_v11 }
 0x1bc   :  { %2889 = vmatpush1.msra.mxu1 %v2168_v29  ;;  %4030 = vmatprep.subr.mxu0 %v1648_v8  ;;  %v1777_v58 = vunpack.c.h.bf16 %v1305_v30  ;;  %v1639_v8 = vunpack.c.l.bf16 %v1305_v30 }
 0x1bd   :  { %2890 = vmatprep.subr.mxu1 %v2166_v61  ;;  %4031 = vmatpush3.msra.mxu0 %v1600_v7  ;;  %v6080_v29 = vmul.f32 %v6065_v18, %v956_v31  ;;  %v1729_v7 = vunpack.c.h.bf16 %v1273_v1  ;;  %v1269_v1 = vld [vmem:[%s7149_s4 + $0x224] ss:$180 sps:$4 sm:$0xff]  }
 0x1be   :  { %2749 = vmatmul.mubr.f32.gmra.mxu1 %v6059_v16  ;;  %2856 = vmatmul.mubr.f32.gmra.mxu0 %v6062_v4  ;;  %v1771_v4 = vunpack.c.l.bf16 %v1301_v37 }
 0x1bf   :  { %2891 = vmatpush1.msra.mxu1 %v2165_v12  ;;  %4032 = vmatprep.subr.mxu0 %v1645_v6  ;;  %v7285_v6 = vmov 0.0  }
 0x1c0   :  { %2892 = vmatprep.subr.mxu1 %v2163_v10  ;;  %4033 = vmatpush3.msra.mxu0 %v1597_v19  ;;  %v2286_v61 = vpop.f32.mrf.mxu1  ;;  %v1774_v10 = vunpack.c.h.bf16 %v1303_v40  ;;  %v1636_v19 = vunpack.c.l.bf16 %v1303_v40 }
 0x1c1   :  { %3033 = vmatprep.mubr.f32.mxu0 %v5026_v49  ;;  %2893 = vmatpush1.msra.mxu1 %v2162_v22  ;;  %v2393_v12 = vpop.f32.mrf.mxu0  ;;  %v1726_v49 = vunpack.c.h.bf16 %v1271_v47  ;;  %v969_v22 = vunpack.c.h.bf16 %v6054_v11  ;;  %v1723_v11 = vunpack.c.l.bf16 %v1269_v1 }
 0x1c2   :  { %4034 = vmatprep.subr.mxu0 %v1642_v60  ;;  %2926 = vmatprep.mubr.f32.mxu1 %v7285_v6  ;;  %v6090_v30 = vadd.f32 %v2393_v12, %v2286_v61  ;;  %v2288_v31 = vpop.f32.mrf.mxu1  ;;  %v1588_v60 = vunpack.c.l.bf16 %v1271_v47  ;;  %v1367_v61 = vld [vmem:[%s7149_s4 + $0x2cc] ss:$420 sps:$4 sm:$0xff]  }
 0x1c3   :  { %4035 = vmatpush3.msra.mxu0 %v1594_v2  ;;  %4061 = vmatprep.subr.mxu1 %v1777_v58  ;;  %v2395_v0 = vpop.f32.mrf.mxu0  ;;  %v1337_v2 = vld [vmem:[%s7149_s4 + $0x218] ss:$420 sps:$4 sm:$0xff]   ;;  %v1873_v58 = vunpack.c.h.bf16 %v1301_v37  ;;  %v6113_v47 = vmul.f32 %v6065_v18, %v969_v22 }
 0x1c4   :  { %3984 = vmatmul.mubr.msk.f32.vlgmr.msra.gmra.mxu1 %vm2198_vm3, %v6080_v29  ;;  %4036 = vmatprep.subr.mxu0 %v1639_v8  ;;  %v6098_v40 = vadd.f32 %v2395_v0, %v2288_v31  ;;  %v6109_v8 = vld [vmem:[%s7151_s3 + $0x98] ss:$52 sps:$4 sm:$0xff]   ;;  %v1825_v12 = vunpack.c.h.bf16 %v1337_v2 }
 0x1c5   :  { %4062 = vmatpush3.msra.mxu1 %v1729_v7  ;;  %4037 = vmatpush3.msra.mxu0 %v1591_v25  ;;  %v1768_v7 = vunpack.c.h.bf16 %v1269_v1  ;;  %v1335_v25 = vld [vmem:[%s7149_s4 + $0x20c] ss:$420 sps:$4 sm:$0xff]   ;;  %v982_v22 = vunpack.c.l.bf16 %v6109_v8  ;;  %v1365_v1 = vld [vmem:[%s7149_s4 + $0x2c0] ss:$420 sps:$4 sm:$0xff]  }
 0x1c6   :  { %4063 = vmatprep.subr.mxu1 %v1774_v10  ;;  %4038 = vmatprep.subr.mxu0 %v1636_v19  ;;  %v2292_v0 = vpop.f32.mrf.mxu1  ;;  %v1720_v10 = vunpack.c.l.bf16 %v1337_v2 }
 0x1c7   :  { %4064 = vmatpush3.msra.mxu1 %v1726_v49  ;;  %2932 = vmatprep.mubr.f32.mxu1 %v7285_v6  ;;  %v2399_v37 = vpop.f32.mrf.mxu0  ;;  %v1870_v49 = vunpack.c.h.bf16 %v1367_v61 }
 0x1c8   :  { %4039 = vmatpush3.msra.mxu0 %v1588_v60  ;;  %4065 = vmatprep.subr.mxu1 %v1771_v4  ;;  %v6118_v19 = vadd.f32 %v2399_v37, %v2292_v0  ;;  %v2294_v31 = vpop.f32.mrf.mxu1  ;;  %v1765_v4 = vunpack.c.l.bf16 %v1367_v61  ;;  %v1822_v60 = vunpack.c.h.bf16 %v1335_v25  ;;  %v1717_v0 = vunpack.c.l.bf16 %v1335_v25  ;;  %v1331_v61 = vld [vmem:[%s7149_s4 + $0x1f4] ss:$420 sps:$4 sm:$0xff]  }
 0x1c9   :  { %3985 = vmatmul.mubr.msk.f32.gmra.mxu1 %vm2198_vm3, %v6113_v47  ;;  %3034 = vmatmul.mubr.f32.vlgmr.msra.gmra.mxu0 %v5037_v55  ;;  %v2401_v5 = vpop.f32.mrf.mxu0  ;;  %v1333_v55 = vld [vmem:[%s7149_s4 + $0x200] ss:$420 sps:$4 sm:$0xff]   ;;  %v1867_v37 = vunpack.c.h.bf16 %v1365_v1 }
 0x1ca   :  { %4066 = vmatpush3.msra.mxu1 %v1723_v11  ;;  %4114 = vmatprep.subr.mxu0 %v1873_v58  ;;  %v6127_v2 = vadd.f32 %v2401_v5, %v2294_v31  ;;  %v1363_v11 = vld [vmem:[%s7149_s4 + $0x2b4] ss:$420 sps:$4 sm:$0xff]   ;;  %v6138_v5 = vmul.f32 %v6065_v18, %v982_v22  ;;  %v1819_v25 = vunpack.c.h.bf16 %v1333_v55  ;;  %v995_v22 = vunpack.c.h.bf16 %v6109_v8 }
 0x1cb   :  { %3038 = vmatprep.mubr.f32.mxu0 %v5049_v57  ;;  %4067 = vmatprep.subr.mxu1 %v1768_v7  ;;  %v1762_v57 = vunpack.c.l.bf16 %v1365_v1  ;;  %v1361_v1 = vld [vmem:[%s7149_s4 + $0x2a8] ss:$420 sps:$4 sm:$0xff]   ;;  %v1711_v8 = vunpack.c.l.bf16 %v1331_v61 }
 0x1cc   :  { %4115 = vmatpush3.msra.mxu0 %v1825_v12  ;;  %4068 = vmatpush3.msra.mxu1 %v1720_v10  ;;  %v2298_v58 = vpop.f32.mrf.mxu1  ;;  %7286 = vst [vmem:[#allocation51_spill] sm:$0xff] %v6138_v5  ;;  %v1714_v12 = vunpack.c.l.bf16 %v1333_v55 }
 0x1cd   :  { %4116 = vmatprep.subr.mxu0 %v1870_v49  ;;  %2938 = vmatprep.mubr.f32.mxu1 %v7285_v6  ;;  %v2405_v7 = vpop.f32.mrf.mxu0  ;;  %v1864_v49 = vunpack.c.h.bf16 %v1363_v11 }
 0x1ce   :  { %4069 = vmatprep.subr.mxu1 %v1765_v4  ;;  %4117 = vmatpush3.msra.mxu0 %v1822_v60  ;;  %v6143_v10 = vadd.f32 %v2405_v7, %v2298_v58  ;;  %v2300_v31 = vpop.f32.mrf.mxu1  ;;  %v1759_v4 = vunpack.c.l.bf16 %v1363_v11  ;;  %v1816_v60 = vunpack.c.h.bf16 %v1331_v61  ;;  %v1861_v58 = vunpack.c.h.bf16 %v1361_v1 }
 0x1cf   :  { %3986 = vmatmul.mubr.msk.f32.gmra.mxu1 %vm2198_vm3, %v6138_v5  ;;  %3039 = vmatmul.mubr.f32.gmra.mxu0 %v5072_v20  ;;  %v2407_v41 = vpop.f32.mrf.mxu0  ;;  %v1329_v20 = vld [vmem:[%s7149_s4 + $0x1e8] ss:$420 sps:$4 sm:$0xff]   ;;  %v1756_v11 = vunpack.c.l.bf16 %v1361_v1  ;;  %v1357_v1 = vld [vmem:[%s7149_s4 + $0x290] ss:$420 sps:$4 sm:$0xff]  }
 0x1d0   :  { %4070 = vmatpush3.msra.mxu1 %v1717_v0  ;;  %4118 = vmatprep.subr.mxu0 %v1867_v37  ;;  %v6152_v55 = vadd.f32 %v2407_v41, %v2300_v31  ;;  %v1359_v0 = vld [vmem:[%s7149_s4 + $0x29c] ss:$420 sps:$4 sm:$0xff]   ;;  %v1813_v7 = vunpack.c.h.bf16 %v1329_v20 }
 0x1d1   :  { %3043 = vmatprep.mubr.f32.mxu0 %v5090_v28  ;;  %4071 = vmatprep.subr.mxu1 %v1762_v57  ;;  %v6164_v41 = vld [vmem:[%s7151_s3 + $0x100] ss:$52 sps:$4 sm:$0xff]   ;;  %v6168_v28 = vmul.f32 %v6065_v18, %v995_v22 }
 0x1d2   :  { %4119 = vmatpush3.msra.mxu0 %v1819_v25  ;;  %4072 = vmatpush3.msra.mxu1 %v1714_v12  ;;  %v2304_v37 = vpop.f32.mrf.mxu1  ;;  %v1327_v57 = vld [vmem:[%s7149_s4 + $0x1dc] ss:$420 sps:$4 sm:$0xff]   ;;  %v1708_v25 = vunpack.c.l.bf16 %v1329_v20  ;;  %v1008_v22 = vunpack.c.l.bf16 %v6164_v41 }
 0x1d3   :  { %4120 = vmatprep.subr.mxu0 %v1864_v49  ;;  %2944 = vmatprep.mubr.f32.mxu1 %v7285_v6  ;;  %7287 = vst [vmem:[#allocation52_spill] sm:$0xff] %v6168_v28  ;;  %v2411_v61 = vpop.f32.mrf.mxu0  ;;  %v1858_v49 = vunpack.c.h.bf16 %v1359_v0 }
 0x1d4   :  { %4073 = vmatprep.subr.mxu1 %v1759_v4  ;;  %4121 = vmatpush3.msra.mxu0 %v1816_v60  ;;  %v6173_v12 = vadd.f32 %v2411_v61, %v2304_v37  ;;  %v2306_v31 = vpop.f32.mrf.mxu1  ;;  %v1753_v4 = vunpack.c.l.bf16 %v1359_v0  ;;  %v1810_v60 = vunpack.c.h.bf16 %v1327_v57  ;;  %v1705_v37 = vunpack.c.l.bf16 %v1327_v57  ;;  %v1323_v0 = vld [vmem:[%s7149_s4 + $0x1c4] ss:$420 sps:$4 sm:$0xff]  }
 0x1d5   :  { %3987 = vmatmul.mubr.msk.f32.gmra.mxu1 %vm2198_vm3, %v6168_v28  ;;  %3044 = vmatmul.mubr.f32.gmra.mxu0 %v5113_v48  ;;  %v2413_v5 = vpop.f32.mrf.mxu0  ;;  %v1325_v48 = vld [vmem:[%s7149_s4 + $0x1d0] ss:$420 sps:$4 sm:$0xff]   ;;  %v1855_v61 = vunpack.c.h.bf16 %v1357_v1 }
 0x1d6   :  { %4074 = vmatpush3.msra.mxu1 %v1711_v8  ;;  %4122 = vmatprep.subr.mxu0 %v1861_v58  ;;  %v6182_v20 = vadd.f32 %v2413_v5, %v2306_v31  ;;  %v1355_v8 = vld [vmem:[%s7149_s4 + $0x284] ss:$420 sps:$4 sm:$0xff]   ;;  %v6193_v5 = vmul.f32 %v6065_v18, %v1008_v22  ;;  %v1807_v57 = vunpack.c.h.bf16 %v1325_v48  ;;  %v1021_v22 = vunpack.c.h.bf16 %v6164_v41 }
 0x1d7   :  { %3048 = vmatprep.mubr.f32.mxu0 %v5129_v38  ;;  %4075 = vmatprep.subr.mxu1 %v1756_v11  ;;  %v1750_v38 = vunpack.c.l.bf16 %v1357_v1  ;;  %v1353_v1 = vld [vmem:[%s7149_s4 + $0x278] ss:$420 sps:$4 sm:$0xff]   ;;  %v1699_v41 = vunpack.c.l.bf16 %v1323_v0 }
 0x1d8   :  { %4123 = vmatpush3.msra.mxu0 %v1813_v7  ;;  %4076 = vmatpush3.msra.mxu1 %v1708_v25  ;;  %v2310_v58 = vpop.f32.mrf.mxu1  ;;  %7288 = vst [vmem:[#allocation53_spill] sm:$0xff] %v6193_v5  ;;  %v1702_v7 = vunpack.c.l.bf16 %v1325_v48 }
 0x1d9   :  { %4124 = vmatprep.subr.mxu0 %v1858_v49  ;;  %2950 = vmatprep.mubr.f32.mxu1 %v7285_v6  ;;  %v2417_v11 = vpop.f32.mrf.mxu0  ;;  %v1852_v49 = vunpack.c.h.bf16 %v1355_v8 }
 0x1da   :  { %4077 = vmatprep.subr.mxu1 %v1753_v4  ;;  %4125 = vmatpush3.msra.mxu0 %v1810_v60  ;;  %v6198_v25 = vadd.f32 %v2417_v11, %v2310_v58  ;;  %v2312_v31 = vpop.f32.mrf.mxu1  ;;  %v1747_v4 = vunpack.c.l.bf16 %v1355_v8  ;;  %v1804_v60 = vunpack.c.h.bf16 %v1323_v0  ;;  %v1849_v58 = vunpack.c.h.bf16 %v1353_v1 }
 0x1db   :  { %3988 = vmatmul.mubr.msk.f32.gmra.mxu1 %vm2198_vm3, %v6193_v5  ;;  %3049 = vmatmul.mubr.f32.gmra.mxu0 %v5154_v24  ;;  %v2419_v28 = vpop.f32.mrf.mxu0  ;;  %v1321_v24 = vld [vmem:[%s7149_s4 + $0x1b8] ss:$420 sps:$4 sm:$0xff]   ;;  %v1744_v8 = vunpack.c.l.bf16 %v1353_v1  ;;  %v1349_v1 = vld [vmem:[%s7149_s4 + $0x260] ss:$420 sps:$4 sm:$0xff]  }
 0x1dc   :  { %4078 = vmatpush3.msra.mxu1 %v1705_v37  ;;  %4126 = vmatprep.subr.mxu0 %v1855_v61  ;;  %v6207_v48 = vadd.f32 %v2419_v28, %v2312_v31  ;;  %v1351_v37 = vld [vmem:[%s7149_s4 + $0x26c] ss:$420 sps:$4 sm:$0xff]   ;;  %v943_v28 = vld [vmem:[%s7151_s3 + $0x168] sm:$0x1]  ;;  %v1801_v11 = vunpack.c.h.bf16 %v1321_v24 }
 0x1dd   :  { %3053 = vmatprep.mubr.f32.mxu0 %v5171_v36  ;;  %4079 = vmatprep.subr.mxu1 %v1750_v38  ;;  %v6221_v36 = vmul.f32 %v6065_v18, %v1021_v22  ;;  %v1319_v38 = vld [vmem:[%s7149_s4 + $0x1ac] ss:$420 sps:$4 sm:$0xff]   ;;  %v1034_v22 = vunpack.c.l.bf16 %v943_v28 }
 0x1de   :  { %4127 = vmatpush3.msra.mxu0 %v1807_v57  ;;  %4080 = vmatpush3.msra.mxu1 %v1702_v7  ;;  %v2316_v61 = vpop.f32.mrf.mxu1  ;;  %v1696_v57 = vunpack.c.l.bf16 %v1321_v24  ;;  %v1693_v28 = vunpack.c.l.bf16 %v1319_v38 }
 0x1df   :  { %4128 = vmatprep.subr.mxu0 %v1852_v49  ;;  %2956 = vmatprep.mubr.f32.mxu1 %v7285_v6  ;;  %v2423_v0 = vpop.f32.mrf.mxu0  ;;  %v1846_v49 = vunpack.c.h.bf16 %v1351_v37 }
 0x1e0   :  { %4081 = vmatprep.subr.mxu1 %v1747_v4  ;;  %4129 = vmatpush3.msra.mxu0 %v1804_v60  ;;  %v6226_v7 = vadd.f32 %v2423_v0, %v2316_v61  ;;  %v2318_v31 = vpop.f32.mrf.mxu1  ;;  %v1741_v4 = vunpack.c.l.bf16 %v1351_v37  ;;  %v1798_v60 = vunpack.c.h.bf16 %v1319_v38  ;;  %v1843_v61 = vunpack.c.h.bf16 %v1349_v1  ;;  %v1315_v37 = vld [vmem:[%s7149_s4 + $0x194] ss:$420 sps:$4 sm:$0xff]  }
 0x1e1   :  { %3989 = vmatmul.mubr.msk.f32.gmra.mxu1 %vm2198_vm3, %v6221_v36  ;;  %3054 = vmatmul.mubr.f32.gmra.mxu0 %v5199_v15  ;;  %v2425_v5 = vpop.f32.mrf.mxu0  ;;  %v1317_v15 = vld [vmem:[%s7149_s4 + $0x1a0] ss:$420 sps:$4 sm:$0xff]  }
 0x1e2   :  { %4082 = vmatpush3.msra.mxu1 %v1699_v41  ;;  %4130 = vmatprep.subr.mxu0 %v1849_v58  ;;  %v6234_v24 = vadd.f32 %v2425_v5, %v2318_v31  ;;  %v1347_v41 = vld [vmem:[%s7149_s4 + $0x254] ss:$420 sps:$4 sm:$0xff]   ;;  %v6245_v5 = vmul.f32 %v6065_v18, %v1034_v22  ;;  %v1795_v38 = vunpack.c.h.bf16 %v1317_v15  ;;  %v1345_v31 = vld [vmem:[%s7149_s4 + $0x248] ss:$420 sps:$4 sm:$0xff]  }
 0x1e3   :  { %3058 = vmatprep.mubr.f32.mxu0 %v5217_v35  ;;  %4083 = vmatprep.subr.mxu1 %v1744_v8  ;;  %v1738_v35 = vunpack.c.l.bf16 %v1349_v1  ;;  %v1840_v18 = vunpack.c.h.bf16 %v1347_v41  ;;  %v1735_v22 = vunpack.c.l.bf16 %v1347_v41  ;;  %v1792_v1 = vunpack.c.h.bf16 %v1315_v37  ;;  %v1311_v41 = vld [vmem:[%s7149_s4 + $0x320] ss:$180 sps:$4 sm:$0xff]  }
 0x1e4   :  { %4131 = vmatpush3.msra.mxu0 %v1801_v11  ;;  %4084 = vmatpush3.msra.mxu1 %v1696_v57  ;;  %v2322_v58 = vpop.f32.mrf.mxu1  ;;  %v1690_v57 = vunpack.c.l.bf16 %v1317_v15  ;;  %v1343_v15 = vld [vmem:[%s7149_s4 + $0x3e0] ss:$540 sps:$4 sm:$0xff]  }
 0x1e5   :  { %4132 = vmatprep.subr.mxu0 %v1846_v49  ;;  %2962 = vmatprep.mubr.f32.mxu1 %v7285_v6  ;;  %v2429_v8 = vpop.f32.mrf.mxu0 }
 0x1e6   :  { %4085 = vmatprep.subr.mxu1 %v1741_v4  ;;  %4133 = vmatpush3.msra.mxu0 %v1798_v60  ;;  %v6250_v0 = vadd.f32 %v2429_v8, %v2322_v58  ;;  %v2324_v11 = vpop.f32.mrf.mxu1  ;;  %v1313_v4 = vld [vmem:[%s7149_s4 + $0x188] ss:$420 sps:$4 sm:$0xff]  }
 0x1e7   :  { %3990 = vmatmul.mubr.msk.f32.gmra.mxu1 %vm2198_vm3, %v6245_v5  ;;  %3059 = vmatmul.mubr.f32.gmra.mxu0 %v5243_v14  ;;  %v2431_v49 = vpop.f32.mrf.mxu0  ;;  %v1687_v14 = vunpack.c.l.bf16 %v1315_v37  ;;  %v1789_v58 = vunpack.c.h.bf16 %v1313_v4  ;;  %v1401_v37 = vld [vmem:[%s7149_s4 + $0x314] ss:$552 sps:$4 sm:$0xff]   ;;  %v1431_v8 = vld [vmem:[%s7149_s4 + $0x3c8] ss:$552 sps:$4 sm:$0xff]  }
 0x1e8   :  { %4086 = vmatpush3.msra.mxu1 %v1693_v28  ;;  %4134 = vmatprep.subr.mxu0 %v1843_v61  ;;  %v6261_v60 = vadd.f32 %v2431_v49, %v2324_v11  ;;  %v1837_v28 = vunpack.c.h.bf16 %v1345_v31  ;;  %v1732_v61 = vunpack.c.l.bf16 %v1345_v31  ;;  %v1399_v11 = vld [vmem:[%s7149_s4 + $0x308] ss:$552 sps:$4 sm:$0xff]   ;;  %v1966_v31 = vunpack.c.h.bf16 %v1431_v8  ;;  %v1429_v49 = vld [vmem:[%s7149_s4 + $0x5e4] ss:$408 sps:$4 sm:$0xff]  }
 0x1e9   :  { %3063 = vmatprep.mubr.f32.mxu0 %v5257_v34  ;;  %4087 = vmatprep.subr.mxu1 %v1738_v35  ;;  %v1684_v34 = vunpack.c.l.bf16 %v1313_v4  ;;  %v1834_v35 = vunpack.c.l.bf16 %v1343_v15  ;;  %v1397_v4 = vld [vmem:[%s7149_s4 + $0x524] ss:$180 sps:$4 sm:$0xff]  }
 0x1ea   :  { %3133 = vmatprep.mubr.f32.mxu1 %v5033_v53  ;;  %4135 = vmatpush3.msra.mxu0 %v1795_v38  ;;  %v1786_v53 = vunpack.c.l.bf16 %v1311_v41  ;;  %v1969_v38 = vunpack.c.h.bf16 %v1343_v15  ;;  %v1465_v15 = vld [vmem:[%s7149_s4 + $0x518] ss:$420 sps:$4 sm:$0xff]  }
 0x1eb   :  { %4088 = vmatpush3.msra.mxu1 %v1690_v57  ;;  %4136 = vmatprep.subr.mxu0 %v1840_v18  ;;  %v1831_v57 = vunpack.c.h.bf16 %v1311_v41  ;;  %v1921_v18 = vunpack.c.h.bf16 %v1401_v37  ;;  %v2017_v41 = vunpack.c.h.bf16 %v1465_v15 }
 0x1ec   :  { %4089 = vmatprep.subr.mxu1 %v1735_v22  ;;  %4137 = vmatpush3.msra.mxu0 %v1792_v1  ;;  %v1828_v22 = vunpack.c.l.bf16 %v1431_v8  ;;  %v1918_v1 = vunpack.c.h.bf16 %v1399_v11  ;;  %v1461_v8 = vld [vmem:[%s7149_s4 + $0x500] ss:$420 sps:$4 sm:$0xff]  }
 0x1ed   :  { %3064 = vmatmul.mubr.f32.gmra.mxu0 %v5275_v62  ;;  %4090 = vmatpush3.msra.mxu1 %v1687_v14  ;;  %v1783_v62 = vunpack.c.l.bf16 %v1401_v37  ;;  %v1963_v14 = vunpack.c.l.bf16 %v1429_v49 }
 0x1ee   :  { %4138 = vmatprep.subr.mxu0 %v1837_v28  ;;  %4091 = vmatprep.subr.mxu1 %v1732_v61  ;;  %v1495_v28 = vld [vmem:[%s7149_s4 + $0x5cc] ss:$420 sps:$4 sm:$0xff]   ;;  %v2065_v61 = vunpack.c.h.bf16 %v1429_v49 }
 0x1ef   :  { %4139 = vmatpush3.msra.mxu0 %v1789_v58  ;;  %3233 = vmatprep.mubr.f32.mxu0 %v5413_v43  ;;  %v1780_v43 = vunpack.c.l.bf16 %v1399_v11  ;;  %v1463_v58 = vld [vmem:[%s7149_s4 + $0x50c] ss:$420 sps:$4 sm:$0xff]   ;;  %v1957_v37 = vunpack.c.l.bf16 %v1495_v28 }
 0x1f0   :  { %4092 = vmatpush3.msra.mxu1 %v1684_v34  ;;  %4140 = vmatprep.subr.mxu0 %v1834_v35  ;;  %v1912_v34 = vunpack.c.l.bf16 %v1465_v15  ;;  %v2062_v35 = vunpack.c.h.bf16 %v1495_v28  ;;  %v7290_v15 = vld [vmem:[#allocation7_spill] sm:$0xff] }
 0x1f1   :  { %3134 = vmatmul.mubr.f32.vlgmr.msra.gmra.mxu1 %v5030_v51  ;;  %4141 = vmatpush3.msra.mxu0 %v1786_v53  ;;  %v1915_v51 = vunpack.c.l.bf16 %v1397_v4  ;;  %v2014_v53 = vunpack.c.h.bf16 %v1463_v58 }
 0x1f2   :  { %4167 = vmatprep.subr.mxu1 %v1969_v38  ;;  %3138 = vmatprep.mubr.f32.mxu1 %v5056_v9  ;;  %v1960_v9 = vunpack.c.h.bf16 %v1397_v4  ;;  %v7289_v4 = vld [vmem:[#allocation6_spill] sm:$0xff] }
 0x1f3   :  { %4142 = vmatprep.subr.mxu0 %v1831_v57  ;;  %4168 = vmatpush3.msra.mxu1 %v1921_v18  ;;  %v1459_v57 = vld [vmem:[%s7149_s4 + $0x4f4] ss:$420 sps:$4 sm:$0xff]   ;;  %v1906_v18 = vunpack.c.l.bf16 %v1461_v8 }
 0x1f4   :  { %4143 = vmatpush3.msra.mxu0 %v1783_v62  ;;  %4169 = vmatprep.subr.mxu1 %v1966_v31  ;;  %v2008_v49 = vunpack.c.h.bf16 %v1459_v57 }
 0x1f5   :  { %4144 = vmatprep.subr.mxu0 %v1828_v22  ;;  %4170 = vmatpush3.msra.mxu1 %v1918_v1  ;;  %v1457_v22 = vld [vmem:[%s7149_s4 + $0x4e8] ss:$420 sps:$4 sm:$0xff]  }
 0x1f6   :  { %3139 = vmatmul.mubr.f32.gmra.mxu1 %v5069_v17  ;;  %4145 = vmatpush3.msra.mxu0 %v1780_v43  ;;  %v1493_v17 = vld [vmem:[%s7149_s4 + $0x5c0] ss:$420 sps:$4 sm:$0xff]  }
 0x1f7   :  { %4171 = vmatprep.subr.mxu1 %v1963_v14  ;;  %3143 = vmatprep.mubr.f32.mxu1 %v5094_v32  ;;  %v1909_v32 = vunpack.c.l.bf16 %v1463_v58  ;;  %v2059_v38 = vunpack.c.h.bf16 %v1493_v17  ;;  %v1954_v11 = vunpack.c.l.bf16 %v1493_v17  ;;  %v1455_v14 = vld [vmem:[%s7149_s4 + $0x4dc] ss:$420 sps:$4 sm:$0xff]   ;;  %v1483_v17 = vld [vmem:[%s7149_s4 + $0x584] ss:$420 sps:$4 sm:$0xff]  }
 0x1f8   :  { %3234 = vmatmul.mubr.f32.vlgmr.msra.gmra.mxu0 %v5437_v21  ;;  %4172 = vmatpush3.msra.mxu1 %v1915_v51  ;;  %v1491_v21 = vld [vmem:[%s7149_s4 + $0x5b4] ss:$420 sps:$4 sm:$0xff]   ;;  %v1900_v51 = vunpack.c.l.bf16 %v1457_v22 }
 0x1f9   :  { %4220 = vmatprep.subr.mxu0 %v2065_v61  ;;  %3238 = vmatprep.mubr.f32.mxu0 %v5446_v27  ;;  %v2011_v27 = vunpack.c.h.bf16 %v1461_v8  ;;  %v2056_v62 = vunpack.c.h.bf16 %v1491_v21  ;;  %v1951_v31 = vunpack.c.l.bf16 %v1491_v21  ;;  %v7291_v61 = vld [vmem:[#allocation19_spill] sm:$0xff]  ;;  %v7292_v58 = vld [vmem:[#allocation21_spill] sm:$0xff]  ;;  %v7293_v8 = vld [vmem:[#allocation8_spill] sm:$0xff] }
 0x1fa   :  { %4173 = vmatprep.subr.mxu1 %v1960_v9  ;;  %4221 = vmatpush3.msra.mxu0 %v2017_v41  ;;  %v1485_v41 = vld [vmem:[%s7149_s4 + $0x590] ss:$420 sps:$4 sm:$0xff]  }
 0x1fb   :  { %4174 = vmatpush3.msra.mxu1 %v1912_v34  ;;  %4222 = vmatprep.subr.mxu0 %v2062_v35  ;;  %v2002_v34 = vunpack.c.h.bf16 %v1455_v14  ;;  %v1453_v35 = vld [vmem:[%s7149_s4 + $0x4d0] ss:$420 sps:$4 sm:$0xff]  }
 0x1fc   :  { %3144 = vmatmul.mubr.f32.gmra.mxu1 %v5107_v44  ;;  %4175 = vmatprep.subr.mxu1 %v1957_v37  ;;  %v1489_v44 = vld [vmem:[%s7149_s4 + $0x5a8] ss:$420 sps:$4 sm:$0xff]   ;;  %v1897_v37 = vunpack.c.l.bf16 %v1455_v14  ;;  %v1999_v21 = vunpack.c.h.bf16 %v1453_v35 }
 0x1fd   :  { %4223 = vmatpush3.msra.mxu0 %v2014_v53  ;;  %3148 = vmatprep.mubr.f32.mxu1 %v5122_v54  ;;  %v1903_v54 = vunpack.c.l.bf16 %v1459_v57  ;;  %v2053_v1 = vunpack.c.h.bf16 %v1489_v44  ;;  %v1948_v43 = vunpack.c.l.bf16 %v1489_v44  ;;  %v2047_v53 = vunpack.c.h.bf16 %v1485_v41  ;;  %v7296_v44 = vld [vmem:[#allocation24_spill] sm:$0xff] }
 0x1fe   :  { %3239 = vmatmul.mubr.f32.gmra.mxu0 %v5472_v3  ;;  %4176 = vmatpush3.msra.mxu1 %v1909_v32  ;;  %v1487_v3 = vld [vmem:[%s7149_s4 + $0x59c] ss:$420 sps:$4 sm:$0xff]   ;;  %v1942_v32 = vunpack.c.l.bf16 %v1485_v41  ;;  %v2044_v57 = vunpack.c.h.bf16 %v1483_v17 }
 0x1ff   :  { %4224 = vmatprep.subr.mxu0 %v2059_v38  ;;  %3243 = vmatprep.mubr.f32.mxu0 %v5485_v50  ;;  %v2005_v50 = vunpack.c.h.bf16 %v1457_v22  ;;  %v2050_v28 = vunpack.c.h.bf16 %v1487_v3  ;;  %v1945_v9 = vunpack.c.l.bf16 %v1487_v3  ;;  %v1451_v38 = vld [vmem:[%s7149_s4 + $0x4c4] ss:$420 sps:$4 sm:$0xff]   ;;  %v1449_v22 = vld [vmem:[%s7149_s4 + $0x4b8] ss:$420 sps:$4 sm:$0xff]   ;;  %v1479_v3 = vld [vmem:[%s7149_s4 + $0x56c] ss:$420 sps:$4 sm:$0xff]  }
 0x200   :  { %4177 = vmatprep.subr.mxu1 %v1954_v11  ;;  %4225 = vmatpush3.msra.mxu0 %v2011_v27  ;;  %v7294_v11 = vld [vmem:[#allocation9_spill] sm:$0xff]  ;;  %v1894_v27 = vunpack.c.l.bf16 %v1453_v35  ;;  %v1993_v14 = vunpack.c.h.bf16 %v1449_v22  ;;  %v2038_v41 = vunpack.c.h.bf16 %v1479_v3  ;;  %v1933_v35 = vunpack.c.l.bf16 %v1479_v3 }
 0x201   :  { %4178 = vmatpush3.msra.mxu1 %v1906_v18  ;;  %4226 = vmatprep.subr.mxu0 %v2056_v62  ;;  %v7295_v18 = vld [vmem:[#allocation22_spill] sm:$0xff]  ;;  %v1939_v62 = vunpack.c.l.bf16 %v1483_v17 }
 0x202   :  { %3149 = vmatmul.mubr.f32.gmra.mxu1 %v7289_v4  ;;  %4179 = vmatprep.subr.mxu1 %v1951_v31  ;;  %v1481_v31 = vld [vmem:[%s7149_s4 + $0x578] ss:$420 sps:$4 sm:$0xff]  }
 0x203   :  { %4227 = vmatpush3.msra.mxu0 %v2008_v49  ;;  %3153 = vmatprep.mubr.f32.mxu1 %v7290_v15  ;;  %v1996_v49 = vunpack.c.h.bf16 %v1451_v38  ;;  %v1447_v15 = vld [vmem:[%s7149_s4 + $0x4ac] ss:$420 sps:$4 sm:$0xff]  }
 0x204   :  { %3244 = vmatmul.mubr.f32.gmra.mxu0 %v7291_v61  ;;  %4180 = vmatpush3.msra.mxu1 %v1903_v54  ;;  %v1891_v54 = vunpack.c.l.bf16 %v1451_v38  ;;  %v7298_v61 = vld [vmem:[#allocation11_spill] sm:$0xff]  ;;  %v1475_v38 = vld [vmem:[%s7149_s4 + $0x554] ss:$420 sps:$4 sm:$0xff]  }
 0x205   :  { %4228 = vmatprep.subr.mxu0 %v2053_v1  ;;  %3248 = vmatprep.mubr.f32.mxu0 %v7292_v58  ;;  %v2041_v1 = vunpack.c.h.bf16 %v1481_v31 }
 0x206   :  { %4181 = vmatprep.subr.mxu1 %v1948_v43  ;;  %4229 = vmatpush3.msra.mxu0 %v2005_v50  ;;  %v7297_v43 = vld [vmem:[#allocation10_spill] sm:$0xff]  ;;  %v1936_v50 = vunpack.c.l.bf16 %v1481_v31 }
 0x207   :  { %4182 = vmatpush3.msra.mxu1 %v1900_v51  ;;  %4230 = vmatprep.subr.mxu0 %v2050_v28 }
 0x208   :  { %3154 = vmatmul.mubr.f32.gmra.mxu1 %v7293_v8  ;;  %4183 = vmatprep.subr.mxu1 %v1945_v9  ;;  %v1888_v9 = vunpack.c.l.bf16 %v1449_v22  ;;  %v1990_v8 = vunpack.c.h.bf16 %v1447_v15  ;;  %v2032_v22 = vunpack.c.h.bf16 %v1475_v38 }
 0x209   :  { %4231 = vmatpush3.msra.mxu0 %v2002_v34  ;;  %3158 = vmatprep.mubr.f32.mxu1 %v7294_v11  ;;  %v7299_v34 = vld [vmem:[#allocation26_spill] sm:$0xff] }
 0x20a   :  { %3249 = vmatmul.mubr.f32.gmra.mxu0 %v7295_v18  ;;  %4184 = vmatpush3.msra.mxu1 %v1897_v37  ;;  %v1477_v37 = vld [vmem:[%s7149_s4 + $0x560] ss:$420 sps:$4 sm:$0xff]  }
 0x20b   :  { %4232 = vmatprep.subr.mxu0 %v2047_v53  ;;  %3253 = vmatprep.mubr.f32.mxu0 %v7296_v44  ;;  %v1930_v18 = vunpack.c.l.bf16 %v1477_v37 }
 0x20c   :  { %4185 = vmatprep.subr.mxu1 %v1942_v32  ;;  %4233 = vmatpush3.msra.mxu0 %v1999_v21  ;;  %v1885_v32 = vunpack.c.l.bf16 %v1447_v15  ;;  %v1445_v21 = vld [vmem:[%s7149_s4 + $0x4a0] ss:$420 sps:$4 sm:$0xff]  }
 0x20d   :  { %4186 = vmatpush3.msra.mxu1 %v1894_v27  ;;  %4234 = vmatprep.subr.mxu0 %v2044_v57  ;;  %v2500_v4 = vpop.f32.mrf.mxu1  ;;  %v7300_v57 = vld [vmem:[#allocation12_spill] sm:$0xff] }
 0x20e   :  { %3159 = vmatmul.mubr.f32.gmra.mxu1 %v7297_v43  ;;  %4187 = vmatprep.subr.mxu1 %v1939_v62  ;;  %v2501_v51 = vadd.f32 %v2500_v4, %v6090_v30  ;;  %v2607_v28 = vpop.f32.mrf.mxu0  ;;  %v1987_v62 = vunpack.c.h.bf16 %v1445_v21  ;;  %v1927_v4 = vunpack.c.l.bf16 %v1475_v38  ;;  %v1527_v38 = vld [vmem:[%s7149_s4 + $0x608] ss:$552 sps:$4 sm:$0xff]  }
 0x20f   :  { %4235 = vmatpush3.msra.mxu0 %v1996_v49  ;;  %3163 = vmatprep.mubr.f32.mxu1 %v7298_v61  ;;  %v2502_v58 = vpop.f32.mrf.mxu1  ;;  %v1882_v49 = vunpack.c.l.bf16 %v1445_v21 }
 0x210   :  { %3254 = vmatmul.mubr.f32.gmra.mxu0 %v7299_v34  ;;  %4188 = vmatpush3.msra.mxu1 %v1891_v54  ;;  %v6370_v17 = vadd.f32 %v2607_v28, %v2501_v51  ;;  %v2503_v53 = vadd.f32 %v2502_v58, %v6098_v40  ;;  %v2609_v30 = vpop.f32.mrf.mxu0  ;;  %v2035_v40 = vunpack.c.h.bf16 %v1477_v37  ;;  %v1473_v54 = vld [vmem:[%s7149_s4 + $0x548] ss:$420 sps:$4 sm:$0xff]  }
 0x211   :  { %4236 = vmatprep.subr.mxu0 %v2041_v1  ;;  %3258 = vmatprep.mubr.f32.mxu0 %v5616_v42  ;;  %v1443_v42 = vld [vmem:[%s7149_s4 + $0x494] ss:$420 sps:$4 sm:$0xff]   ;;  %v2029_v28 = vunpack.c.h.bf16 %v1473_v54  ;;  %v1924_v61 = vunpack.c.l.bf16 %v1473_v54  ;;  %v7303_v54 = vld [vmem:[#allocation15_spill] sm:$0xff] }
 0x212   :  { %4189 = vmatprep.subr.mxu1 %v1936_v50  ;;  %4237 = vmatpush3.msra.mxu0 %v1993_v14  ;;  %v6380_v11 = vadd.f32 %v2609_v30, %v2503_v53  ;;  %v7301_v1 = vld [vmem:[#allocation13_spill] sm:$0xff]  ;;  %v1984_v43 = vunpack.c.h.bf16 %v1443_v42  ;;  %v1879_v51 = vunpack.c.l.bf16 %v1443_v42 }
 0x213   :  { %4190 = vmatpush3.msra.mxu1 %v1888_v9  ;;  %4238 = vmatprep.subr.mxu0 %v2038_v41  ;;  %v2506_v27 = vpop.f32.mrf.mxu1  ;;  %v1439_v9 = vld [vmem:[%s7149_s4 + $0x620] ss:$180 sps:$4 sm:$0xff]  }
 0x214   :  { %3164 = vmatmul.mubr.f32.gmra.mxu1 %v7300_v57  ;;  %4191 = vmatprep.subr.mxu1 %v1933_v35  ;;  %v2507_v31 = vadd.f32 %v2506_v27, %v6118_v19  ;;  %v2613_v44 = vpop.f32.mrf.mxu0  ;;  %v1441_v19 = vld [vmem:[%s7149_s4 + $0x488] ss:$420 sps:$4 sm:$0xff]   ;;  %v1529_v35 = vld [vmem:[%s7149_s4 + $0x614] ss:$552 sps:$4 sm:$0xff]   ;;  %v1978_v30 = vunpack.c.l.bf16 %v1439_v9 }
 0x215   :  { %4239 = vmatpush3.msra.mxu0 %v1990_v8  ;;  %4192 = vmatpush3.msra.mxu1 %v1885_v32  ;;  %v2508_v3 = vpop.f32.mrf.mxu1  ;;  %v1559_v8 = vld [vmem:[%s7149_s4 + $0x6c8] ss:$552 sps:$4 sm:$0xff]   ;;  %v2113_v27 = vunpack.c.h.bf16 %v1529_v35  ;;  %v1975_v57 = vunpack.c.l.bf16 %v1529_v35 }
 0x216   :  { %3259 = vmatmul.mubr.f32.gmra.mxu0 %v5645_v13  ;;  %3333 = vmatprep.mubr.f32.mxu1 %v7301_v1  ;;  %v6395_v50 = vadd.f32 %v2613_v44, %v2507_v31  ;;  %v2509_v14 = vadd.f32 %v2508_v3, %v6127_v2  ;;  %v2615_v15 = vpop.f32.mrf.mxu0  ;;  %v1471_v13 = vld [vmem:[%s7149_s4 + $0x6e0] ss:$540 sps:$4 sm:$0xff]   ;;  %v1981_v2 = vunpack.c.h.bf16 %v1441_v19  ;;  %v1972_v3 = vunpack.c.l.bf16 %v1527_v38 }
 0x217   :  { %4240 = vmatprep.subr.mxu0 %v2035_v40  ;;  %3263 = vmatprep.mubr.f32.mxu0 %v5657_v52  ;;  %v1876_v52 = vunpack.c.l.bf16 %v1441_v19  ;;  %v2026_v34 = vunpack.c.l.bf16 %v1471_v13  ;;  %v2161_v21 = vunpack.c.h.bf16 %v1471_v13  ;;  %v7302_v44 = vld [vmem:[#allocation14_spill] sm:$0xff] }
 0x218   :  { %4193 = vmatprep.subr.mxu1 %v1930_v18  ;;  %4241 = vmatpush3.msra.mxu0 %v1987_v62  ;;  %v6405_v41 = vadd.f32 %v2615_v15, %v2509_v14  ;;  %v2158_v18 = vunpack.c.h.bf16 %v1559_v8  ;;  %v1557_v62 = vld [vmem:[%s7149_s4 + $0x8d8] ss:$12 sps:$4 sm:$0xff]   ;;  %v1553_v15 = vld [vmem:[%s7149_s4 + $0x8c0] ss:$12 sps:$4 sm:$0xff]  }
 0x219   :  { %4194 = vmatpush3.msra.mxu1 %v1882_v49  ;;  %4242 = vmatprep.subr.mxu0 %v2032_v22  ;;  %v2512_v58 = vpop.f32.mrf.mxu1  ;;  %v2110_v49 = vunpack.c.h.bf16 %v1527_v38  ;;  %v6459_v38 = vld [vmem:[%s7149_s4 + $0x7f4] ss:$396 sps:$4 sm:$0xff]  }
 0x21a   :  { %4195 = vmatprep.subr.mxu1 %v1927_v4  ;;  %4243 = vmatpush3.msra.mxu0 %v1984_v43  ;;  %v2513_v37 = vadd.f32 %v2512_v58, %v6143_v10  ;;  %v2619_v53 = vpop.f32.mrf.mxu0  ;;  %v2155_v43 = vunpack.c.h.bf16 %v1557_v62 }
 0x21b   :  { %3264 = vmatmul.mubr.f32.gmra.mxu0 %v5678_v26  ;;  %4196 = vmatpush3.msra.mxu1 %v1879_v51  ;;  %v2514_v32 = vpop.f32.mrf.mxu1  ;;  %v2023_v26 = vunpack.c.h.bf16 %v1439_v9 }
 0x21c   :  { %4244 = vmatprep.subr.mxu0 %v2029_v28  ;;  %4197 = vmatprep.subr.mxu1 %v1924_v61  ;;  %v6418_v40 = vadd.f32 %v2619_v53, %v2513_v37  ;;  %v2515_v10 = vadd.f32 %v2514_v32, %v6152_v55  ;;  %v2621_v42 = vpop.f32.mrf.mxu0  ;;  %v2020_v55 = vunpack.c.l.bf16 %v1559_v8  ;;  %v7304_v61 = vld [vmem:[#allocation16_spill] sm:$0xff]  ;;  %v2146_v32 = vunpack.c.l.bf16 %v1553_v15 }
 0x21d   :  { %4245 = vmatpush3.msra.mxu0 %v1981_v2  ;;  %3433 = vmatprep.mubr.f32.mxu0 %v5816_v23  ;;  %v1525_v23 = vld [vmem:[%s7149_s4 + $0x818] ss:$12 sps:$4 sm:$0xff]   ;;  %v1521_v2 = vld [vmem:[%s7149_s4 + $0x800] ss:$12 sps:$4 sm:$0xff]  }
 0x21e   :  { %4198 = vmatpush3.msra.mxu1 %v1876_v52  ;;  %4246 = vmatprep.subr.mxu0 %v2026_v34  ;;  %v6425_v31 = vadd.f32 %v2621_v42, %v2515_v10  ;;  %v2107_v14 = vunpack.c.h.bf16 %v1525_v23  ;;  %v2104_v9 = vunpack.c.l.bf16 %v1525_v23  ;;  %v7305_v52 = vld [vmem:[#allocation17_spill] sm:$0xff]  ;;  %v2149_v34 = vunpack.c.h.bf16 %v1553_v15  ;;  %v7308_v23 = vld [vmem:[#allocation23_spill] sm:$0xff] }
 0x21f   :  { %3334 = vmatmul.mubr.f32.vlgmr.msra.gmra.mxu1 %v7302_v44  ;;  %4247 = vmatpush3.msra.mxu0 %v1978_v30  ;;  %v2518_v22 = vpop.f32.mrf.mxu1  ;;  %v2101_v30 = vunpack.c.h.bf16 %v1521_v2  ;;  %v2098_v42 = vunpack.c.l.bf16 %v1521_v2  ;;  %v1515_v44 = vld [vmem:[%s7149_s4 + $0x7e8] ss:$180 sps:$4 sm:$0xff]   ;;  %v1511_v2 = vld [vmem:[%s7149_s4 + $0x7d0] ss:$180 sps:$4 sm:$0xff]  }
 0x220   :  { %4273 = vmatprep.subr.mxu1 %v2161_v21  ;;  %3338 = vmatprep.mubr.f32.mxu1 %v7303_v54  ;;  %v2519_v1 = vadd.f32 %v2518_v22, %v6173_v12  ;;  %v2625_v4 = vpop.f32.mrf.mxu0  ;;  %v2152_v12 = vunpack.c.l.bf16 %v1557_v62  ;;  %v2137_v15 = vunpack.c.h.bf16 %v1515_v44 }
 0x221   :  { %4248 = vmatprep.subr.mxu0 %v2023_v26  ;;  %4274 = vmatpush3.msra.mxu1 %v2113_v27  ;;  %v2520_v19 = vpop.f32.mrf.mxu1  ;;  %v7307_v26 = vld [vmem:[#allocation20_spill] sm:$0xff] }
 0x222   :  { %4249 = vmatpush3.msra.mxu0 %v1975_v57  ;;  %4275 = vmatprep.subr.mxu1 %v2158_v18  ;;  %v6436_v51 = vadd.f32 %v2625_v4, %v2519_v1  ;;  %v2521_v13 = vadd.f32 %v2520_v19, %v6182_v20  ;;  %v2627_v28 = vpop.f32.mrf.mxu0  ;;  %v6449_v20 = vld [vmem:[%s7149_s4 + $0x8b4] ss:$216 sps:$4 sm:$0xff]   ;;  %v2194_v18 = vunpack.c.h.bf16 %v6459_v38  ;;  %v2092_v19 = vunpack.c.l.bf16 %v1515_v44  ;;  %v7315_v44 = vld [vmem:[#allocation29_spill] sm:$0xff] }
 0x223   :  { %4250 = vmatprep.subr.mxu0 %v2020_v55  ;;  %4276 = vmatpush3.msra.mxu1 %v2110_v49  ;;  %v2197_v21 = vunpack.c.h.bf16 %v6449_v20  ;;  %v2143_v27 = vunpack.c.l.bf16 %v6449_v20  ;;  %v7326_v20 = vld [vmem:[#allocation39_spill] sm:$0xff] }
 0x224   :  { %3339 = vmatmul.mubr.f32.gmra.mxu1 %v7304_v61  ;;  %4251 = vmatpush3.msra.mxu0 %v1972_v3  ;;  %v6443_v58 = vadd.f32 %v2627_v28, %v2521_v13  ;;  %v6491_v3 = vld [vmem:[%s7149_s4 + $0x7dc] ss:$396 sps:$4 sm:$0xff]   ;;  %v7311_v28 = vld [vmem:[#allocation40_spill] sm:$0xff] }
 0x225   :  { %4277 = vmatprep.subr.mxu1 %v2155_v43  ;;  %3343 = vmatprep.mubr.f32.mxu1 %v7305_v52  ;;  %v2524_v35 = vpop.f32.mrf.mxu1  ;;  %v7309_v43 = vld [vmem:[#allocation25_spill] sm:$0xff] }
 0x226   :  { %3434 = vmatmul.mubr.f32.vlgmr.msra.gmra.mxu0 %v5848_v59  ;;  %4278 = vmatpush3.msra.mxu1 %v2107_v14  ;;  %v2525_v37 = vadd.f32 %v2524_v35, %v6198_v25  ;;  %v2631_v53 = vpop.f32.mrf.mxu0  ;;  %v7310_v14 = vld [vmem:[#allocation38_spill] sm:$0xff] }
 0x227   :  { %3438 = vmatprep.mubr.f32.mxu0 %v5862_v45  ;;  %4279 = vmatprep.subr.mxu1 %v2152_v12  ;;  %v2526_v8 = vpop.f32.mrf.mxu1  ;;  %v7306_v45 = vld [vmem:[#allocation18_spill] sm:$0xff]  ;;  %v2188_v12 = vunpack.c.h.bf16 %v6491_v3 }
 0x228   :  { %4280 = vmatpush3.msra.mxu1 %v2104_v9  ;;  %4366 = vmatprep.subr.mxu0 %v7285_v6  ;;  %v6461_v59 = vadd.f32 %v2631_v53, %v2525_v37  ;;  %v2527_v25 = vadd.f32 %v2526_v8, %v6207_v48  ;;  %v2633_v10 = vpop.f32.mrf.mxu0  ;;  %v6475_v48 = vld [vmem:[%s7149_s4 + $0x8a8] ss:$204 sps:$4 sm:$0xff]   ;;  %v2089_v9 = vunpack.c.l.bf16 %v6491_v3  ;;  %v6524_v8 = vld [vmem:[%s7149_s4 + $0x7c4] ss:$396 sps:$4 sm:$0xff]  }
 0x229   :  { %3344 = vmatmul.mubr.f32.gmra.mxu1 %v7306_v45  ;;  %4281 = vmatprep.subr.mxu1 %v2149_v34  ;;  %v2140_v22 = vunpack.c.l.bf16 %v6475_v48  ;;  %v2191_v54 = vunpack.c.h.bf16 %v6475_v48  ;;  %v7312_v37 = vld [vmem:[#allocation27_spill] sm:$0xff]  ;;  %v7331_v48 = vld [vmem:[#allocation45_spill] sm:$0xff] }
 0x22a   :  { %3348 = vmatprep.mubr.f32.mxu1 %v7307_v26  ;;  %3439 = vmatmul.mubr.f32.gmra.mxu0 %v5889_v56  ;;  %v6468_v57 = vadd.f32 %v2633_v10, %v2527_v25  ;;  %v2095_v56 = vunpack.c.l.bf16 %v6459_v38  ;;  %v7313_v25 = vld [vmem:[#allocation28_spill] sm:$0xff]  ;;  %v2086_v10 = vunpack.c.l.bf16 %v1511_v2  ;;  %v7329_v38 = vld [vmem:[#allocation43_spill] sm:$0xff] }
 0x22b   :  { %4282 = vmatpush3.msra.mxu1 %v2101_v30  ;;  %3443 = vmatprep.mubr.f32.mxu0 %v5900_v33  ;;  %v2530_v62 = vpop.f32.mrf.mxu1  ;;  %v7332_v3 = vld [vmem:[#allocation47_spill] sm:$0xff] }
 0x22c   :  { %4283 = vmatprep.subr.mxu1 %v2146_v32  ;;  %4367 = vmatpush3.msra.mxu0 %v2197_v21  ;;  %v2531_v33 = vadd.f32 %v2530_v62, %v6226_v7  ;;  %v2637_v55 = vpop.f32.mrf.mxu0  ;;  %v2182_v62 = vunpack.c.h.bf16 %v6524_v8 }
 0x22d   :  { %4284 = vmatpush3.msra.mxu1 %v2098_v42  ;;  %4368 = vmatprep.subr.mxu0 %v7285_v6  ;;  %v2532_v49 = vpop.f32.mrf.mxu1  ;;  %v2131_v42 = vunpack.c.h.bf16 %v1511_v2 }
 0x22e   :  { %3349 = vmatmul.mubr.f32.gmra.mxu1 %v7308_v23  ;;  %4285 = vmatprep.subr.mxu1 %v2143_v27  ;;  %v6493_v1 = vadd.f32 %v2637_v55, %v2531_v33  ;;  %v2533_v7 = vadd.f32 %v2532_v49, %v6234_v24  ;;  %v2639_v4 = vpop.f32.mrf.mxu0  ;;  %v6508_v24 = vld [vmem:[%s7149_s4 + $0x890] ss:$204 sps:$4 sm:$0xff]   ;;  %v7314_v27 = vld [vmem:[#allocation42_spill] sm:$0xff]  ;;  %v6556_v49 = vld [vmem:[%s7149_s4 + $0x7ac] ss:$396 sps:$4 sm:$0xff]  }
 0x22f   :  { %4369 = vmatpush3.msra.mxu0 %v2194_v18  ;;  %3353 = vmatprep.mubr.f32.mxu1 %v7309_v43  ;;  %v2134_v53 = vunpack.c.l.bf16 %v6508_v24  ;;  %v2185_v30 = vunpack.c.h.bf16 %v6508_v24  ;;  %v7316_v23 = vld [vmem:[#allocation30_spill] sm:$0xff] }
 0x230   :  { %3444 = vmatmul.mubr.f32.gmra.mxu0 %v7310_v14  ;;  %4286 = vmatpush3.msra.mxu1 %v2095_v56  ;;  %v6500_v13 = vadd.f32 %v2639_v4, %v2533_v7  ;;  %v1507_v56 = vld [vmem:[%s7149_s4 + $0x7b8] ss:$180 sps:$4 sm:$0xff]   ;;  %v7317_v7 = vld [vmem:[#allocation44_spill] sm:$0xff]  ;;  %v7318_v43 = vld [vmem:[#allocation46_spill] sm:$0xff]  ;;  %v2077_v14 = vunpack.c.l.bf16 %v6556_v49 }
 0x231   :  { %4370 = vmatprep.subr.mxu0 %v7285_v6  ;;  %3448 = vmatprep.mubr.f32.mxu0 %v7311_v28  ;;  %v2536_v61 = vpop.f32.mrf.mxu1  ;;  %v2125_v4 = vunpack.c.h.bf16 %v1507_v56  ;;  %v1503_v28 = vld [vmem:[%s7149_s4 + $0x7a0] ss:$180 sps:$4 sm:$0xff]  }
 0x232   :  { %4287 = vmatprep.subr.mxu1 %v2140_v22  ;;  %4371 = vmatpush3.msra.mxu0 %v2191_v54  ;;  %v2537_v52 = vadd.f32 %v2536_v61, %v6250_v0  ;;  %v2643_v34 = vpop.f32.mrf.mxu0  ;;  %v2080_v22 = vunpack.c.l.bf16 %v1507_v56  ;;  %v6580_v61 = vld [vmem:[%s7149_s4 + $0x794] ss:$396 sps:$4 sm:$0xff]   ;;  %v7323_v56 = vld [vmem:[#allocation35_spill] sm:$0xff] }
 0x233   :  { %4288 = vmatpush3.msra.mxu1 %v2092_v19  ;;  %4372 = vmatprep.subr.mxu0 %v7285_v6  ;;  %v2538_v35 = vpop.f32.mrf.mxu1  ;;  %v2176_v19 = vunpack.c.h.bf16 %v6556_v49 }
 0x234   :  { %3354 = vmatmul.mubr.f32.gmra.mxu1 %v7312_v37  ;;  %4289 = vmatprep.subr.mxu1 %v2137_v15  ;;  %v6526_v32 = vadd.f32 %v2643_v34, %v2537_v52  ;;  %v2539_v0 = vadd.f32 %v2538_v35, %v6261_v60  ;;  %v2645_v45 = vpop.f32.mrf.mxu0  ;;  %v6541_v60 = vld [vmem:[%s7149_s4 + $0x878] ss:$204 sps:$4 sm:$0xff]   ;;  %v6569_v15 = vld [vmem:[%s7149_s4 + $0x860] ss:$204 sps:$4 sm:$0xff]   ;;  %v2074_v34 = vunpack.c.l.bf16 %v1503_v28  ;;  %v6590_v35 = vld [vmem:[%s7149_s4 + $0x848] ss:$204 sps:$4 sm:$0xff]  }
 0x235   :  { %4373 = vmatpush3.msra.mxu0 %v2188_v12  ;;  %3358 = vmatprep.mubr.f32.mxu1 %v7313_v25  ;;  %v2128_v33 = vunpack.c.l.bf16 %v6541_v60  ;;  %v2179_v55 = vunpack.c.h.bf16 %v6541_v60  ;;  %v2122_v2 = vunpack.c.l.bf16 %v6569_v15  ;;  %v2173_v52 = vunpack.c.h.bf16 %v6569_v15  ;;  %v7320_v37 = vld [vmem:[#allocation32_spill] sm:$0xff]  ;;  %v1499_v25 = vld [vmem:[%s7149_s4 + $0x788] sm:$0xf] }
 0x236   :  { %3449 = vmatmul.mubr.f32.gmra.mxu0 %v5956_v63  ;;  %4290 = vmatpush3.msra.mxu1 %v2089_v9  ;;  %v6533_v26 = vadd.f32 %v2645_v45, %v2539_v0  ;;  %v2083_v63 = vunpack.c.l.bf16 %v6524_v8  ;;  %v7319_v9 = vld [vmem:[#allocation31_spill] sm:$0xff]  ;;  %v2170_v0 = vunpack.c.h.bf16 %v6580_v61 }
 0x237   :  { %4374 = vmatprep.subr.mxu0 %v7285_v6  ;;  %3453 = vmatprep.mubr.f32.mxu0 %v7314_v27  ;;  %v6607_v45 = vld [vmem:[%s7149_s4 + $0x908] sm:$0xf]  ;;  %v2068_v27 = vunpack.c.l.bf16 %v1499_v25 }
 0x238   :  { %4291 = vmatprep.subr.mxu1 %v2134_v53  ;;  %4375 = vmatpush3.msra.mxu0 %v2185_v30  ;;  %v2119_v53 = vunpack.c.h.bf16 %v1503_v28 }
 0x239   :  { %4292 = vmatpush3.msra.mxu1 %v2086_v10  ;;  %4376 = vmatprep.subr.mxu0 %v7285_v6  ;;  %v2071_v10 = vunpack.c.l.bf16 %v6580_v61 }
 0x23a   :  { %3359 = vmatmul.mubr.f32.gmra.mxu1 %v7315_v44  ;;  %4293 = vmatprep.subr.mxu1 %v2131_v42  ;;  %v2167_v42 = vunpack.c.h.bf16 %v6590_v35  ;;  %v7324_v44 = vld [vmem:[#allocation36_spill] sm:$0xff] }
 0x23b   :  { %4377 = vmatpush3.msra.mxu0 %v2182_v62  ;;  %3363 = vmatprep.mubr.f32.mxu1 %v7316_v23 }
 0x23c   :  { %3454 = vmatmul.mubr.f32.gmra.mxu0 %v7317_v7  ;;  %4294 = vmatpush3.msra.mxu1 %v2083_v63  ;;  %v7321_v63 = vld [vmem:[#allocation33_spill] sm:$0xff]  ;;  %v7336_v7 = vld [vmem:[#allocation50_spill] sm:$0xff] }
 0x23d   :  { %4378 = vmatprep.subr.mxu0 %v7285_v6  ;;  %3458 = vmatprep.mubr.f32.mxu0 %v7318_v43 }
 0x23e   :  { %4295 = vmatprep.subr.mxu1 %v2128_v33  ;;  %4379 = vmatpush3.msra.mxu0 %v2179_v55 }
 0x23f   :  { %4296 = vmatpush3.msra.mxu1 %v2080_v22  ;;  %4380 = vmatprep.subr.mxu0 %v7285_v6 }
 0x240   :  { %3364 = vmatmul.mubr.f32.gmra.mxu1 %v7319_v9  ;;  %4297 = vmatprep.subr.mxu1 %v2125_v4 }
 0x241   :  { %4381 = vmatpush3.msra.mxu0 %v2176_v19  ;;  %4298 = vmatpush3.msra.mxu1 %v2077_v14 }
 0x242   :  { %3459 = vmatmul.mubr.f32.gmra.mxu0 %v6026_v46  ;;  %3533 = vmatprep.mubr.f32.mxu1 %v7320_v37  ;;  %v2116_v46 = vunpack.c.l.bf16 %v6590_v35 }
 0x243   :  { %4382 = vmatprep.subr.mxu0 %v7285_v6  ;;  %3463 = vmatprep.mubr.f32.mxu0 %v6037_v39  ;;  %v2164_v39 = vunpack.c.l.bf16 %v6607_v45 }
 0x244   :  { %4299 = vmatprep.subr.mxu1 %v2122_v2  ;;  %4383 = vmatpush3.msra.mxu0 %v2173_v52 }
 0x245   :  { %4300 = vmatpush3.msra.mxu1 %v2074_v34  ;;  %4384 = vmatprep.subr.mxu0 %v7285_v6 }
 0x246   :  { %4301 = vmatprep.subr.mxu1 %v2119_v53  ;;  %4385 = vmatpush3.msra.mxu0 %v2170_v0 }
 0x247   :  { %3464 = vmatmul.mubr.f32.gmra.mxu0 %v6059_v16  ;;  %4302 = vmatpush3.msra.mxu1 %v2071_v10  ;;  %v7322_v16 = vld [vmem:[#allocation34_spill] sm:$0xff] }
 0x248   :  { %4386 = vmatprep.subr.mxu0 %v7285_v6  ;;  %4303 = vmatprep.subr.mxu1 %v2116_v46 }
 0x249   :  { %4387 = vmatpush3.msra.mxu0 %v2167_v42  ;;  %4304 = vmatpush3.msra.mxu1 %v2068_v27 }
 0x24a   :  { %4388 = vmatprep.subr.mxu0 %v7285_v6  ;;  %3534 = vmatmul.mubr.f32.vlgmr.msra.gmra.mxu1 %v7321_v63 }
 0x24b   :  { %4411 = vmatprep.subr.mxu1 %v7285_v6  ;;  %4389 = vmatpush3.msra.mxu0 %v2164_v39 }
 0x24c   :  { %4390 = vmatprep.mubr.msk.f32.mxu0 %vm4497_vm2, %v7285_v6  ;;  %3538 = vmatprep.mubr.f32.mxu1 %v7322_v16 }
 0x24d   :  { %4423 = vmatpush3.msra.mxu1 %v2197_v21  ;;  %4391 = vmatmul.mubr.msk.f32.vlgmr.msra.gmra.mxu0 %vm2198_vm3, %v6080_v29  ;;  %v7325_v29 = vld [vmem:[#allocation37_spill] sm:$0xff]  ;;  %v7327_v21 = vld [vmem:[#allocation51_spill] sm:$0xff] }
 0x24e   :  { %4412 = vmatprep.subr.mxu1 %v7285_v6  ;;  %3539 = vmatmul.mubr.f32.gmra.mxu1 %v7323_v56 }
 0x24f   :  { %4424 = vmatpush3.msra.mxu1 %v2194_v18  ;;  %4393 = vmatprep.mubr.msk.f32.mxu0 %vm4497_vm2, %v7285_v6  ;;  %v7330_v18 = vld [vmem:[#allocation52_spill] sm:$0xff] }
 0x250   :  { %3543 = vmatprep.mubr.f32.mxu1 %v7324_v44  ;;  %4413 = vmatprep.subr.mxu1 %v7285_v6 }
 0x251   :  { %4394 = vmatmul.mubr.msk.f32.gmra.mxu0 %vm2198_vm3, %v6113_v47  ;;  %4425 = vmatpush3.msra.mxu1 %v2191_v54  ;;  %v7328_v47 = vld [vmem:[#allocation41_spill] sm:$0xff] }
 0x252   :  { %4414 = vmatprep.subr.mxu1 %v7285_v6  ;;  %3544 = vmatmul.mubr.f32.gmra.mxu1 %v7325_v29 }
 0x253   :  { %4426 = vmatpush3.msra.mxu1 %v2188_v12  ;;  %4396 = vmatprep.mubr.msk.f32.mxu0 %vm4497_vm2, %v7285_v6 }
 0x254   :  { %3548 = vmatprep.mubr.f32.mxu1 %v7326_v20  ;;  %4415 = vmatprep.subr.mxu1 %v7285_v6 }
 0x255   :  { %4397 = vmatmul.mubr.msk.f32.gmra.mxu0 %vm2198_vm3, %v7327_v21  ;;  %4427 = vmatpush3.msra.mxu1 %v2185_v30  ;;  %v7333_v30 = vld [vmem:[#allocation53_spill] sm:$0xff] }
 0x256   :  { %3549 = vmatmul.mubr.f32.gmra.mxu1 %v7328_v47  ;;  %4416 = vmatprep.subr.mxu1 %v7285_v6 }
 0x257   :  { %4399 = vmatprep.mubr.msk.f32.mxu0 %vm4497_vm2, %v7285_v6  ;;  %3553 = vmatprep.mubr.f32.mxu1 %v7329_v38 }
 0x258   :  { %4428 = vmatpush3.msra.mxu1 %v2182_v62 }
 0x259   :  { %4400 = vmatmul.mubr.msk.f32.gmra.mxu0 %vm2198_vm3, %v7330_v18  ;;  %4417 = vmatprep.subr.mxu1 %v7285_v6 }
 0x25a   :  { %4429 = vmatpush3.msra.mxu1 %v2179_v55  ;;  %4402 = vmatprep.mubr.msk.f32.mxu0 %vm4497_vm2, %v7285_v6  ;;  %v7334_v55 = vld [vmem:[#allocation48_spill] sm:$0xff] }
 0x25b   :  { %3554 = vmatmul.mubr.f32.gmra.mxu1 %v7331_v48  ;;  %4418 = vmatprep.subr.mxu1 %v7285_v6  ;;  %v2714_v54 = vpop.f32.mrf.mxu1 }
 0x25c   :  { %3558 = vmatprep.mubr.f32.mxu1 %v7332_v3  ;;  %4430 = vmatpush3.msra.mxu1 %v2176_v19  ;;  %v2715_v12 = vadd.f32 %v2714_v54, %v6370_v17  ;;  %v2821_v24 = vpop.f32.mrf.mxu0  ;;  %v7335_v17 = vld [vmem:[#allocation49_spill] sm:$0xff] }
 0x25d   :  { %4403 = vmatmul.mubr.msk.f32.gmra.mxu0 %vm2198_vm3, %v7333_v30  ;;  %4419 = vmatprep.subr.mxu1 %v7285_v6  ;;  %v2716_v8 = vpop.f32.mrf.mxu1 }
 0x25e   :  { %4431 = vmatpush3.msra.mxu1 %v2173_v52  ;;  %v6679_v62 = vadd.f32 %v2821_v24, %v2715_v12  ;;  %v2717_v60 = vadd.f32 %v2716_v8, %v6380_v11  ;;  %v2823_v33 = vpop.f32.mrf.mxu0 }
 0x25f   :  { %3559 = vmatmul.mubr.f32.gmra.mxu1 %v7334_v55  ;;  %4420 = vmatprep.subr.mxu1 %v7285_v6 }
 0x260   :  { %3563 = vmatprep.mubr.f32.mxu1 %v7335_v17  ;;  %4432 = vmatpush3.msra.mxu1 %v2170_v0  ;;  %v2824_v49 = vadd.f32 %v2823_v33, %v2717_v60 }
 0x261   :  { %4421 = vmatprep.subr.mxu1 %v7285_v6  ;;  %v2720_v23 = vpop.f32.mrf.mxu1  ;;  %v2827_v22 = vpop.f32.mrf.mxu0 }
 0x262   :  { %4433 = vmatpush3.msra.mxu1 %v2167_v42  ;;  %v2721_v11 = vadd.f32 %v2720_v23, %v6395_v50 }
 0x263   :  { %3564 = vmatmul.mubr.f32.gmra.mxu1 %v7336_v7  ;;  %4422 = vmatprep.subr.mxu1 %v7285_v6  ;;  %v2722_v4 = vpop.f32.mrf.mxu1  ;;  %v2829_v43 = vpop.f32.mrf.mxu0 }
 0x264   :  { %4434 = vmatpush3.msra.mxu1 %v2164_v39  ;;  %4405 = vmatprep.mubr.msk.f32.mxu1 %vm4497_vm2, %v7285_v6  ;;  %v2828_v19 = vadd.f32 %v2827_v22, %v2721_v11  ;;  %v2723_v14 = vadd.f32 %v2722_v4, %v6405_v41 }
 0x266   :  { %v2830_v15 = vadd.f32 %v2829_v43, %v2723_v14 }
 0x267   :  { %4406 = vmatmul.mubr.msk.f32.vlgmr.msra.gmra.mxu1 %vm2198_vm3, %v6221_v36  ;;  %v2726_v50 = vpop.f32.mrf.mxu1  ;;  %v2833_v28 = vpop.f32.mrf.mxu0 }
 0x268   :  { %4408 = vmatprep.mubr.msk.f32.mxu1 %vm4497_vm2, %v7285_v6  ;;  %v2727_v61 = vadd.f32 %v2726_v50, %v6418_v40 }
 0x269   :  { %v2728_v9 = vpop.f32.mrf.mxu1  ;;  %v2835_v2 = vpop.f32.mrf.mxu0 }
 0x26a   :  { %v2834_v52 = vadd.f32 %v2833_v28, %v2727_v61  ;;  %v2729_v34 = vadd.f32 %v2728_v9, %v6425_v31 }
 0x26b   :  { %4409 = vmatmul.mubr.msk.f32.gmra.mxu1 %vm2198_vm3, %v6245_v5 }
 0x26c   :  { %v2836_v41 = vadd.f32 %v2835_v2, %v2729_v34  ;;  %v2732_v35 = vpop.f32.mrf.mxu1 }
 0x26d   :  { %v2733_v37 = vadd.f32 %v2732_v35, %v6436_v51  ;;  %v2839_v36 = vpop.f32.mrf.mxu0 }
 0x26e   :  { %v2734_v53 = vpop.f32.mrf.mxu1 }
 0x26f   :  { %v2840_v0 = vadd.f32 %v2839_v36, %v2733_v37  ;;  %v2735_v25 = vadd.f32 %v2734_v53, %v6443_v58  ;;  %v2841_v6 = vpop.f32.mrf.mxu0 }
 0x271   :  { %v6708_v10 = vadd.f32 %v2841_v6, %v2735_v25 }
 0x272   :  { %v2738_v40 = vpop.f32.mrf.mxu1 }
 0x273   :  { %v2739_v46 = vadd.f32 %v2738_v40, %v6461_v59  ;;  %v2845_v45 = vpop.f32.mrf.mxu0 }
 0x274   :  { %v2740_v31 = vpop.f32.mrf.mxu1 }
 0x275   :  { %v6711_v42 = vadd.f32 %v2845_v45, %v2739_v46  ;;  %v2741_v5 = vadd.f32 %v2740_v31, %v6468_v57  ;;  %v2847_v27 = vpop.f32.mrf.mxu0 }
 0x277   :  { %v6714_v39 = vadd.f32 %v2847_v27, %v2741_v5 }
 0x278   :  { %v2744_v51 = vpop.f32.mrf.mxu1  ;;  %v2851_v63 = vpop.f32.mrf.mxu0 }
 0x279   :  { %v2745_v16 = vadd.f32 %v2744_v51, %v6493_v1 }
 0x27a   :  { %v2746_v58 = vpop.f32.mrf.mxu1  ;;  %v2853_v56 = vpop.f32.mrf.mxu0 }
 0x27b   :  { %v6717_v44 = vadd.f32 %v2851_v63, %v2745_v16  ;;  %v2747_v29 = vadd.f32 %v2746_v58, %v6500_v13 }
 0x27d   :  { %v6720_v59 = vadd.f32 %v2853_v56, %v2747_v29 }
 0x27e   :  { %v2750_v20 = vpop.f32.mrf.mxu1  ;;  %v2857_v21 = vpop.f32.mrf.mxu0 }
 0x27f   :  { %v2751_v47 = vadd.f32 %v2750_v20, %v6526_v32 }
 0x280   :  { %v2752_v57 = vpop.f32.mrf.mxu1  ;;  %v2859_v48 = vpop.f32.mrf.mxu0 }
 0x281   :  { %v6723_v38 = vadd.f32 %v2857_v21, %v2751_v47  ;;  %v2753_v18 = vadd.f32 %v2752_v57, %v6533_v26 }
 0x283   :  { %v6726_v54 = vadd.f32 %v2859_v48, %v2753_v18 }
 0x284   :  { %v2928_v1 = vpop.f32.mrf.mxu1 }
 0x285   :  { %v6729_v3 = vadd.f32 %v2928_v1, %v6679_v62 }
 0x286   :  { %v2930_v12 = vpop.f32.mrf.mxu1 }
 0x287   :  { %7337 = vst [vmem:[#allocation6_spill] sm:$0xff] %v6729_v3  ;;  %v6731_v13 = vadd.f32 %v2930_v12, %v2824_v49  ;;  %v3720_v32 = vmul.f32 %v6729_v3, %v6729_v3 }
 0x289   :  { %7338 = vst [vmem:[#allocation7_spill] sm:$0xff] %v6731_v13  ;;  %v2934_v24 = vpop.f32.mrf.mxu1  ;;  %v4040_v30 = vpop.f32.mrf.mxu0  ;;  %v3721_v49 = vmul.f32 %v6731_v13, %v6731_v13 }
 0x28a   :  { %v6733_v8 = vadd.f32 %v2934_v24, %v2828_v19 }
 0x28b   :  { %v2936_v60 = vpop.f32.mrf.mxu1  ;;  %v4041_v33 = vpop.f32.mrf.mxu0 }
 0x28c   :  { %7339 = vst [vmem:[#allocation19_spill] sm:$0xff] %v6733_v8  ;;  %v3669_v26 = vadd.f32 %v6733_v8, %v6729_v3  ;;  %v3723_v55 = vmul.f32 %v6733_v8, %v6733_v8  ;;  %v6741_v62 = vadd.f32 %v2936_v60, %v2830_v15  ;;  %v6743_v17 = vadd.f32 %v4041_v33, %v4040_v30 }
 0x28e   :  { %7340 = vst [vmem:[#allocation21_spill] sm:$0xff] %v6741_v62  ;;  %v3741_v23 = vadd.f32 %v3723_v55, %v3720_v32  ;;  %v3683_v22 = vadd.f32 %v6741_v62, %v6731_v13  ;;  %v3724_v11 = vmul.f32 %v6741_v62, %v6741_v62 }
 0x28f   :  { %v2940_v7 = vpop.f32.mrf.mxu1  ;;  %v4043_v4 = vpop.f32.mrf.mxu0 }
 0x290   :  { %v3754_v43 = vadd.f32 %v3724_v11, %v3721_v49  ;;  %v6751_v19 = vadd.f32 %v2940_v7, %v2834_v52 }
 0x291   :  { %v2942_v14 = vpop.f32.mrf.mxu1  ;;  %v4044_v15 = vpop.f32.mrf.mxu0 }
 0x292   :  { %7341 = vst [vmem:[#allocation8_spill] sm:$0xff] %v6751_v19  ;;  %v3670_v50 = vadd.f32 %v3669_v26, %v6751_v19  ;;  %v3726_v28 = vmul.f32 %v6751_v19, %v6751_v19  ;;  %v6756_v61 = vadd.f32 %v2942_v14, %v2836_v41  ;;  %v6758_v9 = vadd.f32 %v4044_v15, %v4043_v4 }
 0x294   :  { %7342 = vst [vmem:[#allocation9_spill] sm:$0xff] %v6756_v61  ;;  %v3742_v2 = vadd.f32 %v3741_v23, %v3726_v28  ;;  %v3684_v34 = vadd.f32 %v3683_v22, %v6756_v61  ;;  %v3727_v35 = vmul.f32 %v6756_v61, %v6756_v61 }
 0x295   :  { %v2946_v37 = vpop.f32.mrf.mxu1  ;;  %v4046_v52 = vpop.f32.mrf.mxu0 }
 0x296   :  { %v3755_v36 = vadd.f32 %v3754_v43, %v3727_v35  ;;  %v6763_v53 = vadd.f32 %v2946_v37, %v2840_v0 }
 0x297   :  { %v2948_v25 = vpop.f32.mrf.mxu1  ;;  %v4047_v6 = vpop.f32.mrf.mxu0 }
 0x298   :  { %7343 = vst [vmem:[#allocation22_spill] sm:$0xff] %v6763_v53  ;;  %v3671_v40 = vadd.f32 %v3670_v50, %v6763_v53  ;;  %v3729_v41 = vmul.f32 %v6763_v53, %v6763_v53  ;;  %v6769_v46 = vadd.f32 %v2948_v25, %v6708_v10  ;;  %v6771_v45 = vadd.f32 %v4047_v6, %v4046_v52 }
 0x29a   :  { %7344 = vst [vmem:[#allocation24_spill] sm:$0xff] %v6769_v46  ;;  %v3743_v31 = vadd.f32 %v3742_v2, %v3729_v41  ;;  %v3685_v5 = vadd.f32 %v3684_v34, %v6769_v46  ;;  %v3730_v27 = vmul.f32 %v6769_v46, %v6769_v46 }
 0x29b   :  { %v2952_v0 = vpop.f32.mrf.mxu1  ;;  %v4049_v51 = vpop.f32.mrf.mxu0 }
 0x29c   :  { %v3756_v63 = vadd.f32 %v3755_v36, %v3730_v27  ;;  %v6777_v16 = vadd.f32 %v2952_v0, %v6711_v42 }
 0x29d   :  { %v2954_v58 = vpop.f32.mrf.mxu1  ;;  %v4050_v56 = vpop.f32.mrf.mxu0 }
 0x29e   :  { %7345 = vst [vmem:[#allocation10_spill] sm:$0xff] %v6777_v16  ;;  %v3672_v29 = vadd.f32 %v3671_v40, %v6777_v16  ;;  %v3732_v10 = vmul.f32 %v6777_v16, %v6777_v16  ;;  %v6783_v20 = vadd.f32 %v2954_v58, %v6714_v39  ;;  %v6785_v21 = vadd.f32 %v4050_v56, %v4049_v51 }
 0x2a0   :  { %7346 = vst [vmem:[#allocation11_spill] sm:$0xff] %v6783_v20  ;;  %v3744_v47 = vadd.f32 %v3743_v31, %v3732_v10  ;;  %v3686_v57 = vadd.f32 %v3685_v5, %v6783_v20  ;;  %v3733_v18 = vmul.f32 %v6783_v20, %v6783_v20 }
 0x2a1   :  { %v2958_v42 = vpop.f32.mrf.mxu1  ;;  %v4052_v48 = vpop.f32.mrf.mxu0 }
 0x2a2   :  { %v3757_v1 = vadd.f32 %v3756_v63, %v3733_v18  ;;  %v6791_v12 = vadd.f32 %v2958_v42, %v6717_v44 }
 0x2a3   :  { %v2960_v24 = vpop.f32.mrf.mxu1  ;;  %v4053_v30 = vpop.f32.mrf.mxu0 }
 0x2a4   :  { %7347 = vst [vmem:[#allocation26_spill] sm:$0xff] %v6791_v12  ;;  %v3673_v32 = vadd.f32 %v3672_v29, %v6791_v12  ;;  %v3735_v39 = vmul.f32 %v6791_v12, %v6791_v12  ;;  %v6797_v60 = vadd.f32 %v2960_v24, %v6720_v59  ;;  %v6799_v33 = vadd.f32 %v4053_v30, %v4052_v48 }
 0x2a6   :  { %7348 = vst [vmem:[#allocation12_spill] sm:$0xff] %v6797_v60  ;;  %v3745_v26 = vadd.f32 %v3744_v47, %v3735_v39  ;;  %v3687_v55 = vadd.f32 %v3686_v57, %v6797_v60  ;;  %v3736_v49 = vmul.f32 %v6797_v60, %v6797_v60 }
 0x2a7   :  { %v2964_v44 = vpop.f32.mrf.mxu1  ;;  %v4055_v23 = vpop.f32.mrf.mxu0 }
 0x2a8   :  { %v3758_v22 = vadd.f32 %v3757_v1, %v3736_v49  ;;  %v6805_v11 = vadd.f32 %v2964_v44, %v6723_v38 }
 0x2a9   :  { %v2966_v7 = vpop.f32.mrf.mxu1  ;;  %v4056_v4 = vpop.f32.mrf.mxu0 }
 0x2aa   :  { %7349 = vst [vmem:[#allocation13_spill] sm:$0xff] %v6805_v11  ;;  %v3675_v59 = vsel %vm3674_vm4, %v6805_v11, 0.0  ;;  %v3738_v43 = vmul.f32 %v6805_v11, %v6805_v11  ;;  %v6812_v14 = vadd.f32 %v2966_v7, %v6726_v54  ;;  %v6814_v15 = vadd.f32 %v4056_v4, %v4055_v23 }
 0x2ab   :  { %v3676_v50 = vadd.f32 %v3675_v59, %v3673_v32 }
 0x2ac   :  { %7350 = vst [vmem:[#allocation14_spill] sm:$0xff] %v6812_v14  ;;  %v3746_v28 = vsel %vm3674_vm4, %v3738_v43, 0.0  ;;  %v3688_v38 = vsel %vm3674_vm4, %v6812_v14, 0.0  ;;  %v3739_v2 = vmul.f32 %v6812_v14, %v6812_v14 }
 0x2ad   :  { %v3677_v34 = vrot.slane %v3676_v50, 4  ;;  %v3747_v35 = vadd.f32 %v3746_v28, %v3745_v26  ;;  %v3689_v37 = vadd.f32 %v3688_v38, %v3687_v55  ;;  %v4058_v52 = vpop.f32.mrf.mxu0 }
 0x2ae   :  { %v3759_v36 = vsel %vm3674_vm4, %v3739_v2, 0.0 }
 0x2af   :  { %v3678_v25 = vadd.f32 %v3677_v34, %v3676_v50  ;;  %v3748_v54 = vrot.slane %v3747_v35, 4  ;;  %v3690_v6 = vrot.slane %v3689_v37, 4  ;;  %v3760_v40 = vadd.f32 %v3759_v36, %v3758_v22  ;;  %v4059_v41 = vpop.f32.mrf.mxu0 }
 0x2b0   :  { %v6822_v31 = vadd.f32 %v4059_v41, %v4058_v52 }
 0x2b1   :  { %v3679_v5 = vrot.slane %v3678_v25, 2  ;;  %v3749_v27 = vadd.f32 %v3748_v54, %v3747_v35  ;;  %v3691_v0 = vadd.f32 %v3690_v6, %v3689_v37  ;;  %v3761_v51 = vrot.slane %v3760_v40, 4  ;;  %v4093_v63 = vpop.f32.mrf.mxu1 }
 0x2b2   :  { %7351 = vst [vmem:[#allocation15_spill] sm:$0xff] %v6822_v31 }
 0x2b3   :  { %v3680_v58 = vadd.f32 %v3679_v5, %v3678_v25  ;;  %v3750_v56 = vrot.slane %v3749_v27, 2  ;;  %v3692_v29 = vrot.slane %v3691_v0, 2  ;;  %v3762_v10 = vadd.f32 %v3761_v51, %v3760_v40  ;;  %v4094_v47 = vpop.f32.mrf.mxu1 }
 0x2b4   :  { %v4095_v57 = vadd.f32 %v4094_v47, %v4093_v63 }
 0x2b5   :  { %v3681_v18 = vrot.slane %v3680_v58, 1  ;;  %v3751_v42 = vadd.f32 %v3750_v56, %v3749_v27  ;;  %v3693_v48 = vadd.f32 %v3692_v29, %v3691_v0  ;;  %v3763_v1 = vrot.slane %v3762_v10, 2 }
 0x2b6   :  { %v3136_v24 = vadd.f32 %v4095_v57, %v6743_v17  ;;  %v4096_v30 = vpop.f32.mrf.mxu1 }
 0x2b7   :  { %v3682_v32 = vadd.f32 %v3681_v18, %v3680_v58  ;;  %v3752_v39 = vrot.slane %v3751_v42, 1  ;;  %v3694_v26 = vrot.slane %v3693_v48, 1  ;;  %v3764_v55 = vadd.f32 %v3763_v1, %v3762_v10 }
 0x2b8   :  { %v4146_v49 = vpop.f32.mrf.mxu0  ;;  %v4097_v44 = vpop.f32.mrf.mxu1 }
 0x2b9   :  { %v6825_v23 = vmul.f32 0.020408163, %v3682_v32  ;;  %v3753_v22 = vadd.f32 %v3752_v39, %v3751_v42  ;;  %v3695_v7 = vadd.f32 %v3694_v26, %v3693_v48  ;;  %v3765_v4 = vrot.slane %v3764_v55, 1 }
 0x2ba   :  { %v4098_v59 = vadd.f32 %v4097_v44, %v4096_v30  ;;  %v4147_v43 = vpop.f32.mrf.mxu0 }
 0x2bb   :  { %7352 = vst [vmem:[#allocation16_spill] sm:$0xff] %v6825_v23  ;;  %v3786_v50 = vmul.f32 0.020408163, %v3753_v22  ;;  %v3789_v28 = vmul.f32 %v6825_v23, %v6825_v23  ;;  %v6845_v54 = vmul.f32 0.020408163, %v3695_v7  ;;  %v3766_v6 = vadd.f32 %v3765_v4, %v3764_v55 }
 0x2bc   :  { %v6841_v52 = vpop.f32.mrf.mxu1  ;;  %v3141_v40 = vadd.f32 %v4098_v59, %v6758_v9  ;;  %v4148_v41 = vadd.f32 %v4147_v43, %v4146_v49 }
 0x2bd   :  { %v3792_v36 = vsub.f32 %v3786_v50, %v3789_v28  ;;  %7353 = vst [vmem:[#allocation17_spill] sm:$0xff] %v6845_v54  ;;  %v3787_v51 = vmul.f32 0.020408163, %v3766_v6  ;;  %v3790_v63 = vmul.f32 %v6845_v54, %v6845_v54 }
 0x2be   :  { %v4149_v5 = vpop.f32.mrf.mxu0  ;;  %v6848_v27 = vpop.f32.mrf.mxu1  ;;  %v3236_v48 = vadd.f32 %v4148_v41, %v3136_v24 }
 0x2bf   :  { %v3795_v0 = vadd.f32 1e-05, %v3792_v36  ;;  %v3793_v57 = vsub.f32 %v3787_v51, %v3790_v63  ;;  %v4101_v8 = vadd.f32 %v6848_v27, %v6841_v52 }
 0x2c0   :  { %v4150_v47 = vpop.f32.mrf.mxu0 }
 0x2c1   :  { %v4151_v1 = vadd.f32 %v4150_v47, %v4149_v5  ;;  %v3796_v32 = vadd.f32 1e-05, %v3793_v57  ;;  %4490 = vrsqrt.f32 %v3795_v0 }
 0x2c2   :  { %v6866_v30 = vpop.f32.mrf.mxu1 }
 0x2c3   :  { %v6868_v39 = vadd.f32 %v4151_v1, %v3141_v40  ;;  %4492 = vrsqrt.f32 %v3796_v32 }
 0x2c4   :  { %v4152_v26 = vpop.f32.mrf.mxu0  ;;  %v4103_v55 = vpop.f32.mrf.mxu1 }
 0x2c6   :  { %v4153_v49 = vpop.f32.mrf.mxu0 }
 0x2c7   :  { %v4154_v3 = vadd.f32 %v4153_v49, %v4152_v26 }
 0x2c8   :  { %v6870_v44 = vpop.f32.mrf.mxu1 }
 0x2ca   :  { %v6872_v22 = vpop.f32.mrf.mxu0  ;;  %v6876_v4 = vpop.f32.mrf.mxu1 }
 0x2cc   :  { %v6874_v7 = vpop.f32.mrf.mxu0 }
 0x2ce   :  { %v6880_v59 = vpop.eup %4490  ;;  %v6882_v43 = vpop.f32.mrf.mxu1 }
 0x2cf   :  { %7354 = vst [vmem:[#allocation18_spill] sm:$0xff] %v6880_v59 }
 0x2d0   :  { %v6878_v24 = vpop.f32.mrf.mxu0  ;;  %v6884_v50 = vpop.eup %4492 }
 0x2d1   :  { %7355 = vst [vmem:[#allocation20_spill] sm:$0xff] %v6884_v50  ;;  %v6890_v6 = vpop.f32.mrf.mxu1 }
 0x2d2   :  { %v6888_v36 = vpop.f32.mrf.mxu0 }
 0x2d4   :  { %v6894_v41 = vpop.f32.mrf.mxu1 }
 0x2d6   :  { %v6892_v40 = vpop.f32.mrf.mxu0  ;;  %v6898_v0 = vpop.f32.mrf.mxu1 }
 0x2d8   :  { %v6896_v5 = vpop.f32.mrf.mxu0 }
 0x2db   :  { %v6900_v63 = vpop.f32.mrf.mxu0 }
 0x2dd   :  { %v6902_v57 = vpop.f32.mrf.mxu0 }
 0x2df   :  { %v4199_v51 = vpop.f32.mrf.mxu1 }
 0x2e1   :  { %v4200_v47 = vpop.f32.mrf.mxu1 }
 0x2e2   :  { %v4201_v46 = vadd.f32 %v4200_v47, %v4199_v51  ;;  %v3146_v51 = vadd.f32 %v4101_v8, %v6771_v45  ;;  %v4104_v47 = vadd.f32 %v4103_v55, %v6866_v30  ;;  %v4107_v45 = vadd.f32 %v6876_v4, %v6870_v44 }
 0x2e3   :  { %v4110_v55 = vadd.f32 %v6890_v6, %v6882_v43  ;;  %v4163_v43 = vadd.f32 %v6896_v5, %v6892_v40 }
 0x2e4   :  { %v4202_v1 = vpop.f32.mrf.mxu1  ;;  %v3336_v13 = vadd.f32 %v4201_v46, %v3236_v48  ;;  %v3246_v52 = vadd.f32 %v4154_v3, %v3146_v51  ;;  %v4157_v46 = vadd.f32 %v6874_v7, %v6872_v22  ;;  %v3151_v8 = vadd.f32 %v4104_v47, %v6785_v21 }
 0x2e6   :  { %v4252_v32 = vpop.f32.mrf.mxu0  ;;  %v4203_v42 = vpop.f32.mrf.mxu1 }
 0x2e7   :  { %v4204_v23 = vadd.f32 %v4203_v42, %v4202_v1 }
 0x2e8   :  { %v4253_v25 = vpop.f32.mrf.mxu0 }
 0x2e9   :  { %v4205_v18 = vpop.f32.mrf.mxu1  ;;  %v4254_v19 = vadd.f32 %v4253_v25, %v4252_v32  ;;  %v3341_v25 = vadd.f32 %v4204_v23, %v6868_v39 }
 0x2ea   :  { %v4255_v37 = vpop.f32.mrf.mxu0 }
 0x2eb   :  { %v4206_v10 = vpop.f32.mrf.mxu1  ;;  %v3436_v59 = vadd.f32 %v4254_v19, %v3336_v13 }
 0x2ec   :  { %v4256_v35 = vpop.f32.mrf.mxu0  ;;  %v4207_v32 = vadd.f32 %v4206_v10, %v4205_v18  ;;  %v3251_v10 = vadd.f32 %v4157_v46, %v3151_v8 }
 0x2ee   :  { %v4208_v9 = vpop.f32.mrf.mxu1 }
 0x2f0   :  { %v4258_v34 = vpop.f32.mrf.mxu0  ;;  %v4209_v29 = vpop.f32.mrf.mxu1 }
 0x2f1   :  { %v4210_v23 = vadd.f32 %v4209_v29, %v4208_v9 }
 0x2f2   :  { %v4259_v2 = vpop.f32.mrf.mxu0 }
 0x2f3   :  { %v4260_v13 = vadd.f32 %v4259_v2, %v4258_v34  ;;  %v3156_v2 = vadd.f32 %v4107_v45, %v6799_v33  ;;  %v4160_v34 = vadd.f32 %v6888_v36, %v6878_v24  ;;  %v3351_v29 = vadd.f32 %v4210_v23, %v3251_v10 }
 0x2f4   :  { %v6904_v56 = vpop.f32.mrf.mxu1 }
 0x2f5   :  { %v3256_v36 = vadd.f32 %v4160_v34, %v3156_v2 }
 0x2f6   :  { %v4261_v38 = vpop.f32.mrf.mxu0  ;;  %v6906_v58 = vpop.f32.mrf.mxu1 }
 0x2f7   :  { %v4213_v33 = vadd.f32 %v6906_v58, %v6904_v56 }
 0x2f8   :  { %v4262_v17 = vpop.f32.mrf.mxu0 }
 0x2f9   :  { %v4263_v18 = vadd.f32 %v4262_v17, %v4261_v38 }
 0x2fa   :  { %v6908_v28 = vpop.f32.mrf.mxu1 }
 0x2fb   :  { %v3451_v49 = vadd.f32 %v4263_v18, %v3351_v29 }
 0x2fc   :  { %v6910_v14 = vpop.f32.mrf.mxu0  ;;  %v6914_v60 = vpop.f32.mrf.mxu1 }
 0x2fe   :  { %v6912_v11 = vpop.f32.mrf.mxu0 }
 0x2ff   :  { %v4266_v1 = vadd.f32 %v6912_v11, %v6910_v14  ;;  %v4113_v11 = vadd.f32 %v6898_v0, %v6894_v41  ;;  %v4216_v14 = vadd.f32 %v6914_v60, %v6908_v28 }
 0x300   :  { %v6918_v20 = vpop.f32.mrf.mxu1 }
 0x301   :  { %7356 = vst [vmem:[#allocation23_spill] sm:$0xff] %v6918_v20  ;;  %v4257_v20 = vadd.f32 %v4256_v35, %v4255_v37 }
 0x302   :  { %v6916_v12 = vpop.f32.mrf.mxu0  ;;  %v6924_v61 = vpop.f32.mrf.mxu1 }
 0x303   :  { %7359 = vst [vmem:[#allocation40_spill] sm:$0xff] %v6924_v61  ;;  %v3441_v42 = vadd.f32 %v4257_v20, %v3341_v25 }
 0x304   :  { %v6920_v16 = vpop.f32.mrf.mxu0 }
 0x305   :  { %7357 = vst [vmem:[#allocation25_spill] sm:$0xff] %v6920_v16 }
 0x307   :  { %v6922_v53 = vpop.f32.mrf.mxu0 }
 0x308   :  { %7358 = vst [vmem:[#allocation38_spill] sm:$0xff] %v6922_v53 }
 0x309   :  { %v6926_v62 = vpop.f32.mrf.mxu0 }
 0x30a   :  { %7360 = vst [vmem:[#allocation27_spill] sm:$0xff] %v6926_v62  ;;  %v4305_v54 = vpop.f32.mrf.mxu1 }
 0x30c   :  { %v4306_v50 = vpop.f32.mrf.mxu1  ;;  %v7361_v0 = vld [vmem:[#allocation25_spill] sm:$0xff] }
 0x30d   :  { %v3635_v31 = vpop.f32.mrf.mxu0  ;;  %v4307_v16 = vadd.f32 %v4306_v50, %v4305_v54  ;;  %v4269_v23 = vadd.f32 %v7361_v0, %v6916_v12 }
 0x30e   :  { %v4308_v53 = vpop.f32.mrf.mxu1 }
 0x30f   :  { %v3536_v62 = vadd.f32 %v4307_v16, %v3436_v59  ;;  %v4392_v61 = vpop.f32.mrf.mxu0  ;;  %v3346_v16 = vadd.f32 %v4207_v32, %v3246_v52  ;;  %v3161_v32 = vadd.f32 %v4110_v55, %v6814_v15  ;;  %v3356_v52 = vadd.f32 %v4213_v33, %v3256_v36 }
 0x310   :  { %v4309_v27 = vpop.f32.mrf.mxu1  ;;  %v4166_v15 = vadd.f32 %v6902_v57, %v6900_v63  ;;  %v7363_v63 = vld [vmem:[#allocation23_spill] sm:$0xff]  ;;  %v7364_v57 = vld [vmem:[#allocation40_spill] sm:$0xff] }
 0x311   :  { %v6935_v19 = vadd.f32 %v3635_v31, %v3536_v62  ;;  %v3640_v35 = vpop.f32.mrf.mxu0  ;;  %v4310_v37 = vadd.f32 %v4309_v27, %v4308_v53  ;;  %v3446_v20 = vadd.f32 %v4260_v13, %v3346_v16  ;;  %v3456_v13 = vadd.f32 %v4266_v1, %v3356_v52  ;;  %v7366_v12 = vld [vmem:[#allocation27_spill] sm:$0xff] }
 0x312   :  { %v4311_v54 = vpop.f32.mrf.mxu1  ;;  %v3261_v8 = vadd.f32 %v4163_v43, %v3161_v32 }
 0x313   :  { %v3541_v61 = vadd.f32 %v4310_v37, %v3441_v42  ;;  %v4395_v3 = vpop.f32.mrf.mxu0  ;;  %v3722_v62 = vmul.f32 %v6935_v19, %v6935_v19  ;;  %v3697_v17 = vsel %vm3696_vm5, %v6935_v19, 0.0 }
 0x314   :  { %v4312_v48 = vpop.f32.mrf.mxu1  ;;  %v3361_v10 = vadd.f32 %v4216_v14, %v3261_v8 }
 0x315   :  { %v6942_v31 = vadd.f32 %v3640_v35, %v3541_v61  ;;  %v3645_v53 = vpop.f32.mrf.mxu0  ;;  %v4313_v21 = vadd.f32 %v4312_v48, %v4311_v54  ;;  %v3767_v7 = vsel %vm3696_vm5, %v3722_v62, 0.0  ;;  %v7362_v61 = vld [vmem:[#allocation15_spill] sm:$0xff] }
 0x316   :  { %v4314_v9 = vpop.f32.mrf.mxu1  ;;  %v3166_v3 = vadd.f32 %v4113_v11, %v7362_v61  ;;  %v3461_v29 = vadd.f32 %v4269_v23, %v3361_v10 }
 0x317   :  { %v3698_v38 = vsel %vm3696_vm5, %v6942_v31, 0.0  ;;  %v3725_v30 = vmul.f32 %v6942_v31, %v6942_v31  ;;  %v3546_v39 = vadd.f32 %v4313_v21, %v3446_v20  ;;  %v4398_v26 = vpop.f32.mrf.mxu0  ;;  %v4219_v20 = vadd.f32 %v7364_v57, %v7363_v63 }
 0x318   :  { %v3699_v44 = vadd.f32 %v3698_v38, %v3697_v17  ;;  %v4315_v22 = vpop.f32.mrf.mxu1  ;;  %v3266_v2 = vadd.f32 %v4166_v15, %v3166_v3 }
 0x319   :  { %v3768_v4 = vsel %vm3696_vm5, %v3725_v30, 0.0  ;;  %v6959_v24 = vadd.f32 %v3645_v53, %v3546_v39  ;;  %v3650_v59 = vpop.f32.mrf.mxu0  ;;  %v4316_v50 = vadd.f32 %v4315_v22, %v4314_v9  ;;  %v7365_v9 = vld [vmem:[#allocation38_spill] sm:$0xff] }
 0x31a   :  { %v3769_v51 = vadd.f32 %v3768_v4, %v3767_v7  ;;  %v4272_v17 = vadd.f32 %v7366_v12, %v7365_v9  ;;  %v3366_v55 = vadd.f32 %v4219_v20, %v3266_v2  ;;  %v7369_v9 = vld [vmem:[#allocation20_spill] sm:$0xff] }
 0x31b   :  { %v3700_v58 = vsel %vm3696_vm5, %v6959_v24, 0.0  ;;  %v3728_v56 = vmul.f32 %v6959_v24, %v6959_v24  ;;  %v3551_v6 = vadd.f32 %v4316_v50, %v3451_v49  ;;  %v4401_v47 = vpop.f32.mrf.mxu0  ;;  %v4317_v25 = vpop.f32.mrf.mxu1 }
 0x31c   :  { %v3701_v46 = vadd.f32 %v3700_v58, %v3699_v44  ;;  %v3466_v4 = vadd.f32 %v4272_v17, %v3366_v55 }
 0x31d   :  { %v3770_v40 = vsel %vm3696_vm5, %v3728_v56, 0.0  ;;  %v6975_v5 = vadd.f32 %v3650_v59, %v3551_v6  ;;  %v3655_v27 = vpop.f32.mrf.mxu0  ;;  %v4318_v42 = vpop.f32.mrf.mxu1 }
 0x31e   :  { %v3771_v35 = vadd.f32 %v3770_v40, %v3769_v51  ;;  %v4319_v37 = vadd.f32 %v4318_v42, %v4317_v25 }
 0x31f   :  { %v3702_v45 = vsel %vm3696_vm5, %v6975_v5, 0.0  ;;  %v3731_v41 = vmul.f32 %v6975_v5, %v6975_v5  ;;  %v4404_v60 = vpop.f32.mrf.mxu0  ;;  %v4320_v28 = vpop.f32.mrf.mxu1 }
 0x320   :  { %v3556_v54 = vadd.f32 %v4319_v37, %v3456_v13  ;;  %v3703_v16 = vadd.f32 %v3702_v45, %v3701_v46 }
 0x321   :  { %v3772_v18 = vsel %vm3696_vm5, %v3731_v41, 0.0  ;;  %v4321_v48 = vpop.f32.mrf.mxu1 }
 0x322   :  { %v6989_v62 = vadd.f32 %v3655_v27, %v3556_v54  ;;  %v4322_v53 = vadd.f32 %v4321_v48, %v4320_v28  ;;  %v3773_v21 = vadd.f32 %v3772_v18, %v3771_v35 }
 0x323   :  { %v4323_v34 = vpop.f32.mrf.mxu1 }
 0x324   :  { %v3734_v38 = vmul.f32 %v6989_v62, %v6989_v62  ;;  %v3704_v30 = vsel %vm3696_vm5, %v6989_v62, 0.0  ;;  %v3561_v49 = vadd.f32 %v4322_v53, %v3461_v29  ;;  %v4498_v53 = vmov 1966171168  }
 0x325   :  { %v4324_v39 = vpop.f32.mrf.mxu1  ;;  %v3705_v26 = vadd.f32 %v3704_v30, %v3703_v16  ;;  %v3888_v30 = vld [vmem:[%s7153_s6] sm:$0x7] }
 0x326   :  { %v4325_v33 = vadd.f32 %v4324_v39, %v4323_v34  ;;  %v3774_v44 = vsel %vm3696_vm5, %v3734_v38, 0.0  ;;  %v7367_v34 = vld [vmem:[#allocation2_spill] sm:$0xff] }
 0x327   :  { %v3660_v22 = vpop.f32.mrf.mxu1  ;;  %v3775_v7 = vadd.f32 %v3774_v44, %v3773_v21  ;;  %v3828_v21 = vunpack.c.l.s4 %v4498_v53  ;;  %v7373_v44 = vld [vmem:[#allocation4_spill] sm:$0xff] }
 0x328   :  { %v6998_v59 = vadd.f32 %v3660_v22, %v3561_v49  ;;  %v3566_v51 = vadd.f32 %v4325_v33, %v3466_v4  ;;  %v7372_v33 = vld [vmem:[#allocation5_spill] sm:$0xff]  ;;  %v3901_v4 = vrot.slane %v3888_v30, %v7373_v44 }
 0x329   :  { %v4407_v50 = vpop.f32.mrf.mxu1  ;;  %v3829_v2 = vunpack.c.0.s8 %v3828_v21 }
 0x32a   :  { %v3706_v36 = vsel %vm3696_vm5, %v6998_v59, 0.0  ;;  %v3737_v1 = vmul.f32 %v6998_v59, %v6998_v59  ;;  %v7374_v50 = vld [vmem:[#allocation6_spill] sm:$0xff] }
 0x32b   :  { %v3707_v43 = vadd.f32 %v3706_v36, %v3705_v26  ;;  %v3665_v58 = vpop.f32.mrf.mxu1  ;;  %v7371_v26 = vld [vmem:[#allocation3_spill] sm:$0xff]  ;;  %v7375_v36 = vld [vmem:[#allocation16_spill] sm:$0xff] }
 0x32c   :  { %v3776_v56 = vsel %vm3696_vm5, %v3737_v1, 0.0  ;;  %v7005_v6 = vadd.f32 %v3665_v58, %v3566_v51  ;;  %v7376_v1 = vsub.f32 %v7374_v50, %v7375_v36  ;;  %v7378_v58 = vld [vmem:[#allocation17_spill] sm:$0xff] }
 0x32d   :  { %v3777_v47 = vadd.f32 %v3776_v56, %v3775_v7  ;;  %v4410_v25 = vpop.f32.mrf.mxu1  ;;  %v3893_v7 = vrot.slane %v3888_v30, %v7371_v26 }
 0x32e   :  { %v3709_v32 = vsel %vm3708_vm6, %v7005_v6, 0.0  ;;  %v3740_v52 = vmul.f32 %v7005_v6, %v7005_v6  ;;  %v7380_v25 = vld [vmem:[#allocation19_spill] sm:$0xff] }
 0x32f   :  { %v3710_v46 = vadd.f32 %v3709_v32, %v3707_v43  ;;  %v7377_v43 = vld [vmem:[#allocation7_spill] sm:$0xff]  ;;  %v7381_v32 = vsub.f32 %v7380_v25, %v7375_v36 }
 0x330   :  { %v3778_v11 = vsel %vm3708_vm6, %v3740_v52, 0.0  ;;  %v7379_v56 = vsub.f32 %v7377_v43, %v7378_v58 }
 0x331   :  { %v3711_v14 = vrot.slane %v3710_v46, 4  ;;  %v3779_v40 = vadd.f32 %v3778_v11, %v3777_v47 }
 0x333   :  { %v3712_v27 = vadd.f32 %v3711_v14, %v3710_v46  ;;  %v3780_v42 = vrot.slane %v3779_v40, 4  ;;  %v7382_v46 = vld [vmem:[#allocation21_spill] sm:$0xff] }
 0x334   :  { %v7383_v11 = vsub.f32 %v7382_v46, %v7378_v58 }
 0x335   :  { %v3713_v13 = vrot.slane %v3712_v27, 2  ;;  %v3781_v35 = vadd.f32 %v3780_v42, %v3779_v40 }
 0x337   :  { %v3714_v37 = vadd.f32 %v3713_v13, %v3712_v27  ;;  %v3782_v8 = vrot.slane %v3781_v35, 2  ;;  %v7384_v27 = vld [vmem:[#allocation8_spill] sm:$0xff] }
 0x338   :  { %v7385_v42 = vsub.f32 %v7384_v27, %v7375_v36 }
 0x339   :  { %v3715_v15 = vrot.slane %v3714_v37, 1  ;;  %v3783_v45 = vadd.f32 %v3782_v8, %v3781_v35  ;;  %v7386_v35 = vld [vmem:[#allocation9_spill] sm:$0xff] }
 0x33b   :  { %v3716_v41 = vadd.f32 %v3715_v15, %v3714_v37  ;;  %v3784_v60 = vrot.slane %v3783_v45, 1  ;;  %v7387_v37 = vsub.f32 %v7386_v35, %v7378_v58 }
 0x33d   :  { %v3719_v28 = vmul.f32 0.020408163, %v3716_v41  ;;  %v3785_v0 = vadd.f32 %v3784_v60, %v3783_v45  ;;  %v7388_v45 = vld [vmem:[#allocation22_spill] sm:$0xff] }
 0x33e   :  { %v7389_v41 = vsub.f32 %v7388_v45, %v7375_v36 }
 0x33f   :  { %v3788_v23 = vmul.f32 0.020408163, %v3785_v0  ;;  %v3791_v54 = vmul.f32 %v3719_v28, %v3719_v28  ;;  %v3803_v16 = vsub.f32 %v6935_v19, %v3719_v28  ;;  %v3806_v61 = vsub.f32 %v6942_v31, %v3719_v28  ;;  %v7368_v31 = vld [vmem:[#allocation18_spill] sm:$0xff] }
 0x340   :  { %v3809_v3 = vsub.f32 %v6959_v24, %v3719_v28  ;;  %v3812_v10 = vsub.f32 %v6975_v5, %v3719_v28  ;;  %v3815_v18 = vsub.f32 %v6989_v62, %v3719_v28  ;;  %v3818_v48 = vsub.f32 %v6998_v59, %v3719_v28  ;;  %v3822_v62 = vld [vmem:[%s7152_s5] sm:$0x7] }
 0x341   :  { %v3794_v63 = vsub.f32 %v3788_v23, %v3791_v54  ;;  %v3821_v57 = vsub.f32 %v7005_v6, %v3719_v28  ;;  %v3832_v19 = vsub.s32 %v3829_v2, %v7367_v34  ;;  %v7370_v24 = vcombine.low %v7368_v31, %v7369_v9  ;;  %v7390_v28 = vld [vmem:[#allocation24_spill] sm:$0xff]  ;;  %v7396_v34 = vld [vmem:[#allocation26_spill] sm:$0xff] }
 0x342   :  { %v3897_v59 = vrot.slane %v3888_v30, %v7372_v33  ;;  %v7391_v0 = vsub.f32 %v7390_v28, %v7378_v58 }
 0x343   :  { %v3797_v20 = vadd.f32 1e-05, %v3794_v63  ;;  %v3833_v12 = vrot.slane %v7370_v24, %v3832_v19 }
 0x345   :  { %4494 = vrsqrt.f32 %v3797_v20  ;;  %v7394_v20 = vld [vmem:[#allocation11_spill] sm:$0xff] }
 0x346   :  { %v7395_v53 = vsub.f32 %v7394_v20, %v7378_v58 }
 0x352   :  { %v4495_v29 = vpop.eup %4494 }
 0x353   :  { %v3840_v5 = vrot.slane %v4495_v29, %v3832_v19  ;;  %v7398_v29 = vld [vmem:[#allocation12_spill] sm:$0xff] }
 0x354   :  { %v7399_v31 = vsub.f32 %v7398_v29, %v7378_v58 }
 0x355   :  { %v3841_v17 = vcombine.low %v3833_v12, %v3840_v5  ;;  %v7400_v12 = vld [vmem:[#allocation13_spill] sm:$0xff] }
 0x357   :  { %v3848_v38 = vrot.slane %v3841_v17, %v3832_v19  ;;  %v7402_v17 = vld [vmem:[#allocation14_spill] sm:$0xff] }
 0x359   :  { %v3850_v39 = vmul.f32 %v3848_v38, %v3822_v62  ;;  %v7403_v62 = vsub.f32 %v7402_v17, %v7378_v58 }
 0x35b   :  { %v3855_v55 = vrot.slane %v3850_v39, %v7371_v26  ;;  %v3859_v49 = vrot.slane %v3850_v39, %v7372_v33  ;;  %v3863_v22 = vrot.slane %v3850_v39, %v7373_v44 }
 0x35d   :  { %v3867_v51 = vmul.f32 %v3855_v55, %v7376_v1  ;;  %v3868_v6 = vmul.f32 %v3859_v49, %v7379_v56  ;;  %v3869_v47 = vmul.f32 %v3863_v22, %v3803_v16  ;;  %v3870_v52 = vmul.f32 %v3855_v55, %v7381_v32  ;;  %v7392_v16 = vld [vmem:[#allocation10_spill] sm:$0xff] }
 0x35e   :  { %v3871_v14 = vmul.f32 %v3859_v49, %v7383_v11  ;;  %v3872_v40 = vmul.f32 %v3863_v22, %v3806_v61  ;;  %v3873_v13 = vmul.f32 %v3855_v55, %v7385_v42  ;;  %v3874_v8 = vmul.f32 %v3859_v49, %v7387_v37 }
 0x35f   :  { %v3875_v15 = vmul.f32 %v3863_v22, %v3809_v3  ;;  %v3876_v60 = vmul.f32 %v3855_v55, %v7389_v41  ;;  %v3877_v23 = vmul.f32 %v3859_v49, %v7391_v0  ;;  %v3878_v54 = vmul.f32 %v3863_v22, %v3812_v10 }
 0x360   :  { %v7393_v61 = vsub.f32 %v7392_v16, %v7375_v36  ;;  %v3880_v21 = vmul.f32 %v3859_v49, %v7395_v53  ;;  %v3881_v2 = vmul.f32 %v3863_v22, %v3815_v18  ;;  %v7397_v3 = vsub.f32 %v7396_v34, %v7375_v36 }
 0x361   :  { %v3883_v9 = vmul.f32 %v3859_v49, %v7399_v31  ;;  %v3884_v24 = vmul.f32 %v3863_v22, %v3818_v48  ;;  %v7401_v10 = vsub.f32 %v7400_v12, %v7375_v36  ;;  %v3886_v38 = vmul.f32 %v3859_v49, %v7403_v62 }
 0x362   :  { %v3879_v63 = vmul.f32 %v3855_v55, %v7393_v61  ;;  %v3882_v19 = vmul.f32 %v3855_v55, %v7397_v3  ;;  %v3887_v30 = vmul.f32 %v3863_v22, %v3821_v57  ;;  %v3905_v39 = vadd.f32 %v3893_v7, %v3867_v51 }
 0x363   :  { %v3885_v5 = vmul.f32 %v3855_v55, %v7401_v10  ;;  %v3906_v18 = vadd.f32 %v3897_v59, %v3868_v6  ;;  %v3907_v26 = vadd.f32 %v3901_v4, %v3869_v47  ;;  %v3908_v33 = vadd.f32 %v3893_v7, %v3870_v52 }
 0x364   :  { %v3909_v44 = vadd.f32 %v3897_v59, %v3871_v14  ;;  %v3910_v50 = vadd.f32 %v3901_v4, %v3872_v40  ;;  %v3911_v1 = vadd.f32 %v3893_v7, %v3873_v13  ;;  %v3912_v43 = vadd.f32 %v3897_v59, %v3874_v8  ;;  %3926 = vst [vmem:[%s7154_s7] sm:$0xff] %v3905_v39 }
 0x365   :  { %v3913_v56 = vadd.f32 %v3901_v4, %v3875_v15  ;;  %v3914_v25 = vadd.f32 %v3893_v7, %v3876_v60  ;;  %v3915_v48 = vadd.f32 %v3897_v59, %v3877_v23  ;;  %3927 = vst [vmem:[%s7154_s7 + $0x8] sm:$0xff] %v3906_v18  ;;  %3928 = vst.msk [vmem:[%s7154_s7 + $0x10] sm:$0xff] %vm3696_vm5, %v3907_v26 }
 0x366   :  { %v3916_v57 = vadd.f32 %v3901_v4, %v3878_v54  ;;  %v3917_v55 = vadd.f32 %v3893_v7, %v3879_v63  ;;  %v3918_v49 = vadd.f32 %v3897_v59, %v3880_v21  ;;  %v3919_v22 = vadd.f32 %v3901_v4, %v3881_v2  ;;  %3929 = vst [vmem:[%s7154_s7 + $0x18] sm:$0xff] %v3908_v33 }
 0x367   :  { %3930 = vst [vmem:[%s7154_s7 + $0x20] sm:$0xff] %v3909_v44  ;;  %3931 = vst.msk [vmem:[%s7154_s7 + $0x28] sm:$0xff] %vm3696_vm5, %v3910_v50  ;;  %v3920_v36 = vadd.f32 %v3893_v7, %v3882_v19  ;;  %v3921_v51 = vadd.f32 %v3897_v59, %v3883_v9  ;;  %v3922_v58 = vadd.f32 %v3901_v4, %v3884_v24 }
 0x368   :  { %3932 = vst [vmem:[%s7154_s7 + $0x30] sm:$0xff] %v3911_v1  ;;  %v3923_v6 = vadd.f32 %v3893_v7, %v3885_v5  ;;  %3933 = vst [vmem:[%s7154_s7 + $0x38] sm:$0xff] %v3912_v43  ;;  %v3924_v47 = vadd.f32 %v3897_v59, %v3886_v38  ;;  %v3925_v32 = vadd.f32 %v3901_v4, %v3887_v30 }
 0x369   :  { %3934 = vst.msk [vmem:[%s7154_s7 + $0x40] sm:$0xff] %vm3696_vm5, %v3913_v56  ;;  %3935 = vst [vmem:[%s7154_s7 + $0x48] sm:$0xff] %v3914_v25 }
 0x36a   :  { %3936 = vst [vmem:[%s7154_s7 + $0x50] sm:$0xff] %v3915_v48  ;;  %3937 = vst.msk [vmem:[%s7154_s7 + $0x58] sm:$0xff] %vm3696_vm5, %v3916_v57 }
 0x36b   :  { %3938 = vst [vmem:[%s7154_s7 + $0x60] sm:$0xff] %v3917_v55  ;;  %3939 = vst [vmem:[%s7154_s7 + $0x68] sm:$0xff] %v3918_v49 }
 0x36c   :  { %3940 = vst.msk [vmem:[%s7154_s7 + $0x70] sm:$0xff] %vm3696_vm5, %v3919_v22  ;;  %3941 = vst [vmem:[%s7154_s7 + $0x78] sm:$0xff] %v3920_v36 }
 0x36d   :  { %3942 = vst [vmem:[%s7154_s7 + $0x80] sm:$0xff] %v3921_v51  ;;  %3943 = vst.msk [vmem:[%s7154_s7 + $0x88] sm:$0xff] %vm3696_vm5, %v3922_v58 }
 0x36e   :  { %3944 = vst [vmem:[%s7154_s7 + $0x90] sm:$0x1] %v3923_v6  ;;  %3945 = vst [vmem:[%s7154_s7 + $0x98] sm:$0x1] %v3924_v47 }
 0x36f   :  { %3946 = vst.msk [vmem:[%s7154_s7 + $0xa0] sm:$0x1] %vm3708_vm6, %v3925_v32 }

</bundles_post_ra>
